<compile_context>
chip_gen: v7x
topology: tpu7x:2x2x1
jax: 0.10.0
libtpu: 0.0.40
codegen_flags: <defaults>
</compile_context>

<pallas_src>
import functools
import numpy as np
import jax
import jax.numpy as jnp
from jax import lax
from jax.experimental import pallas as pl
from jax.experimental.pallas import tpu as pltpu


# ----------------------------- Pallas kernels --------------------------------
def _dc_body(x_ref, t0_ref, s0_ref, b0_ref, a0_ref,
             t1_ref, s1_ref, b1_ref, a1_ref, mid_ref, H):
    """Fused (conv3x3 + BN + PReLU) x2 on one lane-flattened image.

    x_ref:   (1, H+2, W*Cin)   row-padded input (1 zero row top/bottom)
    t*_ref:  (3, W*Cin, W*Cmid) / (3, W*Cmid, W*Cout)  block-Toeplitz weights
    s/b/a:   (1, W*C)          folded-BN scale/bias and PReLU slope (lane-tiled)
    mid_ref: (H+2, W*Cmid)     VMEM scratch for the row-padded intermediate
    """
    # conv0: 3 row-shifted matmuls (kernel row kh uses input rows kh .. kh+H-1)
    acc = jnp.dot(x_ref[0, 0:H, :], t0_ref[0], preferred_element_type=jnp.float32)
    acc = acc + jnp.dot(x_ref[0, 1:H + 1, :], t0_ref[1],
                        preferred_element_type=jnp.float32)
    acc = acc + jnp.dot(x_ref[0, 2:H + 2, :], t0_ref[2],
                        preferred_element_type=jnp.float32)
    y0 = acc * s0_ref[...] + b0_ref[...]
    y0 = jnp.where(y0 > 0, y0, a0_ref[...] * y0)

    # row-pad the intermediate inside VMEM (no HBM round trip)
    zrow = jnp.zeros((1, mid_ref.shape[1]), jnp.float32)
    mid_ref[0:1, :] = zrow
    mid_ref[H + 1:H + 2, :] = zrow
    mid_ref[1:H + 1, :] = y0

    # conv1: center tap straight from y0, shifted taps from the padded scratch
    acc = jnp.dot(mid_ref[0:H, :], t1_ref[0], preferred_element_type=jnp.float32)
    acc = acc + jnp.dot(y0, t1_ref[1], preferred_element_type=jnp.float32)
    acc = acc + jnp.dot(mid_ref[2:H + 2, :], t1_ref[2],
                        preferred_element_type=jnp.float32)
    y1 = acc * s1_ref[...] + b1_ref[...]
    return jnp.where(y1 > 0, y1, a1_ref[...] * y1)


def _double_conv_kernel(x_ref, t0_ref, s0_ref, b0_ref, a0_ref,
                        t1_ref, s1_ref, b1_ref, a1_ref, o_ref, mid_ref):
    H = o_ref.shape[1]
    y1 = _dc_body(x_ref, t0_ref, s0_ref, b0_ref, a0_ref,
                  t1_ref, s1_ref, b1_ref, a1_ref, mid_ref, H)
    o_ref[0] = y1.astype(o_ref.dtype)


def _double_conv_1x1_kernel(x_ref, t0_ref, s0_ref, b0_ref, a0_ref,
                            t1_ref, s1_ref, b1_ref, a1_ref,
                            t2_ref, b2_ref, o_ref, mid_ref):
    # Same as above, plus the final Conv2d(C, 1, kernel=1) fused as an extra
    # (block-diagonal) matmul epilogue.
    H = o_ref.shape[1]
    y1 = _dc_body(x_ref, t0_ref, s0_ref, b0_ref, a0_ref,
                  t1_ref, s1_ref, b1_ref, a1_ref, mid_ref, H)
    out = jnp.dot(y1, t2_ref[...], preferred_element_type=jnp.float32) + b2_ref[...]
    o_ref[0] = out.astype(o_ref.dtype)


def _convT_kernel(x_ref, t_ref, b_ref, oe_ref, oo_ref):
    """Polyphase ConvTranspose2d(k=3, s=2, p=0): even/odd output rows.

    x_ref: (1, H+2, W*Cin) row-padded input.  t_ref[kh]: (W*Cin, (2W+1)*Cout)
    maps the input row to a FULL (even+odd columns interleaved) output row for
    kernel row kh.  Even output rows 2m use kernel rows 2 (x[m-1]) and 0 (x[m]);
    odd output rows 2m+1 use kernel row 1 (x[m]).
    """
    H = oo_ref.shape[1]
    even = (jnp.dot(x_ref[0, 0:H + 1, :], t_ref[2], preferred_element_type=jnp.float32)
            + jnp.dot(x_ref[0, 1:H + 2, :], t_ref[0], preferred_element_type=jnp.float32)
            + b_ref[...])
    odd = (jnp.dot(x_ref[0, 1:H + 1, :], t_ref[1], preferred_element_type=jnp.float32)
           + b_ref[...])
    oe_ref[0] = even.astype(oe_ref.dtype)
    oo_ref[0] = odd.astype(oo_ref.dtype)


# --------------------------- Pallas call wrappers -----------------------------
def _row_pad_flatten(x):
    """NHWC -> (N, H+2, W*C): flatten (W, C) into lanes, add 1 zero row top/bot."""
    N, H, W, C = x.shape
    x2 = x.reshape(N, H, W * C)
    return jnp.pad(x2, ((0, 0), (1, 1), (0, 0)))


def double_conv_pallas(x, p0, p1):
    N, H, W, Cin = x.shape
    L0 = p0['t'].shape[2]
    L1 = p1['t'].shape[2]
    Cout = L1 // W
    xrp = _row_pad_flatten(x)
    out = pl.pallas_call(
        _double_conv_kernel,
        out_shape=jax.ShapeDtypeStruct((N, H, L1), jnp.float32),
        grid=(N,),
        in_specs=[
            pl.BlockSpec((1, H + 2, W * Cin), lambda n: (n, 0, 0)),
            pl.BlockSpec(p0['t'].shape, lambda n: (0, 0, 0)),
            pl.BlockSpec((1, L0), lambda n: (0, 0)),
            pl.BlockSpec((1, L0), lambda n: (0, 0)),
            pl.BlockSpec((1, L0), lambda n: (0, 0)),
            pl.BlockSpec(p1['t'].shape, lambda n: (0, 0, 0)),
            pl.BlockSpec((1, L1), lambda n: (0, 0)),
            pl.BlockSpec((1, L1), lambda n: (0, 0)),
            pl.BlockSpec((1, L1), lambda n: (0, 0)),
        ],
        out_specs=pl.BlockSpec((1, H, L1), lambda n: (n, 0, 0)),
        scratch_shapes=[pltpu.VMEM((H + 2, L0), jnp.float32)],
        compiler_params=pltpu.CompilerParams(dimension_semantics=("parallel",)),
    )(xrp, p0['t'], p0['s'], p0['b'], p0['a'],
      p1['t'], p1['s'], p1['b'], p1['a'])
    return out.reshape(N, H, W, Cout)


def double_conv_1x1_pallas(x, p0, p1, p2):
    N, H, W, Cin = x.shape
    L0 = p0['t'].shape[2]
    L1 = p1['t'].shape[2]
    xrp = _row_pad_flatten(x)
    out = pl.pallas_call(
        _double_conv_1x1_kernel,
        out_shape=jax.ShapeDtypeStruct((N, H, W), jnp.float32),
        grid=(N,),
        in_specs=[
            pl.BlockSpec((1, H + 2, W * Cin), lambda n: (n, 0, 0)),
            pl.BlockSpec(p0['t'].shape, lambda n: (0, 0, 0)),
            pl.BlockSpec((1, L0), lambda n: (0, 0)),
            pl.BlockSpec((1, L0), lambda n: (0, 0)),
            pl.BlockSpec((1, L0), lambda n: (0, 0)),
            pl.BlockSpec(p1['t'].shape, lambda n: (0, 0, 0)),
            pl.BlockSpec((1, L1), lambda n: (0, 0)),
            pl.BlockSpec((1, L1), lambda n: (0, 0)),
            pl.BlockSpec((1, L1), lambda n: (0, 0)),
            pl.BlockSpec(p2['t'].shape, lambda n: (0, 0)),
            pl.BlockSpec((1, W), lambda n: (0, 0)),
        ],
        out_specs=pl.BlockSpec((1, H, W), lambda n: (n, 0, 0)),
        scratch_shapes=[pltpu.VMEM((H + 2, L0), jnp.float32)],
        compiler_params=pltpu.CompilerParams(dimension_semantics=("parallel",)),
    )(xrp, p0['t'], p0['s'], p0['b'], p0['a'],
      p1['t'], p1['s'], p1['b'], p1['a'], p2['t'], p2['b'])
    return out.reshape(N, H, W, 1)


def conv_transpose_pallas(x, p):
    N, H, W, Cin = x.shape
    L = p['t'].shape[2]                  # (2W+1) * Cout
    Cout = L // (2 * W + 1)
    xrp = _row_pad_flatten(x)
    even, odd = pl.pallas_call(
        _convT_kernel,
        out_shape=(jax.ShapeDtypeStruct((N, H + 1, L), jnp.float32),
                   jax.ShapeDtypeStruct((N, H, L), jnp.float32)),
        grid=(N,),
        in_specs=[
            pl.BlockSpec((1, H + 2, W * Cin), lambda n: (n, 0, 0)),
            pl.BlockSpec(p['t'].shape, lambda n: (0, 0, 0)),
            pl.BlockSpec((1, L), lambda n: (0, 0)),
        ],
        out_specs=(pl.BlockSpec((1, H + 1, L), lambda n: (n, 0, 0)),
                   pl.BlockSpec((1, H, L), lambda n: (n, 0, 0))),
        compiler_params=pltpu.CompilerParams(dimension_semantics=("parallel",)),
    )(xrp, p['t'], p['b'])
    ye = even.reshape(N, H + 1, 2 * W + 1, Cout)
    yo = odd.reshape(N, H, 2 * W + 1, Cout)
    y = jnp.zeros((N, 2 * H + 1, 2 * W + 1, Cout), jnp.float32)
    y = y.at[:, 0::2].set(ye).at[:, 1::2].set(yo)
    return y


# ------------------------------- JAX glue ------------------------------------
def maxpool2x2(x):  # NHWC
    N, H, W, C = x.shape
    return x.reshape(N, H // 2, 2, W // 2, 2, C).max(axis=(2, 4))


def pad_crop_to(y, H0, W0):
    """Replicates F.pad(x1, (dx//2, dx-dx//2, dy//2, dy-dy//2)) incl. negative (crop)."""
    N, H, W, C = y.shape
    dy, dx = H0 - H, W0 - W
    t, b = dy // 2, dy - dy // 2
    l, r = dx // 2, dx - dx // 2
    y = y[:, max(0, -t): H - max(0, -b), max(0, -l): W - max(0, -r), :]
    return jnp.pad(y, ((0, 0), (max(0, t), max(0, b)), (max(0, l), max(0, r)), (0, 0)))


# ------------------ host-side packing (block-Toeplitz weights) ----------------
def _toeplitz_same_conv(w_hwio, W):
    """(3,3,Cin,Cout) -> (3, W*Cin, W*Cout): per-kernel-row Toeplitz for 'same' conv."""
    w = np.asarray(w_hwio)
    K, _, Cin, Cout = w.shape
    T = np.zeros((K, W * Cin, W * Cout), np.float32)
    for kh in range(K):
        for wo in range(W):
            for kw in range(K):
                wi = wo + kw - (K // 2)
                if 0 <= wi < W:
                    T[kh, wi * Cin:(wi + 1) * Cin, wo * Cout:(wo + 1) * Cout] = w[kh, kw]
    return T


def _toeplitz_convT(w_t, W):
    """(Cin,Cout,3,3) torch ConvTranspose weight -> (3, W*Cin, (2W+1)*Cout)."""
    w = np.asarray(w_t)
    Cin, Cout = w.shape[0], w.shape[1]
    L = (2 * W + 1) * Cout
    T = np.zeros((3, W * Cin, L), np.float32)
    for kh in range(3):
        for n in range(W + 1):              # even output columns ox = 2n
            ox = 2 * n
            if n < W:
                T[kh, n * Cin:(n + 1) * Cin, ox * Cout:(ox + 1) * Cout] = w[:, :, kh, 0]
            if n >= 1:
                T[kh, (n - 1) * Cin:n * Cin, ox * Cout:(ox + 1) * Cout] = w[:, :, kh, 2]
        for n in range(W):                  # odd output columns ox = 2n+1
            ox = 2 * n + 1
            T[kh, n * Cin:(n + 1) * Cin, ox * Cout:(ox + 1) * Cout] = w[:, :, kh, 1]
    return T


def _pack_conv_bn_act(p, W):
    return dict(
        t=jnp.asarray(_toeplitz_same_conv(p['w_hwio'], W)),
        s=jnp.asarray(np.tile(np.asarray(p['scale']), W)[None, :]),
        b=jnp.asarray(np.tile(np.asarray(p['bias']), W)[None, :]),
        a=jnp.asarray(np.tile(np.asarray(p['alpha']), W)[None, :]),
    )


def _pack_convT(p, W):
    return dict(
        t=jnp.asarray(_toeplitz_convT(p['w_t'], W)),
        b=jnp.asarray(np.tile(np.asarray(p['bias']), 2 * W + 1)[None, :]),
    )


def _pack_conv1x1(p, W):
    w = np.asarray(p['w'])                  # (Cin, 1)
    Cin = w.shape[0]
    T = np.zeros((W * Cin, W), np.float32)
    for wo in range(W):
        T[wo * Cin:(wo + 1) * Cin, wo:wo + 1] = w
    return dict(
        t=jnp.asarray(T),
        b=jnp.asarray(np.tile(np.asarray(p['bias']), W)[None, :]),
    )


def prepare_pallas_params(params, w0, max_level):
    """Build per-call-site Toeplitz weights / lane-tiled affines (host, one-time)."""
    packed = dict(comp=[], expand=[])
    for lvl in range(max_level):
        W = w0 >> lvl
        p0, p1 = params['comp'][lvl]
        packed['comp'].append((_pack_conv_bn_act(p0, W), _pack_conv_bn_act(p1, W)))
    Wsw = w0 >> max_level
    s0, s1, sct = params['switch']
    packed['switch'] = (_pack_conv_bn_act(s0, Wsw), _pack_conv_bn_act(s1, Wsw),
                        _pack_convT(sct, Wsw))
    for i in range(max_level):
        level = max_level - 1 - i
        We = w0 >> level
        e0, e1, elast = params['expand'][i]
        last = _pack_conv1x1(elast, We) if level == 0 else _pack_convT(elast, We)
        packed['expand'].append((_pack_conv_bn_act(e0, We),
                                 _pack_conv_bn_act(e1, We), last))
    return packed


# ------------------------- pure-JAX reference ops ----------------------------
def conv_bn_act_ref(x, p):
    y = lax.conv_general_dilated(x, p['w_hwio'], (1, 1), 'SAME',
                                 dimension_numbers=('NHWC', 'HWIO', 'NHWC'),
                                 precision=lax.Precision.HIGHEST)
    y = y * p['scale'] + p['bias']
    return jnp.where(y > 0, y, p['alpha'] * y)


def conv_transpose_ref(x, p):
    w = p['w_t']                                     # (Cin, Cout, 3, 3)
    wflip = jnp.transpose(w[:, :, ::-1, ::-1], (2, 3, 0, 1))
    y = lax.conv_general_dilated(x, wflip, (1, 1), [(2, 2), (2, 2)],
                                 lhs_dilation=(2, 2),
                                 dimension_numbers=('NHWC', 'HWIO', 'NHWC'),
                                 precision=lax.Precision.HIGHEST)
    return y + p['bias']


def conv1x1_ref(x, p):
    return jnp.einsum('nhwc,cd->nhwd', x, p['w'],
                      precision=lax.Precision.HIGHEST) + p['bias']


# ----------------------------- parameter init --------------------------------
def _init_conv_bn_act(key, cin, cout, K=3):
    w = jax.random.normal(key, (K, K, cin, cout), jnp.float32) / np.sqrt(cin * K * K)
    eps = 1e-5
    scale = jnp.full((cout,), 1.0 / np.sqrt(1.0 + eps), jnp.float32)  # gamma=1, var=1
    bias = jnp.zeros((cout,), jnp.float32)                            # beta=0, mean=0
    alpha = jnp.full((cout,), 0.25, jnp.float32)                      # PReLU default
    return dict(w_hwio=w, scale=scale, bias=bias, alpha=alpha)


def _init_conv_transpose(key, cin, cout, K=3):
    kw_, kb = jax.random.split(key)
    w = jax.random.normal(kw_, (cin, cout, K, K), jnp.float32) / np.sqrt(cin * K * K)
    b = jax.random.normal(kb, (cout,), jnp.float32) * 0.01
    return dict(w_t=w, bias=b)


def _init_conv1x1(key, cin):
    kw_, kb = jax.random.split(key)
    w = jax.random.normal(kw_, (cin, 1), jnp.float32) / np.sqrt(cin)
    b = jax.random.normal(kb, (1,), jnp.float32) * 0.01
    return dict(w=w, bias=b)


def init_params(key, max_level, chan_multi, K=3):
    params = dict(comp=[], expand=[])
    for level in range(max_level):
        prev = 1 if level == 0 else chan_multi * 2 ** (level - 1)
        curr = chan_multi * 2 ** level
        key, k1, k2 = jax.random.split(key, 3)
        params['comp'].append((_init_conv_bn_act(k1, prev, curr, K),
                               _init_conv_bn_act(k2, curr, curr, K)))
    prev = chan_multi * 2 ** (max_level - 1)
    curr = chan_multi * 2 ** max_level
    key, k1, k2, k3 = jax.random.split(key, 4)
    params['switch'] = (_init_conv_bn_act(k1, prev, curr, K),
                        _init_conv_bn_act(k2, curr, curr, K),
                        _init_conv_transpose(k3, curr, prev, K))
    for level in range(max_level - 1, -1, -1):
        curr = chan_multi * 2 ** level
        key, k1, k2, k3 = jax.random.split(key, 4)
        if level == 0:
            last = _init_conv1x1(k3, curr)
        else:
            last = _init_conv_transpose(k3, curr, chan_multi * 2 ** (level - 1), K)
        params['expand'].append((_init_conv_bn_act(k1, 2 * curr, curr, K),
                                 _init_conv_bn_act(k2, curr, curr, K),
                                 last))
    return params


# ------------------------------ forward passes --------------------------------
def feilian_forward_pallas(packed, x_nchw, max_level):
    x = jnp.transpose(x_nchw, (0, 2, 3, 1))          # NCHW -> NHWC
    xs = [x]
    for lvl in range(max_level):
        h = xs[-1]
        if lvl > 0:
            h = maxpool2x2(h)
        p0, p1 = packed['comp'][lvl]
        xs.append(double_conv_pallas(h, p0, p1))
    s0, s1, sct = packed['switch']
    y = maxpool2x2(xs[-1])
    y = double_conv_pallas(y, s0, s1)
    y = conv_transpose_pallas(y, sct)
    for i in range(max_level):
        x0 = xs[max_level - i]
        y = pad_crop_to(y, x0.shape[1], x0.shape[2])
        y = jnp.concatenate([x0, y], axis=-1)
        e0, e1, elast = packed['expand'][i]
        if i < max_level - 1:
            y = double_conv_pallas(y, e0, e1)
            y = conv_transpose_pallas(y, elast)
        else:
            y = double_conv_1x1_pallas(y, e0, e1, elast)
    return jnp.transpose(y, (0, 3, 1, 2))            # NHWC -> NCHW


def feilian_forward_ref(params, x_nchw, max_level):
    x = jnp.transpose(x_nchw, (0, 2, 3, 1))
    xs = [x]
    for lvl in range(max_level):
        h = xs[-1]
        if lvl > 0:
            h = maxpool2x2(h)
        p0, p1 = params['comp'][lvl]
        h = conv_bn_act_ref(h, p0)
        h = conv_bn_act_ref(h, p1)
        xs.append(h)
    s0, s1, sct = params['switch']
    y = maxpool2x2(xs[-1])
    y = conv_bn_act_ref(y, s0)
    y = conv_bn_act_ref(y, s1)
    y = conv_transpose_ref(y, sct)
    for i in range(max_level):
        x0 = xs[max_level - i]
        y = pad_crop_to(y, x0.shape[1], x0.shape[2])
        y = jnp.concatenate([x0, y], axis=-1)
        e0, e1, elast = params['expand'][i]
        y = conv_bn_act_ref(y, e0)
        y = conv_bn_act_ref(y, e1)
        if i < max_level - 1:
            y = conv_transpose_ref(y, elast)
        else:
            y = conv1x1_ref(y, elast)
    return jnp.transpose(y, (0, 3, 1, 2))


# ---------------------------------- main --------------------------------------
if __name__ == "__main__":
    max_level, chan_multi = 2, 4                      # small U-Net config
    key = jax.random.PRNGKey(0)
    kp, kx = jax.random.split(key)
    params = init_params(kp, max_level, chan_multi)
    x = jax.random.normal(kx, (2, 1, 16, 16), jnp.float32)   # NCHW, 1 input channel

    packed = prepare_pallas_params(params, 16, max_level)

    fwd = jax.jit(functools.partial(feilian_forward_pallas, max_level=max_level))
    y = jax.block_until_ready(fwd(packed, x))

    y_ref = feilian_forward_ref(params, x, max_level)

    assert y.shape == (2, 1, 16, 16), y.shape
    assert np.all(np.isfinite(np.asarray(y)))
    assert np.allclose(np.asarray(y), np.asarray(y_ref), rtol=2e-3, atol=2e-3)
    print("KERNEL_OK")
</pallas_src>

<mosaic_0001>
module attributes {stable_mosaic.version = 11 : i64} {
  func.func @_double_conv_kernel(%arg0: i32, %arg1: memref<1x18x16xf32, #tpu.memory_space<vmem>>, %arg2: memref<3x16x64xf32, #tpu.memory_space<vmem>>, %arg3: memref<1x64xf32, #tpu.memory_space<vmem>>, %arg4: memref<1x64xf32, #tpu.memory_space<vmem>>, %arg5: memref<1x64xf32, #tpu.memory_space<vmem>>, %arg6: memref<3x64x64xf32, #tpu.memory_space<vmem>>, %arg7: memref<1x64xf32, #tpu.memory_space<vmem>>, %arg8: memref<1x64xf32, #tpu.memory_space<vmem>>, %arg9: memref<1x64xf32, #tpu.memory_space<vmem>>, %arg10: memref<1x16x64xf32, #tpu.memory_space<vmem>>, %arg11: memref<18x64xf32, #tpu.memory_space<vmem>>) attributes {dimension_semantics = [#tpu.dimension_semantics<parallel>], iteration_bounds = array<i64: 2>, scalar_prefetch = 0 : i64, scratch_operands = 1 : i64, tpu.core_type = #tpu.core_type<tc>, window_params = [{transform_indices = @transform_0, window_bounds = array<i64: 1, 18, 16>}, {pipeline_mode = #tpu.pipeline_mode<synchronous>, transform_indices = @transform_1, window_bounds = array<i64: 3, 16, 64>}, {pipeline_mode = #tpu.pipeline_mode<synchronous>, transform_indices = @transform_2, window_bounds = array<i64: 1, 64>}, {pipeline_mode = #tpu.pipeline_mode<synchronous>, transform_indices = @transform_3, window_bounds = array<i64: 1, 64>}, {pipeline_mode = #tpu.pipeline_mode<synchronous>, transform_indices = @transform_4, window_bounds = array<i64: 1, 64>}, {pipeline_mode = #tpu.pipeline_mode<synchronous>, transform_indices = @transform_5, window_bounds = array<i64: 3, 64, 64>}, {pipeline_mode = #tpu.pipeline_mode<synchronous>, transform_indices = @transform_6, window_bounds = array<i64: 1, 64>}, {pipeline_mode = #tpu.pipeline_mode<synchronous>, transform_indices = @transform_7, window_bounds = array<i64: 1, 64>}, {pipeline_mode = #tpu.pipeline_mode<synchronous>, transform_indices = @transform_8, window_bounds = array<i64: 1, 64>}, {transform_indices = @transform_9, window_bounds = array<i64: 1, 16, 64>}]} {
    %c0 = arith.constant 0 : index
    %c0_0 = arith.constant 0 : index
    %c0_1 = arith.constant 0 : index
    %0 = vector.load %arg1[%c0, %c0_0, %c0_1] : memref<1x18x16xf32, #tpu.memory_space<vmem>>, vector<1x16x16xf32>
    %1 = vector.shape_cast %0 : vector<1x16x16xf32> to vector<16x16xf32>
    %c0_2 = arith.constant 0 : index
    %c0_3 = arith.constant 0 : index
    %c0_4 = arith.constant 0 : index
    %2 = vector.load %arg2[%c0_2, %c0_3, %c0_4] : memref<3x16x64xf32, #tpu.memory_space<vmem>>, vector<1x16x64xf32>
    %3 = vector.shape_cast %2 : vector<1x16x64xf32> to vector<16x64xf32>
    %cst = arith.constant dense<0.000000e+00> : vector<16x64xf32>
    %4 = tpu.matmul %1, %3, %cst {dimension_numbers = #tpu.dot_dimension_numbers<[1], [0], [0], [1], [0, 0, 1, 1], [], []>} : vector<16x16xf32>, vector<16x64xf32>, vector<16x64xf32> -> vector<16x64xf32>
    %c0_5 = arith.constant 0 : index
    %c1 = arith.constant 1 : index
    %c0_6 = arith.constant 0 : index
    %5 = vector.load %arg1[%c0_5, %c1, %c0_6] : memref<1x18x16xf32, #tpu.memory_space<vmem>>, vector<1x16x16xf32>
    %6 = vector.shape_cast %5 : vector<1x16x16xf32> to vector<16x16xf32>
    %c1_7 = arith.constant 1 : index
    %c0_8 = arith.constant 0 : index
    %c0_9 = arith.constant 0 : index
    %7 = vector.load %arg2[%c1_7, %c0_8, %c0_9] : memref<3x16x64xf32, #tpu.memory_space<vmem>>, vector<1x16x64xf32>
    %8 = vector.shape_cast %7 : vector<1x16x64xf32> to vector<16x64xf32>
    %cst_10 = arith.constant dense<0.000000e+00> : vector<16x64xf32>
    %9 = tpu.matmul %6, %8, %cst_10 {dimension_numbers = #tpu.dot_dimension_numbers<[1], [0], [0], [1], [0, 0, 1, 1], [], []>} : vector<16x16xf32>, vector<16x64xf32>, vector<16x64xf32> -> vector<16x64xf32>
    %10 = arith.addf %4, %9 : vector<16x64xf32>
    %c0_11 = arith.constant 0 : index
    %c2 = arith.constant 2 : index
    %c0_12 = arith.constant 0 : index
    %11 = vector.load %arg1[%c0_11, %c2, %c0_12] : memref<1x18x16xf32, #tpu.memory_space<vmem>>, vector<1x16x16xf32>
    %12 = vector.shape_cast %11 : vector<1x16x16xf32> to vector<16x16xf32>
    %c2_13 = arith.constant 2 : index
    %c0_14 = arith.constant 0 : index
    %c0_15 = arith.constant 0 : index
    %13 = vector.load %arg2[%c2_13, %c0_14, %c0_15] : memref<3x16x64xf32, #tpu.memory_space<vmem>>, vector<1x16x64xf32>
    %14 = vector.shape_cast %13 : vector<1x16x64xf32> to vector<16x64xf32>
    %cst_16 = arith.constant dense<0.000000e+00> : vector<16x64xf32>
    %15 = tpu.matmul %12, %14, %cst_16 {dimension_numbers = #tpu.dot_dimension_numbers<[1], [0], [0], [1], [0, 0, 1, 1], [], []>} : vector<16x16xf32>, vector<16x64xf32>, vector<16x64xf32> -> vector<16x64xf32>
    %16 = arith.addf %10, %15 : vector<16x64xf32>
    %c0_17 = arith.constant 0 : index
    %c0_18 = arith.constant 0 : index
    %17 = vector.load %arg3[%c0_17, %c0_18] : memref<1x64xf32, #tpu.memory_space<vmem>>, vector<1x64xf32>
    %18 = vector.broadcast %17 : vector<1x64xf32> to vector<16x64xf32>
    %19 = arith.mulf %16, %18 : vector<16x64xf32>
    %c0_19 = arith.constant 0 : index
    %c0_20 = arith.constant 0 : index
    %20 = vector.load %arg4[%c0_19, %c0_20] : memref<1x64xf32, #tpu.memory_space<vmem>>, vector<1x64xf32>
    %21 = vector.broadcast %20 : vector<1x64xf32> to vector<16x64xf32>
    %22 = arith.addf %19, %21 : vector<16x64xf32>
    %cst_21 = arith.constant 0.000000e+00 : f32
    %23 = vector.broadcast %cst_21 : f32 to vector<16x64xf32>
    %24 = arith.cmpf ogt, %22, %23 : vector<16x64xf32>
    %c0_22 = arith.constant 0 : index
    %c0_23 = arith.constant 0 : index
    %25 = vector.load %arg5[%c0_22, %c0_23] : memref<1x64xf32, #tpu.memory_space<vmem>>, vector<1x64xf32>
    %26 = vector.broadcast %25 : vector<1x64xf32> to vector<16x64xf32>
    %27 = arith.mulf %26, %22 : vector<16x64xf32>
    %28 = arith.select %24, %22, %27 : vector<16x64xi1>, vector<16x64xf32>
    %cst_24 = arith.constant 0.000000e+00 : f32
    %29 = vector.broadcast %cst_24 : f32 to vector<1x64xf32>
    %c0_25 = arith.constant 0 : index
    %c0_26 = arith.constant 0 : index
    %30 = vector.load %arg11[%c0_25, %c0_26] : memref<18x64xf32, #tpu.memory_space<vmem>>, vector<1x64xf32>
    tpu.vector_store %arg11[%c0_25, %c0_26], %29 {strides = array<i32>} : memref<18x64xf32, #tpu.memory_space<vmem>>, vector<1x64xf32>,
    %c17 = arith.constant 17 : index
    %c0_27 = arith.constant 0 : index
    %31 = vector.load %arg11[%c17, %c0_27] : memref<18x64xf32, #tpu.memory_space<vmem>>, vector<1x64xf32>
    tpu.vector_store %arg11[%c17, %c0_27], %29 {strides = array<i32>} : memref<18x64xf32, #tpu.memory_space<vmem>>, vector<1x64xf32>,
    %c1_28 = arith.constant 1 : index
    %c0_29 = arith.constant 0 : index
    %32 = vector.load %arg11[%c1_28, %c0_29] : memref<18x64xf32, #tpu.memory_space<vmem>>, vector<16x64xf32>
    tpu.vector_store %arg11[%c1_28, %c0_29], %28 {strides = array<i32>} : memref<18x64xf32, #tpu.memory_space<vmem>>, vector<16x64xf32>,
    %c0_30 = arith.constant 0 : index
    %c0_31 = arith.constant 0 : index
    %33 = vector.load %arg11[%c0_30, %c0_31] : memref<18x64xf32, #tpu.memory_space<vmem>>, vector<16x64xf32>
    %c0_32 = arith.constant 0 : index
    %c0_33 = arith.constant 0 : index
    %c0_34 = arith.constant 0 : index
    %34 = vector.load %arg6[%c0_32, %c0_33, %c0_34] : memref<3x64x64xf32, #tpu.memory_space<vmem>>, vector<1x64x64xf32>
    %35 = vector.shape_cast %34 : vector<1x64x64xf32> to vector<64x64xf32>
    %cst_35 = arith.constant dense<0.000000e+00> : vector<16x64xf32>
    %36 = tpu.matmul %33, %35, %cst_35 {dimension_numbers = #tpu.dot_dimension_numbers<[1], [0], [0], [1], [0, 0, 1, 1], [], []>} : vector<16x64xf32>, vector<64x64xf32>, vector<16x64xf32> -> vector<16x64xf32>
    %c1_36 = arith.constant 1 : index
    %c0_37 = arith.constant 0 : index
    %c0_38 = arith.constant 0 : index
    %37 = vector.load %arg6[%c1_36, %c0_37, %c0_38] : memref<3x64x64xf32, #tpu.memory_space<vmem>>, vector<1x64x64xf32>
    %38 = vector.shape_cast %37 : vector<1x64x64xf32> to vector<64x64xf32>
    %cst_39 = arith.constant dense<0.000000e+00> : vector<16x64xf32>
    %39 = tpu.matmul %28, %38, %cst_39 {dimension_numbers = #tpu.dot_dimension_numbers<[1], [0], [0], [1], [0, 0, 1, 1], [], []>} : vector<16x64xf32>, vector<64x64xf32>, vector<16x64xf32> -> vector<16x64xf32>
    %40 = arith.addf %36, %39 : vector<16x64xf32>
    %c2_40 = arith.constant 2 : index
    %c0_41 = arith.constant 0 : index
    %41 = vector.load %arg11[%c2_40, %c0_41] : memref<18x64xf32, #tpu.memory_space<vmem>>, vector<16x64xf32>
    %c2_42 = arith.constant 2 : index
    %c0_43 = arith.constant 0 : index
    %c0_44 = arith.constant 0 : index
    %42 = vector.load %arg6[%c2_42, %c0_43, %c0_44] : memref<3x64x64xf32, #tpu.memory_space<vmem>>, vector<1x64x64xf32>
    %43 = vector.shape_cast %42 : vector<1x64x64xf32> to vector<64x64xf32>
    %cst_45 = arith.constant dense<0.000000e+00> : vector<16x64xf32>
    %44 = tpu.matmul %41, %43, %cst_45 {dimension_numbers = #tpu.dot_dimension_numbers<[1], [0], [0], [1], [0, 0, 1, 1], [], []>} : vector<16x64xf32>, vector<64x64xf32>, vector<16x64xf32> -> vector<16x64xf32>
    %45 = arith.addf %40, %44 : vector<16x64xf32>
    %c0_46 = arith.constant 0 : index
    %c0_47 = arith.constant 0 : index
    %46 = vector.load %arg7[%c0_46, %c0_47] : memref<1x64xf32, #tpu.memory_space<vmem>>, vector<1x64xf32>
    %47 = vector.broadcast %46 : vector<1x64xf32> to vector<16x64xf32>
    %48 = arith.mulf %45, %47 : vector<16x64xf32>
    %c0_48 = arith.constant 0 : index
    %c0_49 = arith.constant 0 : index
    %49 = vector.load %arg8[%c0_48, %c0_49] : memref<1x64xf32, #tpu.memory_space<vmem>>, vector<1x64xf32>
    %50 = vector.broadcast %49 : vector<1x64xf32> to vector<16x64xf32>
    %51 = arith.addf %48, %50 : vector<16x64xf32>
    %cst_50 = arith.constant 0.000000e+00 : f32
    %52 = vector.broadcast %cst_50 : f32 to vector<16x64xf32>
    %53 = arith.cmpf ogt, %51, %52 : vector<16x64xf32>
    %c0_51 = arith.constant 0 : index
    %c0_52 = arith.constant 0 : index
    %54 = vector.load %arg9[%c0_51, %c0_52] : memref<1x64xf32, #tpu.memory_space<vmem>>, vector<1x64xf32>
    %55 = vector.broadcast %54 : vector<1x64xf32> to vector<16x64xf32>
    %56 = arith.mulf %55, %51 : vector<16x64xf32>
    %57 = arith.select %53, %51, %56 : vector<16x64xi1>, vector<16x64xf32>
    %c0_53 = arith.constant 0 : index
    %c0_54 = arith.constant 0 : index
    %c0_55 = arith.constant 0 : index
    %58 = vector.load %arg10[%c0_53, %c0_54, %c0_55] : memref<1x16x64xf32, #tpu.memory_space<vmem>>, vector<1x16x64xf32>
    %59 = vector.shape_cast %58 : vector<1x16x64xf32> to vector<16x64xf32>
    %60 = vector.shape_cast %57 : vector<16x64xf32> to vector<1x16x64xf32>
    tpu.vector_store %arg10[%c0_53, %c0_54, %c0_55], %60 {strides = array<i32>} : memref<1x16x64xf32, #tpu.memory_space<vmem>>, vector<1x16x64xf32>,
    return
  }
  func.func @transform_0(%arg0: i32) -> (i32, i32, i32) {
    %c0_i32 = arith.constant 0 : i32
    %c0_i32_0 = arith.constant 0 : i32
    %c0_i32_1 = arith.constant 0 : i32
    return %arg0, %c0_i32, %c0_i32_0 : i32, i32, i32
  }
  func.func @transform_1(%arg0: i32) -> (i32, i32, i32) {
    %c0_i32 = arith.constant 0 : i32
    %c0_i32_0 = arith.constant 0 : i32
    %c0_i32_1 = arith.constant 0 : i32
    %c0_i32_2 = arith.constant 0 : i32
    return %c0_i32, %c0_i32_0, %c0_i32_1 : i32, i32, i32
  }
  func.func @transform_2(%arg0: i32) -> (i32, i32) {
    %c0_i32 = arith.constant 0 : i32
    %c0_i32_0 = arith.constant 0 : i32
    %c0_i32_1 = arith.constant 0 : i32
    return %c0_i32, %c0_i32_0 : i32, i32
  }
  func.func @transform_3(%arg0: i32) -> (i32, i32) {
    %c0_i32 = arith.constant 0 : i32
    %c0_i32_0 = arith.constant 0 : i32
    %c0_i32_1 = arith.constant 0 : i32
    return %c0_i32, %c0_i32_0 : i32, i32
  }
  func.func @transform_4(%arg0: i32) -> (i32, i32) {
    %c0_i32 = arith.constant 0 : i32
    %c0_i32_0 = arith.constant 0 : i32
    %c0_i32_1 = arith.constant 0 : i32
    return %c0_i32, %c0_i32_0 : i32, i32
  }
  func.func @transform_5(%arg0: i32) -> (i32, i32, i32) {
    %c0_i32 = arith.constant 0 : i32
    %c0_i32_0 = arith.constant 0 : i32
    %c0_i32_1 = arith.constant 0 : i32
    %c0_i32_2 = arith.constant 0 : i32
    return %c0_i32, %c0_i32_0, %c0_i32_1 : i32, i32, i32
  }
  func.func @transform_6(%arg0: i32) -> (i32, i32) {
    %c0_i32 = arith.constant 0 : i32
    %c0_i32_0 = arith.constant 0 : i32
    %c0_i32_1 = arith.constant 0 : i32
    return %c0_i32, %c0_i32_0 : i32, i32
  }
  func.func @transform_7(%arg0: i32) -> (i32, i32) {
    %c0_i32 = arith.constant 0 : i32
    %c0_i32_0 = arith.constant 0 : i32
    %c0_i32_1 = arith.constant 0 : i32
    return %c0_i32, %c0_i32_0 : i32, i32
  }
  func.func @transform_8(%arg0: i32) -> (i32, i32) {
    %c0_i32 = arith.constant 0 : i32
    %c0_i32_0 = arith.constant 0 : i32
    %c0_i32_1 = arith.constant 0 : i32
    return %c0_i32, %c0_i32_0 : i32, i32
  }
  func.func @transform_9(%arg0: i32) -> (i32, i32, i32) {
    %c0_i32 = arith.constant 0 : i32
    %c0_i32_0 = arith.constant 0 : i32
    %c0_i32_1 = arith.constant 0 : i32
    return %arg0, %c0_i32, %c0_i32_0 : i32, i32, i32
  }
}

module attributes {stable_mosaic.version = 11 : i64} {
  func.func @_double_conv_kernel(%arg0: i32, %arg1: memref<1x10x32xf32, #tpu.memory_space<vmem>>, %arg2: memref<3x32x64xf32, #tpu.memory_space<vmem>>, %arg3: memref<1x64xf32, #tpu.memory_space<vmem>>, %arg4: memref<1x64xf32, #tpu.memory_space<vmem>>, %arg5: memref<1x64xf32, #tpu.memory_space<vmem>>, %arg6: memref<3x64x64xf32, #tpu.memory_space<vmem>>, %arg7: memref<1x64xf32, #tpu.memory_space<vmem>>, %arg8: memref<1x64xf32, #tpu.memory_space<vmem>>, %arg9: memref<1x64xf32, #tpu.memory_space<vmem>>, %arg10: memref<1x8x64xf32, #tpu.memory_space<vmem>>, %arg11: memref<10x64xf32, #tpu.memory_space<vmem>>) attributes {dimension_semantics = [#tpu.dimension_semantics<parallel>], iteration_bounds = array<i64: 2>, scalar_prefetch = 0 : i64, scratch_operands = 1 : i64, tpu.core_type = #tpu.core_type<tc>, window_params = [{transform_indices = @transform_0, window_bounds = array<i64: 1, 10, 32>}, {pipeline_mode = #tpu.pipeline_mode<synchronous>, transform_indices = @transform_1, window_bounds = array<i64: 3, 32, 64>}, {pipeline_mode = #tpu.pipeline_mode<synchronous>, transform_indices = @transform_2, window_bounds = array<i64: 1, 64>}, {pipeline_mode = #tpu.pipeline_mode<synchronous>, transform_indices = @transform_3, window_bounds = array<i64: 1, 64>}, {pipeline_mode = #tpu.pipeline_mode<synchronous>, transform_indices = @transform_4, window_bounds = array<i64: 1, 64>}, {pipeline_mode = #tpu.pipeline_mode<synchronous>, transform_indices = @transform_5, window_bounds = array<i64: 3, 64, 64>}, {pipeline_mode = #tpu.pipeline_mode<synchronous>, transform_indices = @transform_6, window_bounds = array<i64: 1, 64>}, {pipeline_mode = #tpu.pipeline_mode<synchronous>, transform_indices = @transform_7, window_bounds = array<i64: 1, 64>}, {pipeline_mode = #tpu.pipeline_mode<synchronous>, transform_indices = @transform_8, window_bounds = array<i64: 1, 64>}, {transform_indices = @transform_9, window_bounds = array<i64: 1, 8, 64>}]} {
    %c0 = arith.constant 0 : index
    %c0_0 = arith.constant 0 : index
    %c0_1 = arith.constant 0 : index
    %0 = vector.load %arg1[%c0, %c0_0, %c0_1] : memref<1x10x32xf32, #tpu.memory_space<vmem>>, vector<1x8x32xf32>
    %1 = vector.shape_cast %0 : vector<1x8x32xf32> to vector<8x32xf32>
    %c0_2 = arith.constant 0 : index
    %c0_3 = arith.constant 0 : index
    %c0_4 = arith.constant 0 : index
    %2 = vector.load %arg2[%c0_2, %c0_3, %c0_4] : memref<3x32x64xf32, #tpu.memory_space<vmem>>, vector<1x32x64xf32>
    %3 = vector.shape_cast %2 : vector<1x32x64xf32> to vector<32x64xf32>
    %cst = arith.constant dense<0.000000e+00> : vector<8x64xf32>
    %4 = tpu.matmul %1, %3, %cst {dimension_numbers = #tpu.dot_dimension_numbers<[1], [0], [0], [1], [0, 0, 1, 1], [], []>} : vector<8x32xf32>, vector<32x64xf32>, vector<8x64xf32> -> vector<8x64xf32>
    %c0_5 = arith.constant 0 : index
    %c1 = arith.constant 1 : index
    %c0_6 = arith.constant 0 : index
    %5 = vector.load %arg1[%c0_5, %c1, %c0_6] : memref<1x10x32xf32, #tpu.memory_space<vmem>>, vector<1x8x32xf32>
    %6 = vector.shape_cast %5 : vector<1x8x32xf32> to vector<8x32xf32>
    %c1_7 = arith.constant 1 : index
    %c0_8 = arith.constant 0 : index
    %c0_9 = arith.constant 0 : index
    %7 = vector.load %arg2[%c1_7, %c0_8, %c0_9] : memref<3x32x64xf32, #tpu.memory_space<vmem>>, vector<1x32x64xf32>
    %8 = vector.shape_cast %7 : vector<1x32x64xf32> to vector<32x64xf32>
    %cst_10 = arith.constant dense<0.000000e+00> : vector<8x64xf32>
    %9 = tpu.matmul %6, %8, %cst_10 {dimension_numbers = #tpu.dot_dimension_numbers<[1], [0], [0], [1], [0, 0, 1, 1], [], []>} : vector<8x32xf32>, vector<32x64xf32>, vector<8x64xf32> -> vector<8x64xf32>
    %10 = arith.addf %4, %9 : vector<8x64xf32>
    %c0_11 = arith.constant 0 : index
    %c2 = arith.constant 2 : index
    %c0_12 = arith.constant 0 : index
    %11 = vector.load %arg1[%c0_11, %c2, %c0_12] : memref<1x10x32xf32, #tpu.memory_space<vmem>>, vector<1x8x32xf32>
    %12 = vector.shape_cast %11 : vector<1x8x32xf32> to vector<8x32xf32>
    %c2_13 = arith.constant 2 : index
    %c0_14 = arith.constant 0 : index
    %c0_15 = arith.constant 0 : index
    %13 = vector.load %arg2[%c2_13, %c0_14, %c0_15] : memref<3x32x64xf32, #tpu.memory_space<vmem>>, vector<1x32x64xf32>
    %14 = vector.shape_cast %13 : vector<1x32x64xf32> to vector<32x64xf32>
    %cst_16 = arith.constant dense<0.000000e+00> : vector<8x64xf32>
    %15 = tpu.matmul %12, %14, %cst_16 {dimension_numbers = #tpu.dot_dimension_numbers<[1], [0], [0], [1], [0, 0, 1, 1], [], []>} : vector<8x32xf32>, vector<32x64xf32>, vector<8x64xf32> -> vector<8x64xf32>
    %16 = arith.addf %10, %15 : vector<8x64xf32>
    %c0_17 = arith.constant 0 : index
    %c0_18 = arith.constant 0 : index
    %17 = vector.load %arg3[%c0_17, %c0_18] : memref<1x64xf32, #tpu.memory_space<vmem>>, vector<1x64xf32>
    %18 = vector.broadcast %17 : vector<1x64xf32> to vector<8x64xf32>
    %19 = arith.mulf %16, %18 : vector<8x64xf32>
    %c0_19 = arith.constant 0 : index
    %c0_20 = arith.constant 0 : index
    %20 = vector.load %arg4[%c0_19, %c0_20] : memref<1x64xf32, #tpu.memory_space<vmem>>, vector<1x64xf32>
    %21 = vector.broadcast %20 : vector<1x64xf32> to vector<8x64xf32>
    %22 = arith.addf %19, %21 : vector<8x64xf32>
    %cst_21 = arith.constant 0.000000e+00 : f32
    %23 = vector.broadcast %cst_21 : f32 to vector<8x64xf32>
    %24 = arith.cmpf ogt, %22, %23 : vector<8x64xf32>
    %c0_22 = arith.constant 0 : index
    %c0_23 = arith.constant 0 : index
    %25 = vector.load %arg5[%c0_22, %c0_23] : memref<1x64xf32, #tpu.memory_space<vmem>>, vector<1x64xf32>
    %26 = vector.broadcast %25 : vector<1x64xf32> to vector<8x64xf32>
    %27 = arith.mulf %26, %22 : vector<8x64xf32>
    %28 = arith.select %24, %22, %27 : vector<8x64xi1>, vector<8x64xf32>
    %cst_24 = arith.constant 0.000000e+00 : f32
    %29 = vector.broadcast %cst_24 : f32 to vector<1x64xf32>
    %c0_25 = arith.constant 0 : index
    %c0_26 = arith.constant 0 : index
    %30 = vector.load %arg11[%c0_25, %c0_26] : memref<10x64xf32, #tpu.memory_space<vmem>>, vector<1x64xf32>
    tpu.vector_store %arg11[%c0_25, %c0_26], %29 {strides = array<i32>} : memref<10x64xf32, #tpu.memory_space<vmem>>, vector<1x64xf32>,
    %c9 = arith.constant 9 : index
    %c0_27 = arith.constant 0 : index
    %31 = vector.load %arg11[%c9, %c0_27] : memref<10x64xf32, #tpu.memory_space<vmem>>, vector<1x64xf32>
    tpu.vector_store %arg11[%c9, %c0_27], %29 {strides = array<i32>} : memref<10x64xf32, #tpu.memory_space<vmem>>, vector<1x64xf32>,
    %c1_28 = arith.constant 1 : index
    %c0_29 = arith.constant 0 : index
    %32 = vector.load %arg11[%c1_28, %c0_29] : memref<10x64xf32, #tpu.memory_space<vmem>>, vector<8x64xf32>
    tpu.vector_store %arg11[%c1_28, %c0_29], %28 {strides = array<i32>} : memref<10x64xf32, #tpu.memory_space<vmem>>, vector<8x64xf32>,
    %c0_30 = arith.constant 0 : index
    %c0_31 = arith.constant 0 : index
    %33 = vector.load %arg11[%c0_30, %c0_31] : memref<10x64xf32, #tpu.memory_space<vmem>>, vector<8x64xf32>
    %c0_32 = arith.constant 0 : index
    %c0_33 = arith.constant 0 : index
    %c0_34 = arith.constant 0 : index
    %34 = vector.load %arg6[%c0_32, %c0_33, %c0_34] : memref<3x64x64xf32, #tpu.memory_space<vmem>>, vector<1x64x64xf32>
    %35 = vector.shape_cast %34 : vector<1x64x64xf32> to vector<64x64xf32>
    %cst_35 = arith.constant dense<0.000000e+00> : vector<8x64xf32>
    %36 = tpu.matmul %33, %35, %cst_35 {dimension_numbers = #tpu.dot_dimension_numbers<[1], [0], [0], [1], [0, 0, 1, 1], [], []>} : vector<8x64xf32>, vector<64x64xf32>, vector<8x64xf32> -> vector<8x64xf32>
    %c1_36 = arith.constant 1 : index
    %c0_37 = arith.constant 0 : index
    %c0_38 = arith.constant 0 : index
    %37 = vector.load %arg6[%c1_36, %c0_37, %c0_38] : memref<3x64x64xf32, #tpu.memory_space<vmem>>, vector<1x64x64xf32>
    %38 = vector.shape_cast %37 : vector<1x64x64xf32> to vector<64x64xf32>
    %cst_39 = arith.constant dense<0.000000e+00> : vector<8x64xf32>
    %39 = tpu.matmul %28, %38, %cst_39 {dimension_numbers = #tpu.dot_dimension_numbers<[1], [0], [0], [1], [0, 0, 1, 1], [], []>} : vector<8x64xf32>, vector<64x64xf32>, vector<8x64xf32> -> vector<8x64xf32>
    %40 = arith.addf %36, %39 : vector<8x64xf32>
    %c2_40 = arith.constant 2 : index
    %c0_41 = arith.constant 0 : index
    %41 = vector.load %arg11[%c2_40, %c0_41] : memref<10x64xf32, #tpu.memory_space<vmem>>, vector<8x64xf32>
    %c2_42 = arith.constant 2 : index
    %c0_43 = arith.constant 0 : index
    %c0_44 = arith.constant 0 : index
    %42 = vector.load %arg6[%c2_42, %c0_43, %c0_44] : memref<3x64x64xf32, #tpu.memory_space<vmem>>, vector<1x64x64xf32>
    %43 = vector.shape_cast %42 : vector<1x64x64xf32> to vector<64x64xf32>
    %cst_45 = arith.constant dense<0.000000e+00> : vector<8x64xf32>
    %44 = tpu.matmul %41, %43, %cst_45 {dimension_numbers = #tpu.dot_dimension_numbers<[1], [0], [0], [1], [0, 0, 1, 1], [], []>} : vector<8x64xf32>, vector<64x64xf32>, vector<8x64xf32> -> vector<8x64xf32>
    %45 = arith.addf %40, %44 : vector<8x64xf32>
    %c0_46 = arith.constant 0 : index
    %c0_47 = arith.constant 0 : index
    %46 = vector.load %arg7[%c0_46, %c0_47] : memref<1x64xf32, #tpu.memory_space<vmem>>, vector<1x64xf32>
    %47 = vector.broadcast %46 : vector<1x64xf32> to vector<8x64xf32>
    %48 = arith.mulf %45, %47 : vector<8x64xf32>
    %c0_48 = arith.constant 0 : index
    %c0_49 = arith.constant 0 : index
    %49 = vector.load %arg8[%c0_48, %c0_49] : memref<1x64xf32, #tpu.memory_space<vmem>>, vector<1x64xf32>
    %50 = vector.broadcast %49 : vector<1x64xf32> to vector<8x64xf32>
    %51 = arith.addf %48, %50 : vector<8x64xf32>
    %cst_50 = arith.constant 0.000000e+00 : f32
    %52 = vector.broadcast %cst_50 : f32 to vector<8x64xf32>
    %53 = arith.cmpf ogt, %51, %52 : vector<8x64xf32>
    %c0_51 = arith.constant 0 : index
    %c0_52 = arith.constant 0 : index
    %54 = vector.load %arg9[%c0_51, %c0_52] : memref<1x64xf32, #tpu.memory_space<vmem>>, vector<1x64xf32>
    %55 = vector.broadcast %54 : vector<1x64xf32> to vector<8x64xf32>
    %56 = arith.mulf %55, %51 : vector<8x64xf32>
    %57 = arith.select %53, %51, %56 : vector<8x64xi1>, vector<8x64xf32>
    %c0_53 = arith.constant 0 : index
    %c0_54 = arith.constant 0 : index
    %c0_55 = arith.constant 0 : index
    %58 = vector.load %arg10[%c0_53, %c0_54, %c0_55] : memref<1x8x64xf32, #tpu.memory_space<vmem>>, vector<1x8x64xf32>
    %59 = vector.shape_cast %58 : vector<1x8x64xf32> to vector<8x64xf32>
    %60 = vector.shape_cast %57 : vector<8x64xf32> to vector<1x8x64xf32>
    tpu.vector_store %arg10[%c0_53, %c0_54, %c0_55], %60 {strides = array<i32>} : memref<1x8x64xf32, #tpu.memory_space<vmem>>, vector<1x8x64xf32>,
    return
  }
  func.func @transform_0(%arg0: i32) -> (i32, i32, i32) {
    %c0_i32 = arith.constant 0 : i32
    %c0_i32_0 = arith.constant 0 : i32
    %c0_i32_1 = arith.constant 0 : i32
    return %arg0, %c0_i32, %c0_i32_0 : i32, i32, i32
  }
  func.func @transform_1(%arg0: i32) -> (i32, i32, i32) {
    %c0_i32 = arith.constant 0 : i32
    %c0_i32_0 = arith.constant 0 : i32
    %c0_i32_1 = arith.constant 0 : i32
    %c0_i32_2 = arith.constant 0 : i32
    return %c0_i32, %c0_i32_0, %c0_i32_1 : i32, i32, i32
  }
  func.func @transform_2(%arg0: i32) -> (i32, i32) {
    %c0_i32 = arith.constant 0 : i32
    %c0_i32_0 = arith.constant 0 : i32
    %c0_i32_1 = arith.constant 0 : i32
    return %c0_i32, %c0_i32_0 : i32, i32
  }
  func.func @transform_3(%arg0: i32) -> (i32, i32) {
    %c0_i32 = arith.constant 0 : i32
    %c0_i32_0 = arith.constant 0 : i32
    %c0_i32_1 = arith.constant 0 : i32
    return %c0_i32, %c0_i32_0 : i32, i32
  }
  func.func @transform_4(%arg0: i32) -> (i32, i32) {
    %c0_i32 = arith.constant 0 : i32
    %c0_i32_0 = arith.constant 0 : i32
    %c0_i32_1 = arith.constant 0 : i32
    return %c0_i32, %c0_i32_0 : i32, i32
  }
  func.func @transform_5(%arg0: i32) -> (i32, i32, i32) {
    %c0_i32 = arith.constant 0 : i32
    %c0_i32_0 = arith.constant 0 : i32
    %c0_i32_1 = arith.constant 0 : i32
    %c0_i32_2 = arith.constant 0 : i32
    return %c0_i32, %c0_i32_0, %c0_i32_1 : i32, i32, i32
  }
  func.func @transform_6(%arg0: i32) -> (i32, i32) {
    %c0_i32 = arith.constant 0 : i32
    %c0_i32_0 = arith.constant 0 : i32
    %c0_i32_1 = arith.constant 0 : i32
    return %c0_i32, %c0_i32_0 : i32, i32
  }
  func.func @transform_7(%arg0: i32) -> (i32, i32) {
    %c0_i32 = arith.constant 0 : i32
    %c0_i32_0 = arith.constant 0 : i32
    %c0_i32_1 = arith.constant 0 : i32
    return %c0_i32, %c0_i32_0 : i32, i32
  }
  func.func @transform_8(%arg0: i32) -> (i32, i32) {
    %c0_i32 = arith.constant 0 : i32
    %c0_i32_0 = arith.constant 0 : i32
    %c0_i32_1 = arith.constant 0 : i32
    return %c0_i32, %c0_i32_0 : i32, i32
  }
  func.func @transform_9(%arg0: i32) -> (i32, i32, i32) {
    %c0_i32 = arith.constant 0 : i32
    %c0_i32_0 = arith.constant 0 : i32
    %c0_i32_1 = arith.constant 0 : i32
    return %arg0, %c0_i32, %c0_i32_0 : i32, i32, i32
  }
}

module attributes {stable_mosaic.version = 11 : i64} {
  func.func @_double_conv_kernel(%arg0: i32, %arg1: memref<1x6x32xf32, #tpu.memory_space<vmem>>, %arg2: memref<3x32x64xf32, #tpu.memory_space<vmem>>, %arg3: memref<1x64xf32, #tpu.memory_space<vmem>>, %arg4: memref<1x64xf32, #tpu.memory_space<vmem>>, %arg5: memref<1x64xf32, #tpu.memory_space<vmem>>, %arg6: memref<3x64x64xf32, #tpu.memory_space<vmem>>, %arg7: memref<1x64xf32, #tpu.memory_space<vmem>>, %arg8: memref<1x64xf32, #tpu.memory_space<vmem>>, %arg9: memref<1x64xf32, #tpu.memory_space<vmem>>, %arg10: memref<1x4x64xf32, #tpu.memory_space<vmem>>, %arg11: memref<6x64xf32, #tpu.memory_space<vmem>>) attributes {dimension_semantics = [#tpu.dimension_semantics<parallel>], iteration_bounds = array<i64: 2>, scalar_prefetch = 0 : i64, scratch_operands = 1 : i64, tpu.core_type = #tpu.core_type<tc>, window_params = [{transform_indices = @transform_0, window_bounds = array<i64: 1, 6, 32>}, {pipeline_mode = #tpu.pipeline_mode<synchronous>, transform_indices = @transform_1, window_bounds = array<i64: 3, 32, 64>}, {pipeline_mode = #tpu.pipeline_mode<synchronous>, transform_indices = @transform_2, window_bounds = array<i64: 1, 64>}, {pipeline_mode = #tpu.pipeline_mode<synchronous>, transform_indices = @transform_3, window_bounds = array<i64: 1, 64>}, {pipeline_mode = #tpu.pipeline_mode<synchronous>, transform_indices = @transform_4, window_bounds = array<i64: 1, 64>}, {pipeline_mode = #tpu.pipeline_mode<synchronous>, transform_indices = @transform_5, window_bounds = array<i64: 3, 64, 64>}, {pipeline_mode = #tpu.pipeline_mode<synchronous>, transform_indices = @transform_6, window_bounds = array<i64: 1, 64>}, {pipeline_mode = #tpu.pipeline_mode<synchronous>, transform_indices = @transform_7, window_bounds = array<i64: 1, 64>}, {pipeline_mode = #tpu.pipeline_mode<synchronous>, transform_indices = @transform_8, window_bounds = array<i64: 1, 64>}, {transform_indices = @transform_9, window_bounds = array<i64: 1, 4, 64>}]} {
    %c0 = arith.constant 0 : index
    %c0_0 = arith.constant 0 : index
    %c0_1 = arith.constant 0 : index
    %0 = vector.load %arg1[%c0, %c0_0, %c0_1] : memref<1x6x32xf32, #tpu.memory_space<vmem>>, vector<1x4x32xf32>
    %1 = vector.shape_cast %0 : vector<1x4x32xf32> to vector<4x32xf32>
    %c0_2 = arith.constant 0 : index
    %c0_3 = arith.constant 0 : index
    %c0_4 = arith.constant 0 : index
    %2 = vector.load %arg2[%c0_2, %c0_3, %c0_4] : memref<3x32x64xf32, #tpu.memory_space<vmem>>, vector<1x32x64xf32>
    %3 = vector.shape_cast %2 : vector<1x32x64xf32> to vector<32x64xf32>
    %cst = arith.constant dense<0.000000e+00> : vector<4x64xf32>
    %4 = tpu.matmul %1, %3, %cst {dimension_numbers = #tpu.dot_dimension_numbers<[1], [0], [0], [1], [0, 0, 1, 1], [], []>} : vector<4x32xf32>, vector<32x64xf32>, vector<4x64xf32> -> vector<4x64xf32>
    %c0_5 = arith.constant 0 : index
    %c1 = arith.constant 1 : index
    %c0_6 = arith.constant 0 : index
    %5 = vector.load %arg1[%c0_5, %c1, %c0_6] : memref<1x6x32xf32, #tpu.memory_space<vmem>>, vector<1x4x32xf32>
    %6 = vector.shape_cast %5 : vector<1x4x32xf32> to vector<4x32xf32>
    %c1_7 = arith.constant 1 : index
    %c0_8 = arith.constant 0 : index
    %c0_9 = arith.constant 0 : index
    %7 = vector.load %arg2[%c1_7, %c0_8, %c0_9] : memref<3x32x64xf32, #tpu.memory_space<vmem>>, vector<1x32x64xf32>
    %8 = vector.shape_cast %7 : vector<1x32x64xf32> to vector<32x64xf32>
    %cst_10 = arith.constant dense<0.000000e+00> : vector<4x64xf32>
    %9 = tpu.matmul %6, %8, %cst_10 {dimension_numbers = #tpu.dot_dimension_numbers<[1], [0], [0], [1], [0, 0, 1, 1], [], []>} : vector<4x32xf32>, vector<32x64xf32>, vector<4x64xf32> -> vector<4x64xf32>
    %10 = arith.addf %4, %9 : vector<4x64xf32>
    %c0_11 = arith.constant 0 : index
    %c2 = arith.constant 2 : index
    %c0_12 = arith.constant 0 : index
    %11 = vector.load %arg1[%c0_11, %c2, %c0_12] : memref<1x6x32xf32, #tpu.memory_space<vmem>>, vector<1x4x32xf32>
    %12 = vector.shape_cast %11 : vector<1x4x32xf32> to vector<4x32xf32>
    %c2_13 = arith.constant 2 : index
    %c0_14 = arith.constant 0 : index
    %c0_15 = arith.constant 0 : index
    %13 = vector.load %arg2[%c2_13, %c0_14, %c0_15] : memref<3x32x64xf32, #tpu.memory_space<vmem>>, vector<1x32x64xf32>
    %14 = vector.shape_cast %13 : vector<1x32x64xf32> to vector<32x64xf32>
    %cst_16 = arith.constant dense<0.000000e+00> : vector<4x64xf32>
    %15 = tpu.matmul %12, %14, %cst_16 {dimension_numbers = #tpu.dot_dimension_numbers<[1], [0], [0], [1], [0, 0, 1, 1], [], []>} : vector<4x32xf32>, vector<32x64xf32>, vector<4x64xf32> -> vector<4x64xf32>
    %16 = arith.addf %10, %15 : vector<4x64xf32>
    %c0_17 = arith.constant 0 : index
    %c0_18 = arith.constant 0 : index
    %17 = vector.load %arg3[%c0_17, %c0_18] : memref<1x64xf32, #tpu.memory_space<vmem>>, vector<1x64xf32>
    %18 = vector.broadcast %17 : vector<1x64xf32> to vector<4x64xf32>
    %19 = arith.mulf %16, %18 : vector<4x64xf32>
    %c0_19 = arith.constant 0 : index
    %c0_20 = arith.constant 0 : index
    %20 = vector.load %arg4[%c0_19, %c0_20] : memref<1x64xf32, #tpu.memory_space<vmem>>, vector<1x64xf32>
    %21 = vector.broadcast %20 : vector<1x64xf32> to vector<4x64xf32>
    %22 = arith.addf %19, %21 : vector<4x64xf32>
    %cst_21 = arith.constant 0.000000e+00 : f32
    %23 = vector.broadcast %cst_21 : f32 to vector<4x64xf32>
    %24 = arith.cmpf ogt, %22, %23 : vector<4x64xf32>
    %c0_22 = arith.constant 0 : index
    %c0_23 = arith.constant 0 : index
    %25 = vector.load %arg5[%c0_22, %c0_23] : memref<1x64xf32, #tpu.memory_space<vmem>>, vector<1x64xf32>
    %26 = vector.broadcast %25 : vector<1x64xf32> to vector<4x64xf32>
    %27 = arith.mulf %26, %22 : vector<4x64xf32>
    %28 = arith.select %24, %22, %27 : vector<4x64xi1>, vector<4x64xf32>
    %cst_24 = arith.constant 0.000000e+00 : f32
    %29 = vector.broadcast %cst_24 : f32 to vector<1x64xf32>
    %c0_25 = arith.constant 0 : index
    %c0_26 = arith.constant 0 : index
    %30 = vector.load %arg11[%c0_25, %c0_26] : memref<6x64xf32, #tpu.memory_space<vmem>>, vector<1x64xf32>
    tpu.vector_store %arg11[%c0_25, %c0_26], %29 {strides = array<i32>} : memref<6x64xf32, #tpu.memory_space<vmem>>, vector<1x64xf32>,
    %c5 = arith.constant 5 : index
    %c0_27 = arith.constant 0 : index
    %31 = vector.load %arg11[%c5, %c0_27] : memref<6x64xf32, #tpu.memory_space<vmem>>, vector<1x64xf32>
    tpu.vector_store %arg11[%c5, %c0_27], %29 {strides = array<i32>} : memref<6x64xf32, #tpu.memory_space<vmem>>, vector<1x64xf32>,
    %c1_28 = arith.constant 1 : index
    %c0_29 = arith.constant 0 : index
    %32 = vector.load %arg11[%c1_28, %c0_29] : memref<6x64xf32, #tpu.memory_space<vmem>>, vector<4x64xf32>
    tpu.vector_store %arg11[%c1_28, %c0_29], %28 {strides = array<i32>} : memref<6x64xf32, #tpu.memory_space<vmem>>, vector<4x64xf32>,
    %c0_30 = arith.constant 0 : index
    %c0_31 = arith.constant 0 : index
    %33 = vector.load %arg11[%c0_30, %c0_31] : memref<6x64xf32, #tpu.memory_space<vmem>>, vector<4x64xf32>
    %c0_32 = arith.constant 0 : index
    %c0_33 = arith.constant 0 : index
    %c0_34 = arith.constant 0 : index
    %34 = vector.load %arg6[%c0_32, %c0_33, %c0_34] : memref<3x64x64xf32, #tpu.memory_space<vmem>>, vector<1x64x64xf32>
    %35 = vector.shape_cast %34 : vector<1x64x64xf32> to vector<64x64xf32>
    %cst_35 = arith.constant dense<0.000000e+00> : vector<4x64xf32>
    %36 = tpu.matmul %33, %35, %cst_35 {dimension_numbers = #tpu.dot_dimension_numbers<[1], [0], [0], [1], [0, 0, 1, 1], [], []>} : vector<4x64xf32>, vector<64x64xf32>, vector<4x64xf32> -> vector<4x64xf32>
    %c1_36 = arith.constant 1 : index
    %c0_37 = arith.constant 0 : index
    %c0_38 = arith.constant 0 : index
    %37 = vector.load %arg6[%c1_36, %c0_37, %c0_38] : memref<3x64x64xf32, #tpu.memory_space<vmem>>, vector<1x64x64xf32>
    %38 = vector.shape_cast %37 : vector<1x64x64xf32> to vector<64x64xf32>
    %cst_39 = arith.constant dense<0.000000e+00> : vector<4x64xf32>
    %39 = tpu.matmul %28, %38, %cst_39 {dimension_numbers = #tpu.dot_dimension_numbers<[1], [0], [0], [1], [0, 0, 1, 1], [], []>} : vector<4x64xf32>, vector<64x64xf32>, vector<4x64xf32> -> vector<4x64xf32>
    %40 = arith.addf %36, %39 : vector<4x64xf32>
    %c2_40 = arith.constant 2 : index
    %c0_41 = arith.constant 0 : index
    %41 = vector.load %arg11[%c2_40, %c0_41] : memref<6x64xf32, #tpu.memory_space<vmem>>, vector<4x64xf32>
    %c2_42 = arith.constant 2 : index
    %c0_43 = arith.constant 0 : index
    %c0_44 = arith.constant 0 : index
    %42 = vector.load %arg6[%c2_42, %c0_43, %c0_44] : memref<3x64x64xf32, #tpu.memory_space<vmem>>, vector<1x64x64xf32>
    %43 = vector.shape_cast %42 : vector<1x64x64xf32> to vector<64x64xf32>
    %cst_45 = arith.constant dense<0.000000e+00> : vector<4x64xf32>
    %44 = tpu.matmul %41, %43, %cst_45 {dimension_numbers = #tpu.dot_dimension_numbers<[1], [0], [0], [1], [0, 0, 1, 1], [], []>} : vector<4x64xf32>, vector<64x64xf32>, vector<4x64xf32> -> vector<4x64xf32>
    %45 = arith.addf %40, %44 : vector<4x64xf32>
    %c0_46 = arith.constant 0 : index
    %c0_47 = arith.constant 0 : index
    %46 = vector.load %arg7[%c0_46, %c0_47] : memref<1x64xf32, #tpu.memory_space<vmem>>, vector<1x64xf32>
    %47 = vector.broadcast %46 : vector<1x64xf32> to vector<4x64xf32>
    %48 = arith.mulf %45, %47 : vector<4x64xf32>
    %c0_48 = arith.constant 0 : index
    %c0_49 = arith.constant 0 : index
    %49 = vector.load %arg8[%c0_48, %c0_49] : memref<1x64xf32, #tpu.memory_space<vmem>>, vector<1x64xf32>
    %50 = vector.broadcast %49 : vector<1x64xf32> to vector<4x64xf32>
    %51 = arith.addf %48, %50 : vector<4x64xf32>
    %cst_50 = arith.constant 0.000000e+00 : f32
    %52 = vector.broadcast %cst_50 : f32 to vector<4x64xf32>
    %53 = arith.cmpf ogt, %51, %52 : vector<4x64xf32>
    %c0_51 = arith.constant 0 : index
    %c0_52 = arith.constant 0 : index
    %54 = vector.load %arg9[%c0_51, %c0_52] : memref<1x64xf32, #tpu.memory_space<vmem>>, vector<1x64xf32>
    %55 = vector.broadcast %54 : vector<1x64xf32> to vector<4x64xf32>
    %56 = arith.mulf %55, %51 : vector<4x64xf32>
    %57 = arith.select %53, %51, %56 : vector<4x64xi1>, vector<4x64xf32>
    %c0_53 = arith.constant 0 : index
    %c0_54 = arith.constant 0 : index
    %c0_55 = arith.constant 0 : index
    %58 = vector.load %arg10[%c0_53, %c0_54, %c0_55] : memref<1x4x64xf32, #tpu.memory_space<vmem>>, vector<1x4x64xf32>
    %59 = vector.shape_cast %58 : vector<1x4x64xf32> to vector<4x64xf32>
    %60 = vector.shape_cast %57 : vector<4x64xf32> to vector<1x4x64xf32>
    tpu.vector_store %arg10[%c0_53, %c0_54, %c0_55], %60 {strides = array<i32>} : memref<1x4x64xf32, #tpu.memory_space<vmem>>, vector<1x4x64xf32>,
    return
  }
  func.func @transform_0(%arg0: i32) -> (i32, i32, i32) {
    %c0_i32 = arith.constant 0 : i32
    %c0_i32_0 = arith.constant 0 : i32
    %c0_i32_1 = arith.constant 0 : i32
    return %arg0, %c0_i32, %c0_i32_0 : i32, i32, i32
  }
  func.func @transform_1(%arg0: i32) -> (i32, i32, i32) {
    %c0_i32 = arith.constant 0 : i32
    %c0_i32_0 = arith.constant 0 : i32
    %c0_i32_1 = arith.constant 0 : i32
    %c0_i32_2 = arith.constant 0 : i32
    return %c0_i32, %c0_i32_0, %c0_i32_1 : i32, i32, i32
  }
  func.func @transform_2(%arg0: i32) -> (i32, i32) {
    %c0_i32 = arith.constant 0 : i32
    %c0_i32_0 = arith.constant 0 : i32
    %c0_i32_1 = arith.constant 0 : i32
    return %c0_i32, %c0_i32_0 : i32, i32
  }
  func.func @transform_3(%arg0: i32) -> (i32, i32) {
    %c0_i32 = arith.constant 0 : i32
    %c0_i32_0 = arith.constant 0 : i32
    %c0_i32_1 = arith.constant 0 : i32
    return %c0_i32, %c0_i32_0 : i32, i32
  }
  func.func @transform_4(%arg0: i32) -> (i32, i32) {
    %c0_i32 = arith.constant 0 : i32
    %c0_i32_0 = arith.constant 0 : i32
    %c0_i32_1 = arith.constant 0 : i32
    return %c0_i32, %c0_i32_0 : i32, i32
  }
  func.func @transform_5(%arg0: i32) -> (i32, i32, i32) {
    %c0_i32 = arith.constant 0 : i32
    %c0_i32_0 = arith.constant 0 : i32
    %c0_i32_1 = arith.constant 0 : i32
    %c0_i32_2 = arith.constant 0 : i32
    return %c0_i32, %c0_i32_0, %c0_i32_1 : i32, i32, i32
  }
  func.func @transform_6(%arg0: i32) -> (i32, i32) {
    %c0_i32 = arith.constant 0 : i32
    %c0_i32_0 = arith.constant 0 : i32
    %c0_i32_1 = arith.constant 0 : i32
    return %c0_i32, %c0_i32_0 : i32, i32
  }
  func.func @transform_7(%arg0: i32) -> (i32, i32) {
    %c0_i32 = arith.constant 0 : i32
    %c0_i32_0 = arith.constant 0 : i32
    %c0_i32_1 = arith.constant 0 : i32
    return %c0_i32, %c0_i32_0 : i32, i32
  }
  func.func @transform_8(%arg0: i32) -> (i32, i32) {
    %c0_i32 = arith.constant 0 : i32
    %c0_i32_0 = arith.constant 0 : i32
    %c0_i32_1 = arith.constant 0 : i32
    return %c0_i32, %c0_i32_0 : i32, i32
  }
  func.func @transform_9(%arg0: i32) -> (i32, i32, i32) {
    %c0_i32 = arith.constant 0 : i32
    %c0_i32_0 = arith.constant 0 : i32
    %c0_i32_1 = arith.constant 0 : i32
    return %arg0, %c0_i32, %c0_i32_0 : i32, i32, i32
  }
}

module attributes {stable_mosaic.version = 11 : i64} {
  func.func @_convT_kernel(%arg0: i32, %arg1: memref<1x6x64xf32, #tpu.memory_space<vmem>>, %arg2: memref<3x64x72xf32, #tpu.memory_space<vmem>>, %arg3: memref<1x72xf32, #tpu.memory_space<vmem>>, %arg4: memref<1x5x72xf32, #tpu.memory_space<vmem>>, %arg5: memref<1x4x72xf32, #tpu.memory_space<vmem>>) attributes {dimension_semantics = [#tpu.dimension_semantics<parallel>], iteration_bounds = array<i64: 2>, scalar_prefetch = 0 : i64, scratch_operands = 0 : i64, tpu.core_type = #tpu.core_type<tc>, window_params = [{transform_indices = @transform_0, window_bounds = array<i64: 1, 6, 64>}, {pipeline_mode = #tpu.pipeline_mode<synchronous>, transform_indices = @transform_1, window_bounds = array<i64: 3, 64, 72>}, {pipeline_mode = #tpu.pipeline_mode<synchronous>, transform_indices = @transform_2, window_bounds = array<i64: 1, 72>}, {transform_indices = @transform_3, window_bounds = array<i64: 1, 5, 72>}, {transform_indices = @transform_4, window_bounds = array<i64: 1, 4, 72>}]} {
    %c0 = arith.constant 0 : index
    %c0_0 = arith.constant 0 : index
    %c0_1 = arith.constant 0 : index
    %0 = vector.load %arg1[%c0, %c0_0, %c0_1] : memref<1x6x64xf32, #tpu.memory_space<vmem>>, vector<1x5x64xf32>
    %1 = vector.shape_cast %0 : vector<1x5x64xf32> to vector<5x64xf32>
    %c2 = arith.constant 2 : index
    %c0_2 = arith.constant 0 : index
    %c0_3 = arith.constant 0 : index
    %2 = vector.load %arg2[%c2, %c0_2, %c0_3] : memref<3x64x72xf32, #tpu.memory_space<vmem>>, vector<1x64x72xf32>
    %3 = vector.shape_cast %2 : vector<1x64x72xf32> to vector<64x72xf32>
    %cst = arith.constant dense<0.000000e+00> : vector<5x72xf32>
    %4 = tpu.matmul %1, %3, %cst {dimension_numbers = #tpu.dot_dimension_numbers<[1], [0], [0], [1], [0, 0, 1, 1], [], []>} : vector<5x64xf32>, vector<64x72xf32>, vector<5x72xf32> -> vector<5x72xf32>
    %c0_4 = arith.constant 0 : index
    %c1 = arith.constant 1 : index
    %c0_5 = arith.constant 0 : index
    %5 = vector.load %arg1[%c0_4, %c1, %c0_5] : memref<1x6x64xf32, #tpu.memory_space<vmem>>, vector<1x5x64xf32>
    %6 = vector.shape_cast %5 : vector<1x5x64xf32> to vector<5x64xf32>
    %c0_6 = arith.constant 0 : index
    %c0_7 = arith.constant 0 : index
    %c0_8 = arith.constant 0 : index
    %7 = vector.load %arg2[%c0_6, %c0_7, %c0_8] : memref<3x64x72xf32, #tpu.memory_space<vmem>>, vector<1x64x72xf32>
    %8 = vector.shape_cast %7 : vector<1x64x72xf32> to vector<64x72xf32>
    %cst_9 = arith.constant dense<0.000000e+00> : vector<5x72xf32>
    %9 = tpu.matmul %6, %8, %cst_9 {dimension_numbers = #tpu.dot_dimension_numbers<[1], [0], [0], [1], [0, 0, 1, 1], [], []>} : vector<5x64xf32>, vector<64x72xf32>, vector<5x72xf32> -> vector<5x72xf32>
    %10 = arith.addf %4, %9 : vector<5x72xf32>
    %c0_10 = arith.constant 0 : index
    %c0_11 = arith.constant 0 : index
    %11 = vector.load %arg3[%c0_10, %c0_11] : memref<1x72xf32, #tpu.memory_space<vmem>>, vector<1x72xf32>
    %12 = vector.broadcast %11 : vector<1x72xf32> to vector<5x72xf32>
    %13 = arith.addf %10, %12 : vector<5x72xf32>
    %c0_12 = arith.constant 0 : index
    %c1_13 = arith.constant 1 : index
    %c0_14 = arith.constant 0 : index
    %14 = vector.load %arg1[%c0_12, %c1_13, %c0_14] : memref<1x6x64xf32, #tpu.memory_space<vmem>>, vector<1x4x64xf32>
    %15 = vector.shape_cast %14 : vector<1x4x64xf32> to vector<4x64xf32>
    %c1_15 = arith.constant 1 : index
    %c0_16 = arith.constant 0 : index
    %c0_17 = arith.constant 0 : index
    %16 = vector.load %arg2[%c1_15, %c0_16, %c0_17] : memref<3x64x72xf32, #tpu.memory_space<vmem>>, vector<1x64x72xf32>
    %17 = vector.shape_cast %16 : vector<1x64x72xf32> to vector<64x72xf32>
    %cst_18 = arith.constant dense<0.000000e+00> : vector<4x72xf32>
    %18 = tpu.matmul %15, %17, %cst_18 {dimension_numbers = #tpu.dot_dimension_numbers<[1], [0], [0], [1], [0, 0, 1, 1], [], []>} : vector<4x64xf32>, vector<64x72xf32>, vector<4x72xf32> -> vector<4x72xf32>
    %c0_19 = arith.constant 0 : index
    %c0_20 = arith.constant 0 : index
    %19 = vector.load %arg3[%c0_19, %c0_20] : memref<1x72xf32, #tpu.memory_space<vmem>>, vector<1x72xf32>
    %20 = vector.broadcast %19 : vector<1x72xf32> to vector<4x72xf32>
    %21 = arith.addf %18, %20 : vector<4x72xf32>
    %c0_21 = arith.constant 0 : index
    %c0_22 = arith.constant 0 : index
    %c0_23 = arith.constant 0 : index
    %22 = vector.load %arg4[%c0_21, %c0_22, %c0_23] : memref<1x5x72xf32, #tpu.memory_space<vmem>>, vector<1x5x72xf32>
    %23 = vector.shape_cast %22 : vector<1x5x72xf32> to vector<5x72xf32>
    %24 = vector.shape_cast %13 : vector<5x72xf32> to vector<1x5x72xf32>
    tpu.vector_store %arg4[%c0_21, %c0_22, %c0_23], %24 {strides = array<i32>} : memref<1x5x72xf32, #tpu.memory_space<vmem>>, vector<1x5x72xf32>,
    %c0_24 = arith.constant 0 : index
    %c0_25 = arith.constant 0 : index
    %c0_26 = arith.constant 0 : index
    %25 = vector.load %arg5[%c0_24, %c0_25, %c0_26] : memref<1x4x72xf32, #tpu.memory_space<vmem>>, vector<1x4x72xf32>
    %26 = vector.shape_cast %25 : vector<1x4x72xf32> to vector<4x72xf32>
    %27 = vector.shape_cast %21 : vector<4x72xf32> to vector<1x4x72xf32>
    tpu.vector_store %arg5[%c0_24, %c0_25, %c0_26], %27 {strides = array<i32>} : memref<1x4x72xf32, #tpu.memory_space<vmem>>, vector<1x4x72xf32>,
    return
  }
  func.func @transform_0(%arg0: i32) -> (i32, i32, i32) {
    %c0_i32 = arith.constant 0 : i32
    %c0_i32_0 = arith.constant 0 : i32
    %c0_i32_1 = arith.constant 0 : i32
    return %arg0, %c0_i32, %c0_i32_0 : i32, i32, i32
  }
  func.func @transform_1(%arg0: i32) -> (i32, i32, i32) {
    %c0_i32 = arith.constant 0 : i32
    %c0_i32_0 = arith.constant 0 : i32
    %c0_i32_1 = arith.constant 0 : i32
    %c0_i32_2 = arith.constant 0 : i32
    return %c0_i32, %c0_i32_0, %c0_i32_1 : i32, i32, i32
  }
  func.func @transform_2(%arg0: i32) -> (i32, i32) {
    %c0_i32 = arith.constant 0 : i32
    %c0_i32_0 = arith.constant 0 : i32
    %c0_i32_1 = arith.constant 0 : i32
    return %c0_i32, %c0_i32_0 : i32, i32
  }
  func.func @transform_3(%arg0: i32) -> (i32, i32, i32) {
    %c0_i32 = arith.constant 0 : i32
    %c0_i32_0 = arith.constant 0 : i32
    %c0_i32_1 = arith.constant 0 : i32
    return %arg0, %c0_i32, %c0_i32_0 : i32, i32, i32
  }
  func.func @transform_4(%arg0: i32) -> (i32, i32, i32) {
    %c0_i32 = arith.constant 0 : i32
    %c0_i32_0 = arith.constant 0 : i32
    %c0_i32_1 = arith.constant 0 : i32
    return %arg0, %c0_i32, %c0_i32_0 : i32, i32, i32
  }
}

module attributes {stable_mosaic.version = 11 : i64} {
  func.func @_convT_kernel(%arg0: i32, %arg1: memref<1x10x64xf32, #tpu.memory_space<vmem>>, %arg2: memref<3x64x68xf32, #tpu.memory_space<vmem>>, %arg3: memref<1x68xf32, #tpu.memory_space<vmem>>, %arg4: memref<1x9x68xf32, #tpu.memory_space<vmem>>, %arg5: memref<1x8x68xf32, #tpu.memory_space<vmem>>) attributes {dimension_semantics = [#tpu.dimension_semantics<parallel>], iteration_bounds = array<i64: 2>, scalar_prefetch = 0 : i64, scratch_operands = 0 : i64, tpu.core_type = #tpu.core_type<tc>, window_params = [{transform_indices = @transform_0, window_bounds = array<i64: 1, 10, 64>}, {pipeline_mode = #tpu.pipeline_mode<synchronous>, transform_indices = @transform_1, window_bounds = array<i64: 3, 64, 68>}, {pipeline_mode = #tpu.pipeline_mode<synchronous>, transform_indices = @transform_2, window_bounds = array<i64: 1, 68>}, {transform_indices = @transform_3, window_bounds = array<i64: 1, 9, 68>}, {transform_indices = @transform_4, window_bounds = array<i64: 1, 8, 68>}]} {
    %c0 = arith.constant 0 : index
    %c0_0 = arith.constant 0 : index
    %c0_1 = arith.constant 0 : index
    %0 = vector.load %arg1[%c0, %c0_0, %c0_1] : memref<1x10x64xf32, #tpu.memory_space<vmem>>, vector<1x9x64xf32>
    %1 = vector.shape_cast %0 : vector<1x9x64xf32> to vector<9x64xf32>
    %c2 = arith.constant 2 : index
    %c0_2 = arith.constant 0 : index
    %c0_3 = arith.constant 0 : index
    %2 = vector.load %arg2[%c2, %c0_2, %c0_3] : memref<3x64x68xf32, #tpu.memory_space<vmem>>, vector<1x64x68xf32>
    %3 = vector.shape_cast %2 : vector<1x64x68xf32> to vector<64x68xf32>
    %cst = arith.constant dense<0.000000e+00> : vector<9x68xf32>
    %4 = tpu.matmul %1, %3, %cst {dimension_numbers = #tpu.dot_dimension_numbers<[1], [0], [0], [1], [0, 0, 1, 1], [], []>} : vector<9x64xf32>, vector<64x68xf32>, vector<9x68xf32> -> vector<9x68xf32>
    %c0_4 = arith.constant 0 : index
    %c1 = arith.constant 1 : index
    %c0_5 = arith.constant 0 : index
    %5 = vector.load %arg1[%c0_4, %c1, %c0_5] : memref<1x10x64xf32, #tpu.memory_space<vmem>>, vector<1x9x64xf32>
    %6 = vector.shape_cast %5 : vector<1x9x64xf32> to vector<9x64xf32>
    %c0_6 = arith.constant 0 : index
    %c0_7 = arith.constant 0 : index
    %c0_8 = arith.constant 0 : index
    %7 = vector.load %arg2[%c0_6, %c0_7, %c0_8] : memref<3x64x68xf32, #tpu.memory_space<vmem>>, vector<1x64x68xf32>
    %8 = vector.shape_cast %7 : vector<1x64x68xf32> to vector<64x68xf32>
    %cst_9 = arith.constant dense<0.000000e+00> : vector<9x68xf32>
    %9 = tpu.matmul %6, %8, %cst_9 {dimension_numbers = #tpu.dot_dimension_numbers<[1], [0], [0], [1], [0, 0, 1, 1], [], []>} : vector<9x64xf32>, vector<64x68xf32>, vector<9x68xf32> -> vector<9x68xf32>
    %10 = arith.addf %4, %9 : vector<9x68xf32>
    %c0_10 = arith.constant 0 : index
    %c0_11 = arith.constant 0 : index
    %11 = vector.load %arg3[%c0_10, %c0_11] : memref<1x68xf32, #tpu.memory_space<vmem>>, vector<1x68xf32>
    %12 = vector.broadcast %11 : vector<1x68xf32> to vector<9x68xf32>
    %13 = arith.addf %10, %12 : vector<9x68xf32>
    %c0_12 = arith.constant 0 : index
    %c1_13 = arith.constant 1 : index
    %c0_14 = arith.constant 0 : index
    %14 = vector.load %arg1[%c0_12, %c1_13, %c0_14] : memref<1x10x64xf32, #tpu.memory_space<vmem>>, vector<1x8x64xf32>
    %15 = vector.shape_cast %14 : vector<1x8x64xf32> to vector<8x64xf32>
    %c1_15 = arith.constant 1 : index
    %c0_16 = arith.constant 0 : index
    %c0_17 = arith.constant 0 : index
    %16 = vector.load %arg2[%c1_15, %c0_16, %c0_17] : memref<3x64x68xf32, #tpu.memory_space<vmem>>, vector<1x64x68xf32>
    %17 = vector.shape_cast %16 : vector<1x64x68xf32> to vector<64x68xf32>
    %cst_18 = arith.constant dense<0.000000e+00> : vector<8x68xf32>
    %18 = tpu.matmul %15, %17, %cst_18 {dimension_numbers = #tpu.dot_dimension_numbers<[1], [0], [0], [1], [0, 0, 1, 1], [], []>} : vector<8x64xf32>, vector<64x68xf32>, vector<8x68xf32> -> vector<8x68xf32>
    %c0_19 = arith.constant 0 : index
    %c0_20 = arith.constant 0 : index
    %19 = vector.load %arg3[%c0_19, %c0_20] : memref<1x68xf32, #tpu.memory_space<vmem>>, vector<1x68xf32>
    %20 = vector.broadcast %19 : vector<1x68xf32> to vector<8x68xf32>
    %21 = arith.addf %18, %20 : vector<8x68xf32>
    %c0_21 = arith.constant 0 : index
    %c0_22 = arith.constant 0 : index
    %c0_23 = arith.constant 0 : index
    %22 = vector.load %arg4[%c0_21, %c0_22, %c0_23] : memref<1x9x68xf32, #tpu.memory_space<vmem>>, vector<1x9x68xf32>
    %23 = vector.shape_cast %22 : vector<1x9x68xf32> to vector<9x68xf32>
    %24 = vector.shape_cast %13 : vector<9x68xf32> to vector<1x9x68xf32>
    tpu.vector_store %arg4[%c0_21, %c0_22, %c0_23], %24 {strides = array<i32>} : memref<1x9x68xf32, #tpu.memory_space<vmem>>, vector<1x9x68xf32>,
    %c0_24 = arith.constant 0 : index
    %c0_25 = arith.constant 0 : index
    %c0_26 = arith.constant 0 : index
    %25 = vector.load %arg5[%c0_24, %c0_25, %c0_26] : memref<1x8x68xf32, #tpu.memory_space<vmem>>, vector<1x8x68xf32>
    %26 = vector.shape_cast %25 : vector<1x8x68xf32> to vector<8x68xf32>
    %27 = vector.shape_cast %21 : vector<8x68xf32> to vector<1x8x68xf32>
    tpu.vector_store %arg5[%c0_24, %c0_25, %c0_26], %27 {strides = array<i32>} : memref<1x8x68xf32, #tpu.memory_space<vmem>>, vector<1x8x68xf32>,
    return
  }
  func.func @transform_0(%arg0: i32) -> (i32, i32, i32) {
    %c0_i32 = arith.constant 0 : i32
    %c0_i32_0 = arith.constant 0 : i32
    %c0_i32_1 = arith.constant 0 : i32
    return %arg0, %c0_i32, %c0_i32_0 : i32, i32, i32
  }
  func.func @transform_1(%arg0: i32) -> (i32, i32, i32) {
    %c0_i32 = arith.constant 0 : i32
    %c0_i32_0 = arith.constant 0 : i32
    %c0_i32_1 = arith.constant 0 : i32
    %c0_i32_2 = arith.constant 0 : i32
    return %c0_i32, %c0_i32_0, %c0_i32_1 : i32, i32, i32
  }
  func.func @transform_2(%arg0: i32) -> (i32, i32) {
    %c0_i32 = arith.constant 0 : i32
    %c0_i32_0 = arith.constant 0 : i32
    %c0_i32_1 = arith.constant 0 : i32
    return %c0_i32, %c0_i32_0 : i32, i32
  }
  func.func @transform_3(%arg0: i32) -> (i32, i32, i32) {
    %c0_i32 = arith.constant 0 : i32
    %c0_i32_0 = arith.constant 0 : i32
    %c0_i32_1 = arith.constant 0 : i32
    return %arg0, %c0_i32, %c0_i32_0 : i32, i32, i32
  }
  func.func @transform_4(%arg0: i32) -> (i32, i32, i32) {
    %c0_i32 = arith.constant 0 : i32
    %c0_i32_0 = arith.constant 0 : i32
    %c0_i32_1 = arith.constant 0 : i32
    return %arg0, %c0_i32, %c0_i32_0 : i32, i32, i32
  }
}

module attributes {stable_mosaic.version = 11 : i64} {
  func.func @_double_conv_kernel(%arg0: i32, %arg1: memref<1x10x128xf32, #tpu.memory_space<vmem>>, %arg2: memref<3x128x64xf32, #tpu.memory_space<vmem>>, %arg3: memref<1x64xf32, #tpu.memory_space<vmem>>, %arg4: memref<1x64xf32, #tpu.memory_space<vmem>>, %arg5: memref<1x64xf32, #tpu.memory_space<vmem>>, %arg6: memref<3x64x64xf32, #tpu.memory_space<vmem>>, %arg7: memref<1x64xf32, #tpu.memory_space<vmem>>, %arg8: memref<1x64xf32, #tpu.memory_space<vmem>>, %arg9: memref<1x64xf32, #tpu.memory_space<vmem>>, %arg10: memref<1x8x64xf32, #tpu.memory_space<vmem>>, %arg11: memref<10x64xf32, #tpu.memory_space<vmem>>) attributes {dimension_semantics = [#tpu.dimension_semantics<parallel>], iteration_bounds = array<i64: 2>, scalar_prefetch = 0 : i64, scratch_operands = 1 : i64, tpu.core_type = #tpu.core_type<tc>, window_params = [{transform_indices = @transform_0, window_bounds = array<i64: 1, 10, 128>}, {pipeline_mode = #tpu.pipeline_mode<synchronous>, transform_indices = @transform_1, window_bounds = array<i64: 3, 128, 64>}, {pipeline_mode = #tpu.pipeline_mode<synchronous>, transform_indices = @transform_2, window_bounds = array<i64: 1, 64>}, {pipeline_mode = #tpu.pipeline_mode<synchronous>, transform_indices = @transform_3, window_bounds = array<i64: 1, 64>}, {pipeline_mode = #tpu.pipeline_mode<synchronous>, transform_indices = @transform_4, window_bounds = array<i64: 1, 64>}, {pipeline_mode = #tpu.pipeline_mode<synchronous>, transform_indices = @transform_5, window_bounds = array<i64: 3, 64, 64>}, {pipeline_mode = #tpu.pipeline_mode<synchronous>, transform_indices = @transform_6, window_bounds = array<i64: 1, 64>}, {pipeline_mode = #tpu.pipeline_mode<synchronous>, transform_indices = @transform_7, window_bounds = array<i64: 1, 64>}, {pipeline_mode = #tpu.pipeline_mode<synchronous>, transform_indices = @transform_8, window_bounds = array<i64: 1, 64>}, {transform_indices = @transform_9, window_bounds = array<i64: 1, 8, 64>}]} {
    %c0 = arith.constant 0 : index
    %c0_0 = arith.constant 0 : index
    %c0_1 = arith.constant 0 : index
    %0 = vector.load %arg1[%c0, %c0_0, %c0_1] : memref<1x10x128xf32, #tpu.memory_space<vmem>>, vector<1x8x128xf32>
    %1 = vector.shape_cast %0 : vector<1x8x128xf32> to vector<8x128xf32>
    %c0_2 = arith.constant 0 : index
    %c0_3 = arith.constant 0 : index
    %c0_4 = arith.constant 0 : index
    %2 = vector.load %arg2[%c0_2, %c0_3, %c0_4] : memref<3x128x64xf32, #tpu.memory_space<vmem>>, vector<1x128x64xf32>
    %3 = vector.shape_cast %2 : vector<1x128x64xf32> to vector<128x64xf32>
    %cst = arith.constant dense<0.000000e+00> : vector<8x64xf32>
    %4 = tpu.matmul %1, %3, %cst {dimension_numbers = #tpu.dot_dimension_numbers<[1], [0], [0], [1], [0, 0, 1, 1], [], []>} : vector<8x128xf32>, vector<128x64xf32>, vector<8x64xf32> -> vector<8x64xf32>
    %c0_5 = arith.constant 0 : index
    %c1 = arith.constant 1 : index
    %c0_6 = arith.constant 0 : index
    %5 = vector.load %arg1[%c0_5, %c1, %c0_6] : memref<1x10x128xf32, #tpu.memory_space<vmem>>, vector<1x8x128xf32>
    %6 = vector.shape_cast %5 : vector<1x8x128xf32> to vector<8x128xf32>
    %c1_7 = arith.constant 1 : index
    %c0_8 = arith.constant 0 : index
    %c0_9 = arith.constant 0 : index
    %7 = vector.load %arg2[%c1_7, %c0_8, %c0_9] : memref<3x128x64xf32, #tpu.memory_space<vmem>>, vector<1x128x64xf32>
    %8 = vector.shape_cast %7 : vector<1x128x64xf32> to vector<128x64xf32>
    %cst_10 = arith.constant dense<0.000000e+00> : vector<8x64xf32>
    %9 = tpu.matmul %6, %8, %cst_10 {dimension_numbers = #tpu.dot_dimension_numbers<[1], [0], [0], [1], [0, 0, 1, 1], [], []>} : vector<8x128xf32>, vector<128x64xf32>, vector<8x64xf32> -> vector<8x64xf32>
    %10 = arith.addf %4, %9 : vector<8x64xf32>
    %c0_11 = arith.constant 0 : index
    %c2 = arith.constant 2 : index
    %c0_12 = arith.constant 0 : index
    %11 = vector.load %arg1[%c0_11, %c2, %c0_12] : memref<1x10x128xf32, #tpu.memory_space<vmem>>, vector<1x8x128xf32>
    %12 = vector.shape_cast %11 : vector<1x8x128xf32> to vector<8x128xf32>
    %c2_13 = arith.constant 2 : index
    %c0_14 = arith.constant 0 : index
    %c0_15 = arith.constant 0 : index
    %13 = vector.load %arg2[%c2_13, %c0_14, %c0_15] : memref<3x128x64xf32, #tpu.memory_space<vmem>>, vector<1x128x64xf32>
    %14 = vector.shape_cast %13 : vector<1x128x64xf32> to vector<128x64xf32>
    %cst_16 = arith.constant dense<0.000000e+00> : vector<8x64xf32>
    %15 = tpu.matmul %12, %14, %cst_16 {dimension_numbers = #tpu.dot_dimension_numbers<[1], [0], [0], [1], [0, 0, 1, 1], [], []>} : vector<8x128xf32>, vector<128x64xf32>, vector<8x64xf32> -> vector<8x64xf32>
    %16 = arith.addf %10, %15 : vector<8x64xf32>
    %c0_17 = arith.constant 0 : index
    %c0_18 = arith.constant 0 : index
    %17 = vector.load %arg3[%c0_17, %c0_18] : memref<1x64xf32, #tpu.memory_space<vmem>>, vector<1x64xf32>
    %18 = vector.broadcast %17 : vector<1x64xf32> to vector<8x64xf32>
    %19 = arith.mulf %16, %18 : vector<8x64xf32>
    %c0_19 = arith.constant 0 : index
    %c0_20 = arith.constant 0 : index
    %20 = vector.load %arg4[%c0_19, %c0_20] : memref<1x64xf32, #tpu.memory_space<vmem>>, vector<1x64xf32>
    %21 = vector.broadcast %20 : vector<1x64xf32> to vector<8x64xf32>
    %22 = arith.addf %19, %21 : vector<8x64xf32>
    %cst_21 = arith.constant 0.000000e+00 : f32
    %23 = vector.broadcast %cst_21 : f32 to vector<8x64xf32>
    %24 = arith.cmpf ogt, %22, %23 : vector<8x64xf32>
    %c0_22 = arith.constant 0 : index
    %c0_23 = arith.constant 0 : index
    %25 = vector.load %arg5[%c0_22, %c0_23] : memref<1x64xf32, #tpu.memory_space<vmem>>, vector<1x64xf32>
    %26 = vector.broadcast %25 : vector<1x64xf32> to vector<8x64xf32>
    %27 = arith.mulf %26, %22 : vector<8x64xf32>
    %28 = arith.select %24, %22, %27 : vector<8x64xi1>, vector<8x64xf32>
    %cst_24 = arith.constant 0.000000e+00 : f32
    %29 = vector.broadcast %cst_24 : f32 to vector<1x64xf32>
    %c0_25 = arith.constant 0 : index
    %c0_26 = arith.constant 0 : index
    %30 = vector.load %arg11[%c0_25, %c0_26] : memref<10x64xf32, #tpu.memory_space<vmem>>, vector<1x64xf32>
    tpu.vector_store %arg11[%c0_25, %c0_26], %29 {strides = array<i32>} : memref<10x64xf32, #tpu.memory_space<vmem>>, vector<1x64xf32>,
    %c9 = arith.constant 9 : index
    %c0_27 = arith.constant 0 : index
    %31 = vector.load %arg11[%c9, %c0_27] : memref<10x64xf32, #tpu.memory_space<vmem>>, vector<1x64xf32>
    tpu.vector_store %arg11[%c9, %c0_27], %29 {strides = array<i32>} : memref<10x64xf32, #tpu.memory_space<vmem>>, vector<1x64xf32>,
    %c1_28 = arith.constant 1 : index
    %c0_29 = arith.constant 0 : index
    %32 = vector.load %arg11[%c1_28, %c0_29] : memref<10x64xf32, #tpu.memory_space<vmem>>, vector<8x64xf32>
    tpu.vector_store %arg11[%c1_28, %c0_29], %28 {strides = array<i32>} : memref<10x64xf32, #tpu.memory_space<vmem>>, vector<8x64xf32>,
    %c0_30 = arith.constant 0 : index
    %c0_31 = arith.constant 0 : index
    %33 = vector.load %arg11[%c0_30, %c0_31] : memref<10x64xf32, #tpu.memory_space<vmem>>, vector<8x64xf32>
    %c0_32 = arith.constant 0 : index
    %c0_33 = arith.constant 0 : index
    %c0_34 = arith.constant 0 : index
    %34 = vector.load %arg6[%c0_32, %c0_33, %c0_34] : memref<3x64x64xf32, #tpu.memory_space<vmem>>, vector<1x64x64xf32>
    %35 = vector.shape_cast %34 : vector<1x64x64xf32> to vector<64x64xf32>
    %cst_35 = arith.constant dense<0.000000e+00> : vector<8x64xf32>
    %36 = tpu.matmul %33, %35, %cst_35 {dimension_numbers = #tpu.dot_dimension_numbers<[1], [0], [0], [1], [0, 0, 1, 1], [], []>} : vector<8x64xf32>, vector<64x64xf32>, vector<8x64xf32> -> vector<8x64xf32>
    %c1_36 = arith.constant 1 : index
    %c0_37 = arith.constant 0 : index
    %c0_38 = arith.constant 0 : index
    %37 = vector.load %arg6[%c1_36, %c0_37, %c0_38] : memref<3x64x64xf32, #tpu.memory_space<vmem>>, vector<1x64x64xf32>
    %38 = vector.shape_cast %37 : vector<1x64x64xf32> to vector<64x64xf32>
    %cst_39 = arith.constant dense<0.000000e+00> : vector<8x64xf32>
    %39 = tpu.matmul %28, %38, %cst_39 {dimension_numbers = #tpu.dot_dimension_numbers<[1], [0], [0], [1], [0, 0, 1, 1], [], []>} : vector<8x64xf32>, vector<64x64xf32>, vector<8x64xf32> -> vector<8x64xf32>
    %40 = arith.addf %36, %39 : vector<8x64xf32>
    %c2_40 = arith.constant 2 : index
    %c0_41 = arith.constant 0 : index
    %41 = vector.load %arg11[%c2_40, %c0_41] : memref<10x64xf32, #tpu.memory_space<vmem>>, vector<8x64xf32>
    %c2_42 = arith.constant 2 : index
    %c0_43 = arith.constant 0 : index
    %c0_44 = arith.constant 0 : index
    %42 = vector.load %arg6[%c2_42, %c0_43, %c0_44] : memref<3x64x64xf32, #tpu.memory_space<vmem>>, vector<1x64x64xf32>
    %43 = vector.shape_cast %42 : vector<1x64x64xf32> to vector<64x64xf32>
    %cst_45 = arith.constant dense<0.000000e+00> : vector<8x64xf32>
    %44 = tpu.matmul %41, %43, %cst_45 {dimension_numbers = #tpu.dot_dimension_numbers<[1], [0], [0], [1], [0, 0, 1, 1], [], []>} : vector<8x64xf32>, vector<64x64xf32>, vector<8x64xf32> -> vector<8x64xf32>
    %45 = arith.addf %40, %44 : vector<8x64xf32>
    %c0_46 = arith.constant 0 : index
    %c0_47 = arith.constant 0 : index
    %46 = vector.load %arg7[%c0_46, %c0_47] : memref<1x64xf32, #tpu.memory_space<vmem>>, vector<1x64xf32>
    %47 = vector.broadcast %46 : vector<1x64xf32> to vector<8x64xf32>
    %48 = arith.mulf %45, %47 : vector<8x64xf32>
    %c0_48 = arith.constant 0 : index
    %c0_49 = arith.constant 0 : index
    %49 = vector.load %arg8[%c0_48, %c0_49] : memref<1x64xf32, #tpu.memory_space<vmem>>, vector<1x64xf32>
    %50 = vector.broadcast %49 : vector<1x64xf32> to vector<8x64xf32>
    %51 = arith.addf %48, %50 : vector<8x64xf32>
    %cst_50 = arith.constant 0.000000e+00 : f32
    %52 = vector.broadcast %cst_50 : f32 to vector<8x64xf32>
    %53 = arith.cmpf ogt, %51, %52 : vector<8x64xf32>
    %c0_51 = arith.constant 0 : index
    %c0_52 = arith.constant 0 : index
    %54 = vector.load %arg9[%c0_51, %c0_52] : memref<1x64xf32, #tpu.memory_space<vmem>>, vector<1x64xf32>
    %55 = vector.broadcast %54 : vector<1x64xf32> to vector<8x64xf32>
    %56 = arith.mulf %55, %51 : vector<8x64xf32>
    %57 = arith.select %53, %51, %56 : vector<8x64xi1>, vector<8x64xf32>
    %c0_53 = arith.constant 0 : index
    %c0_54 = arith.constant 0 : index
    %c0_55 = arith.constant 0 : index
    %58 = vector.load %arg10[%c0_53, %c0_54, %c0_55] : memref<1x8x64xf32, #tpu.memory_space<vmem>>, vector<1x8x64xf32>
    %59 = vector.shape_cast %58 : vector<1x8x64xf32> to vector<8x64xf32>
    %60 = vector.shape_cast %57 : vector<8x64xf32> to vector<1x8x64xf32>
    tpu.vector_store %arg10[%c0_53, %c0_54, %c0_55], %60 {strides = array<i32>} : memref<1x8x64xf32, #tpu.memory_space<vmem>>, vector<1x8x64xf32>,
    return
  }
  func.func @transform_0(%arg0: i32) -> (i32, i32, i32) {
    %c0_i32 = arith.constant 0 : i32
    %c0_i32_0 = arith.constant 0 : i32
    %c0_i32_1 = arith.constant 0 : i32
    return %arg0, %c0_i32, %c0_i32_0 : i32, i32, i32
  }
  func.func @transform_1(%arg0: i32) -> (i32, i32, i32) {
    %c0_i32 = arith.constant 0 : i32
    %c0_i32_0 = arith.constant 0 : i32
    %c0_i32_1 = arith.constant 0 : i32
    %c0_i32_2 = arith.constant 0 : i32
    return %c0_i32, %c0_i32_0, %c0_i32_1 : i32, i32, i32
  }
  func.func @transform_2(%arg0: i32) -> (i32, i32) {
    %c0_i32 = arith.constant 0 : i32
    %c0_i32_0 = arith.constant 0 : i32
    %c0_i32_1 = arith.constant 0 : i32
    return %c0_i32, %c0_i32_0 : i32, i32
  }
  func.func @transform_3(%arg0: i32) -> (i32, i32) {
    %c0_i32 = arith.constant 0 : i32
    %c0_i32_0 = arith.constant 0 : i32
    %c0_i32_1 = arith.constant 0 : i32
    return %c0_i32, %c0_i32_0 : i32, i32
  }
  func.func @transform_4(%arg0: i32) -> (i32, i32) {
    %c0_i32 = arith.constant 0 : i32
    %c0_i32_0 = arith.constant 0 : i32
    %c0_i32_1 = arith.constant 0 : i32
    return %c0_i32, %c0_i32_0 : i32, i32
  }
  func.func @transform_5(%arg0: i32) -> (i32, i32, i32) {
    %c0_i32 = arith.constant 0 : i32
    %c0_i32_0 = arith.constant 0 : i32
    %c0_i32_1 = arith.constant 0 : i32
    %c0_i32_2 = arith.constant 0 : i32
    return %c0_i32, %c0_i32_0, %c0_i32_1 : i32, i32, i32
  }
  func.func @transform_6(%arg0: i32) -> (i32, i32) {
    %c0_i32 = arith.constant 0 : i32
    %c0_i32_0 = arith.constant 0 : i32
    %c0_i32_1 = arith.constant 0 : i32
    return %c0_i32, %c0_i32_0 : i32, i32
  }
  func.func @transform_7(%arg0: i32) -> (i32, i32) {
    %c0_i32 = arith.constant 0 : i32
    %c0_i32_0 = arith.constant 0 : i32
    %c0_i32_1 = arith.constant 0 : i32
    return %c0_i32, %c0_i32_0 : i32, i32
  }
  func.func @transform_8(%arg0: i32) -> (i32, i32) {
    %c0_i32 = arith.constant 0 : i32
    %c0_i32_0 = arith.constant 0 : i32
    %c0_i32_1 = arith.constant 0 : i32
    return %c0_i32, %c0_i32_0 : i32, i32
  }
  func.func @transform_9(%arg0: i32) -> (i32, i32, i32) {
    %c0_i32 = arith.constant 0 : i32
    %c0_i32_0 = arith.constant 0 : i32
    %c0_i32_1 = arith.constant 0 : i32
    return %arg0, %c0_i32, %c0_i32_0 : i32, i32, i32
  }
}

module attributes {stable_mosaic.version = 11 : i64} {
  func.func @_double_conv_1x1_kernel(%arg0: i32, %arg1: memref<1x18x128xf32, #tpu.memory_space<vmem>>, %arg2: memref<3x128x64xf32, #tpu.memory_space<vmem>>, %arg3: memref<1x64xf32, #tpu.memory_space<vmem>>, %arg4: memref<1x64xf32, #tpu.memory_space<vmem>>, %arg5: memref<1x64xf32, #tpu.memory_space<vmem>>, %arg6: memref<3x64x64xf32, #tpu.memory_space<vmem>>, %arg7: memref<1x64xf32, #tpu.memory_space<vmem>>, %arg8: memref<1x64xf32, #tpu.memory_space<vmem>>, %arg9: memref<1x64xf32, #tpu.memory_space<vmem>>, %arg10: memref<64x16xf32, #tpu.memory_space<vmem>>, %arg11: memref<1x16xf32, #tpu.memory_space<vmem>>, %arg12: memref<1x16x16xf32, #tpu.memory_space<vmem>>, %arg13: memref<18x64xf32, #tpu.memory_space<vmem>>) attributes {dimension_semantics = [#tpu.dimension_semantics<parallel>], iteration_bounds = array<i64: 2>, scalar_prefetch = 0 : i64, scratch_operands = 1 : i64, tpu.core_type = #tpu.core_type<tc>, window_params = [{transform_indices = @transform_0, window_bounds = array<i64: 1, 18, 128>}, {pipeline_mode = #tpu.pipeline_mode<synchronous>, transform_indices = @transform_1, window_bounds = array<i64: 3, 128, 64>}, {pipeline_mode = #tpu.pipeline_mode<synchronous>, transform_indices = @transform_2, window_bounds = array<i64: 1, 64>}, {pipeline_mode = #tpu.pipeline_mode<synchronous>, transform_indices = @transform_3, window_bounds = array<i64: 1, 64>}, {pipeline_mode = #tpu.pipeline_mode<synchronous>, transform_indices = @transform_4, window_bounds = array<i64: 1, 64>}, {pipeline_mode = #tpu.pipeline_mode<synchronous>, transform_indices = @transform_5, window_bounds = array<i64: 3, 64, 64>}, {pipeline_mode = #tpu.pipeline_mode<synchronous>, transform_indices = @transform_6, window_bounds = array<i64: 1, 64>}, {pipeline_mode = #tpu.pipeline_mode<synchronous>, transform_indices = @transform_7, window_bounds = array<i64: 1, 64>}, {pipeline_mode = #tpu.pipeline_mode<synchronous>, transform_indices = @transform_8, window_bounds = array<i64: 1, 64>}, {pipeline_mode = #tpu.pipeline_mode<synchronous>, transform_indices = @transform_9, window_bounds = array<i64: 64, 16>}, {pipeline_mode = #tpu.pipeline_mode<synchronous>, transform_indices = @transform_10, window_bounds = array<i64: 1, 16>}, {transform_indices = @transform_11, window_bounds = array<i64: 1, 16, 16>}]} {
    %c0 = arith.constant 0 : index
    %c0_0 = arith.constant 0 : index
    %c0_1 = arith.constant 0 : index
    %0 = vector.load %arg1[%c0, %c0_0, %c0_1] : memref<1x18x128xf32, #tpu.memory_space<vmem>>, vector<1x16x128xf32>
    %1 = vector.shape_cast %0 : vector<1x16x128xf32> to vector<16x128xf32>
    %c0_2 = arith.constant 0 : index
    %c0_3 = arith.constant 0 : index
    %c0_4 = arith.constant 0 : index
    %2 = vector.load %arg2[%c0_2, %c0_3, %c0_4] : memref<3x128x64xf32, #tpu.memory_space<vmem>>, vector<1x128x64xf32>
    %3 = vector.shape_cast %2 : vector<1x128x64xf32> to vector<128x64xf32>
    %cst = arith.constant dense<0.000000e+00> : vector<16x64xf32>
    %4 = tpu.matmul %1, %3, %cst {dimension_numbers = #tpu.dot_dimension_numbers<[1], [0], [0], [1], [0, 0, 1, 1], [], []>} : vector<16x128xf32>, vector<128x64xf32>, vector<16x64xf32> -> vector<16x64xf32>
    %c0_5 = arith.constant 0 : index
    %c1 = arith.constant 1 : index
    %c0_6 = arith.constant 0 : index
    %5 = vector.load %arg1[%c0_5, %c1, %c0_6] : memref<1x18x128xf32, #tpu.memory_space<vmem>>, vector<1x16x128xf32>
    %6 = vector.shape_cast %5 : vector<1x16x128xf32> to vector<16x128xf32>
    %c1_7 = arith.constant 1 : index
    %c0_8 = arith.constant 0 : index
    %c0_9 = arith.constant 0 : index
    %7 = vector.load %arg2[%c1_7, %c0_8, %c0_9] : memref<3x128x64xf32, #tpu.memory_space<vmem>>, vector<1x128x64xf32>
    %8 = vector.shape_cast %7 : vector<1x128x64xf32> to vector<128x64xf32>
    %cst_10 = arith.constant dense<0.000000e+00> : vector<16x64xf32>
    %9 = tpu.matmul %6, %8, %cst_10 {dimension_numbers = #tpu.dot_dimension_numbers<[1], [0], [0], [1], [0, 0, 1, 1], [], []>} : vector<16x128xf32>, vector<128x64xf32>, vector<16x64xf32> -> vector<16x64xf32>
    %10 = arith.addf %4, %9 : vector<16x64xf32>
    %c0_11 = arith.constant 0 : index
    %c2 = arith.constant 2 : index
    %c0_12 = arith.constant 0 : index
    %11 = vector.load %arg1[%c0_11, %c2, %c0_12] : memref<1x18x128xf32, #tpu.memory_space<vmem>>, vector<1x16x128xf32>
    %12 = vector.shape_cast %11 : vector<1x16x128xf32> to vector<16x128xf32>
    %c2_13 = arith.constant 2 : index
    %c0_14 = arith.constant 0 : index
    %c0_15 = arith.constant 0 : index
    %13 = vector.load %arg2[%c2_13, %c0_14, %c0_15] : memref<3x128x64xf32, #tpu.memory_space<vmem>>, vector<1x128x64xf32>
    %14 = vector.shape_cast %13 : vector<1x128x64xf32> to vector<128x64xf32>
    %cst_16 = arith.constant dense<0.000000e+00> : vector<16x64xf32>
    %15 = tpu.matmul %12, %14, %cst_16 {dimension_numbers = #tpu.dot_dimension_numbers<[1], [0], [0], [1], [0, 0, 1, 1], [], []>} : vector<16x128xf32>, vector<128x64xf32>, vector<16x64xf32> -> vector<16x64xf32>
    %16 = arith.addf %10, %15 : vector<16x64xf32>
    %c0_17 = arith.constant 0 : index
    %c0_18 = arith.constant 0 : index
    %17 = vector.load %arg3[%c0_17, %c0_18] : memref<1x64xf32, #tpu.memory_space<vmem>>, vector<1x64xf32>
    %18 = vector.broadcast %17 : vector<1x64xf32> to vector<16x64xf32>
    %19 = arith.mulf %16, %18 : vector<16x64xf32>
    %c0_19 = arith.constant 0 : index
    %c0_20 = arith.constant 0 : index
    %20 = vector.load %arg4[%c0_19, %c0_20] : memref<1x64xf32, #tpu.memory_space<vmem>>, vector<1x64xf32>
    %21 = vector.broadcast %20 : vector<1x64xf32> to vector<16x64xf32>
    %22 = arith.addf %19, %21 : vector<16x64xf32>
    %cst_21 = arith.constant 0.000000e+00 : f32
    %23 = vector.broadcast %cst_21 : f32 to vector<16x64xf32>
    %24 = arith.cmpf ogt, %22, %23 : vector<16x64xf32>
    %c0_22 = arith.constant 0 : index
    %c0_23 = arith.constant 0 : index
    %25 = vector.load %arg5[%c0_22, %c0_23] : memref<1x64xf32, #tpu.memory_space<vmem>>, vector<1x64xf32>
    %26 = vector.broadcast %25 : vector<1x64xf32> to vector<16x64xf32>
    %27 = arith.mulf %26, %22 : vector<16x64xf32>
    %28 = arith.select %24, %22, %27 : vector<16x64xi1>, vector<16x64xf32>
    %cst_24 = arith.constant 0.000000e+00 : f32
    %29 = vector.broadcast %cst_24 : f32 to vector<1x64xf32>
    %c0_25 = arith.constant 0 : index
    %c0_26 = arith.constant 0 : index
    %30 = vector.load %arg13[%c0_25, %c0_26] : memref<18x64xf32, #tpu.memory_space<vmem>>, vector<1x64xf32>
    tpu.vector_store %arg13[%c0_25, %c0_26], %29 {strides = array<i32>} : memref<18x64xf32, #tpu.memory_space<vmem>>, vector<1x64xf32>,
    %c17 = arith.constant 17 : index
    %c0_27 = arith.constant 0 : index
    %31 = vector.load %arg13[%c17, %c0_27] : memref<18x64xf32, #tpu.memory_space<vmem>>, vector<1x64xf32>
    tpu.vector_store %arg13[%c17, %c0_27], %29 {strides = array<i32>} : memref<18x64xf32, #tpu.memory_space<vmem>>, vector<1x64xf32>,
    %c1_28 = arith.constant 1 : index
    %c0_29 = arith.constant 0 : index
    %32 = vector.load %arg13[%c1_28, %c0_29] : memref<18x64xf32, #tpu.memory_space<vmem>>, vector<16x64xf32>
    tpu.vector_store %arg13[%c1_28, %c0_29], %28 {strides = array<i32>} : memref<18x64xf32, #tpu.memory_space<vmem>>, vector<16x64xf32>,
    %c0_30 = arith.constant 0 : index
    %c0_31 = arith.constant 0 : index
    %33 = vector.load %arg13[%c0_30, %c0_31] : memref<18x64xf32, #tpu.memory_space<vmem>>, vector<16x64xf32>
    %c0_32 = arith.constant 0 : index
    %c0_33 = arith.constant 0 : index
    %c0_34 = arith.constant 0 : index
    %34 = vector.load %arg6[%c0_32, %c0_33, %c0_34] : memref<3x64x64xf32, #tpu.memory_space<vmem>>, vector<1x64x64xf32>
    %35 = vector.shape_cast %34 : vector<1x64x64xf32> to vector<64x64xf32>
    %cst_35 = arith.constant dense<0.000000e+00> : vector<16x64xf32>
    %36 = tpu.matmul %33, %35, %cst_35 {dimension_numbers = #tpu.dot_dimension_numbers<[1], [0], [0], [1], [0, 0, 1, 1], [], []>} : vector<16x64xf32>, vector<64x64xf32>, vector<16x64xf32> -> vector<16x64xf32>
    %c1_36 = arith.constant 1 : index
    %c0_37 = arith.constant 0 : index
    %c0_38 = arith.constant 0 : index
    %37 = vector.load %arg6[%c1_36, %c0_37, %c0_38] : memref<3x64x64xf32, #tpu.memory_space<vmem>>, vector<1x64x64xf32>
    %38 = vector.shape_cast %37 : vector<1x64x64xf32> to vector<64x64xf32>
    %cst_39 = arith.constant dense<0.000000e+00> : vector<16x64xf32>
    %39 = tpu.matmul %28, %38, %cst_39 {dimension_numbers = #tpu.dot_dimension_numbers<[1], [0], [0], [1], [0, 0, 1, 1], [], []>} : vector<16x64xf32>, vector<64x64xf32>, vector<16x64xf32> -> vector<16x64xf32>
    %40 = arith.addf %36, %39 : vector<16x64xf32>
    %c2_40 = arith.constant 2 : index
    %c0_41 = arith.constant 0 : index
    %41 = vector.load %arg13[%c2_40, %c0_41] : memref<18x64xf32, #tpu.memory_space<vmem>>, vector<16x64xf32>
    %c2_42 = arith.constant 2 : index
    %c0_43 = arith.constant 0 : index
    %c0_44 = arith.constant 0 : index
    %42 = vector.load %arg6[%c2_42, %c0_43, %c0_44] : memref<3x64x64xf32, #tpu.memory_space<vmem>>, vector<1x64x64xf32>
    %43 = vector.shape_cast %42 : vector<1x64x64xf32> to vector<64x64xf32>
    %cst_45 = arith.constant dense<0.000000e+00> : vector<16x64xf32>
    %44 = tpu.matmul %41, %43, %cst_45 {dimension_numbers = #tpu.dot_dimension_numbers<[1], [0], [0], [1], [0, 0, 1, 1], [], []>} : vector<16x64xf32>, vector<64x64xf32>, vector<16x64xf32> -> vector<16x64xf32>
    %45 = arith.addf %40, %44 : vector<16x64xf32>
    %c0_46 = arith.constant 0 : index
    %c0_47 = arith.constant 0 : index
    %46 = vector.load %arg7[%c0_46, %c0_47] : memref<1x64xf32, #tpu.memory_space<vmem>>, vector<1x64xf32>
    %47 = vector.broadcast %46 : vector<1x64xf32> to vector<16x64xf32>
    %48 = arith.mulf %45, %47 : vector<16x64xf32>
    %c0_48 = arith.constant 0 : index
    %c0_49 = arith.constant 0 : index
    %49 = vector.load %arg8[%c0_48, %c0_49] : memref<1x64xf32, #tpu.memory_space<vmem>>, vector<1x64xf32>
    %50 = vector.broadcast %49 : vector<1x64xf32> to vector<16x64xf32>
    %51 = arith.addf %48, %50 : vector<16x64xf32>
    %cst_50 = arith.constant 0.000000e+00 : f32
    %52 = vector.broadcast %cst_50 : f32 to vector<16x64xf32>
    %53 = arith.cmpf ogt, %51, %52 : vector<16x64xf32>
    %c0_51 = arith.constant 0 : index
    %c0_52 = arith.constant 0 : index
    %54 = vector.load %arg9[%c0_51, %c0_52] : memref<1x64xf32, #tpu.memory_space<vmem>>, vector<1x64xf32>
    %55 = vector.broadcast %54 : vector<1x64xf32> to vector<16x64xf32>
    %56 = arith.mulf %55, %51 : vector<16x64xf32>
    %57 = arith.select %53, %51, %56 : vector<16x64xi1>, vector<16x64xf32>
    %c0_53 = arith.constant 0 : index
    %c0_54 = arith.constant 0 : index
    %58 = vector.load %arg10[%c0_53, %c0_54] : memref<64x16xf32, #tpu.memory_space<vmem>>, vector<64x16xf32>
    %cst_55 = arith.constant dense<0.000000e+00> : vector<16x16xf32>
    %59 = tpu.matmul %57, %58, %cst_55 {dimension_numbers = #tpu.dot_dimension_numbers<[1], [0], [0], [1], [0, 0, 1, 1], [], []>} : vector<16x64xf32>, vector<64x16xf32>, vector<16x16xf32> -> vector<16x16xf32>
    %c0_56 = arith.constant 0 : index
    %c0_57 = arith.constant 0 : index
    %60 = vector.load %arg11[%c0_56, %c0_57] : memref<1x16xf32, #tpu.memory_space<vmem>>, vector<1x16xf32>
    %61 = vector.broadcast %60 : vector<1x16xf32> to vector<16x16xf32>
    %62 = arith.addf %59, %61 : vector<16x16xf32>
    %c0_58 = arith.constant 0 : index
    %c0_59 = arith.constant 0 : index
    %c0_60 = arith.constant 0 : index
    %63 = vector.load %arg12[%c0_58, %c0_59, %c0_60] : memref<1x16x16xf32, #tpu.memory_space<vmem>>, vector<1x16x16xf32>
    %64 = vector.shape_cast %63 : vector<1x16x16xf32> to vector<16x16xf32>
    %65 = vector.shape_cast %62 : vector<16x16xf32> to vector<1x16x16xf32>
    tpu.vector_store %arg12[%c0_58, %c0_59, %c0_60], %65 {strides = array<i32>} : memref<1x16x16xf32, #tpu.memory_space<vmem>>, vector<1x16x16xf32>,
    return
  }
  func.func @transform_0(%arg0: i32) -> (i32, i32, i32) {
    %c0_i32 = arith.constant 0 : i32
    %c0_i32_0 = arith.constant 0 : i32
    %c0_i32_1 = arith.constant 0 : i32
    return %arg0, %c0_i32, %c0_i32_0 : i32, i32, i32
  }
  func.func @transform_1(%arg0: i32) -> (i32, i32, i32) {
    %c0_i32 = arith.constant 0 : i32
    %c0_i32_0 = arith.constant 0 : i32
    %c0_i32_1 = arith.constant 0 : i32
    %c0_i32_2 = arith.constant 0 : i32
    return %c0_i32, %c0_i32_0, %c0_i32_1 : i32, i32, i32
  }
  func.func @transform_2(%arg0: i32) -> (i32, i32) {
    %c0_i32 = arith.constant 0 : i32
    %c0_i32_0 = arith.constant 0 : i32
    %c0_i32_1 = arith.constant 0 : i32
    return %c0_i32, %c0_i32_0 : i32, i32
  }
  func.func @transform_3(%arg0: i32) -> (i32, i32) {
    %c0_i32 = arith.constant 0 : i32
    %c0_i32_0 = arith.constant 0 : i32
    %c0_i32_1 = arith.constant 0 : i32
    return %c0_i32, %c0_i32_0 : i32, i32
  }
  func.func @transform_4(%arg0: i32) -> (i32, i32) {
    %c0_i32 = arith.constant 0 : i32
    %c0_i32_0 = arith.constant 0 : i32
    %c0_i32_1 = arith.constant 0 : i32
    return %c0_i32, %c0_i32_0 : i32, i32
  }
  func.func @transform_5(%arg0: i32) -> (i32, i32, i32) {
    %c0_i32 = arith.constant 0 : i32
    %c0_i32_0 = arith.constant 0 : i32
    %c0_i32_1 = arith.constant 0 : i32
    %c0_i32_2 = arith.constant 0 : i32
    return %c0_i32, %c0_i32_0, %c0_i32_1 : i32, i32, i32
  }
  func.func @transform_6(%arg0: i32) -> (i32, i32) {
    %c0_i32 = arith.constant 0 : i32
    %c0_i32_0 = arith.constant 0 : i32
    %c0_i32_1 = arith.constant 0 : i32
    return %c0_i32, %c0_i32_0 : i32, i32
  }
  func.func @transform_7(%arg0: i32) -> (i32, i32) {
    %c0_i32 = arith.constant 0 : i32
    %c0_i32_0 = arith.constant 0 : i32
    %c0_i32_1 = arith.constant 0 : i32
    return %c0_i32, %c0_i32_0 : i32, i32
  }
  func.func @transform_8(%arg0: i32) -> (i32, i32) {
    %c0_i32 = arith.constant 0 : i32
    %c0_i32_0 = arith.constant 0 : i32
    %c0_i32_1 = arith.constant 0 : i32
    return %c0_i32, %c0_i32_0 : i32, i32
  }
  func.func @transform_9(%arg0: i32) -> (i32, i32) {
    %c0_i32 = arith.constant 0 : i32
    %c0_i32_0 = arith.constant 0 : i32
    %c0_i32_1 = arith.constant 0 : i32
    return %c0_i32, %c0_i32_0 : i32, i32
  }
  func.func @transform_10(%arg0: i32) -> (i32, i32) {
    %c0_i32 = arith.constant 0 : i32
    %c0_i32_0 = arith.constant 0 : i32
    %c0_i32_1 = arith.constant 0 : i32
    return %c0_i32, %c0_i32_0 : i32, i32
  }
  func.func @transform_11(%arg0: i32) -> (i32, i32, i32) {
    %c0_i32 = arith.constant 0 : i32
    %c0_i32_0 = arith.constant 0 : i32
    %c0_i32_1 = arith.constant 0 : i32
    return %arg0, %c0_i32, %c0_i32_0 : i32, i32, i32
  }
}

</mosaic_0001>

<bundles_post_ra>
// kernel: feilian_forward_pallas.7
= control target key start
LH: loop header
LB: loop body
LE: loop exit
PB: predicated region body
PF: predicated region fallthrough
CT: control target
= control target key end

     0   :  { %14 = vsyncpa [#allocation4], 0  ;;  %s1747_s0 = inlined_call_operand.vmem [shape: f32[2,18,16], index: 0, kind: input, shape index: {}]   ;;  %s1748_s1 = inlined_call_operand.vmem [shape: f32[3,16,64], index: 1, kind: input, shape index: {}]   ;;  %s1749_s2 = inlined_call_operand.vmem [shape: f32[1,64], index: 2, kind: input, shape index: {}]   ;;  %s1750_s3 = inlined_call_operand.vmem [shape: f32[1,64], index: 3, kind: input, shape index: {}]   ;;  %s1751_s4 = inlined_call_operand.vmem [shape: f32[1,64], index: 4, kind: input, shape index: {}]   ;;  %s1752_s5 = inlined_call_operand.vmem [shape: f32[3,64,64], index: 5, kind: input, shape index: {}]   ;;  %s1753_s6 = inlined_call_operand.hbm [shape: f32[1,64], index: 6, kind: input, shape index: {}]   ;;  %s1754_s7 = inlined_call_operand.hbm [shape: f32[1,64], index: 7, kind: input, shape index: {}]   ;;  %s1755_s8 = inlined_call_operand.hbm [shape: f32[1,64], index: 8, kind: input, shape index: {}]   ;;  %s1756_s9 = inlined_call_operand.vmem [shape: f32[2,16,64], index: 9, kind: output, shape index: {}]  }
   0x1   :  { %15 = vsyncpa [#allocation6], 0  ;;  %s1500_s30 = smov 0  }
   0x2 LB: > { %s1506_s10 = sadd.s32 4294967295, %s1444_s30   ;;  %p1064_p0 = scmp.ge.s32.totalorder %s1444_s30, 1  ;;  %s1444_s30 = sphi %s1500_s30, %s21_s30  }
   0x3   : > { %p246_p1 = scmp.lt.s32.totalorder %s1444_s30, 3  ;;  %p1757_p2 = scmp.eq.s32.totalorder %s1506_s10, 0 }
   0x4   : > { %s1446_s12 = smov [#allocation5]   ;;  %s1447_s14 = smov [#allocation3]  }
   0x5   : > { %p1511_p3 = pnand %p1064_p0, %p246_p1  ;;  %s285_s13 = sshll.u32 %s1446_s12, 4  ;;  %s286_s13 = int_to_ptr.vmem [resolvable:$true] %s285_s13 }
   0x6   : > { %s274_s15 = sshll.u32 %s1447_s14, 4  ;;  %s1448_s16 = smov [#allocation7]   ;;  %s1523_s15 = int_to_ptr.vmem [resolvable:$true] %s274_s15 }
   0x7   : > { %s1759_s11 = scalar_select %p1511_p3, 1, 0 }
   0x8   : > { %p1318_p4 = pneg %p1511_p3  ;;  %s296_s17 = sshll.u32 %s1448_s16, 4  ;;  %s1525_s17 = int_to_ptr.vmem [resolvable:$true] %s296_s17 }
   0x9   : > { %s1346_s21 = scalar_lea.hbm %s1754_s7, 16 }
   0xa   : > { %p1519_p5 = pnand %p1757_p2, %p1318_p4  ;;  %p1347_p6 = scmp.ne.s32.totalorder %s1754_s7, %s1346_s21 }
   0xb   : > { %p1353_p10 = scmp.lt.u32.totalorder %s1346_s21, %s1754_s7 }
   0xc   : > { %p1535_p7 = pneg %p1519_p5 }
   0xe   : > { %p1349_p8 = pnand %p1535_p7, %p1347_p6 }
  0x10   : > { %p1350_p9 = pneg %p1349_p8 }
  0x12   : > { %p1355_p11 = pnand %p1353_p10, %p1350_p9 }
  0x14   : > { %1358 = shalt.err (!%p1355_p11)
}
  0x15   : > { %s1359_s27 = scalar_lea.vmem %s286_s13, 16  ;;  %s1366_s28 = scalar_lea.vmem %s286_s13, 32 }
  0x16   : > { %p1360_p12 = scmp.ne.s32.totalorder %s286_s13, %s1359_s27  ;;  %p1367_p1 = scmp.lt.s32.totalorder %s286_s13, %s286_s13 }
  0x17   : > { %p1368_p4 = scmp.lt.s32.totalorder %s1366_s28, %s1359_s27 }
  0x18   : > { %p1362_p13 = pnand %p1360_p12, %p1535_p7 }
  0x19   : > { %p1369_p2 = por %p1368_p4, %p1367_p1 }
  0x1a   : > { %p1363_p0 = pneg %p1362_p13 }
  0x1c   : > { %p1370_p3 = pnand %p1369_p2, %p1363_p0 }
  0x1e   : > { %1373 = shalt.err (!%p1370_p3)
}
  0x1f   : > { %1324 = dma.hbm_to_vmem [thread:$0]  (!%p1519_p5), %s1754_s7, 16, %s286_s13, [#allocation6]  }
  0x20   : > { %s1374_s19 = scalar_lea.hbm %s1753_s6, 16 }
  0x21   : > { %p1375_p6 = scmp.ne.s32.totalorder %s1753_s6, %s1374_s19  ;;  %p1381_p2 = scmp.lt.u32.totalorder %s1374_s19, %s1753_s6 }
  0x23   : > { %p1377_p8 = pnand %p1375_p6, %p1535_p7 }
  0x25   : > { %p1378_p9 = pneg %p1377_p8 }
  0x27   : > { %p1383_p3 = pnand %p1381_p2, %p1378_p9 }
  0x29   : > { %1386 = shalt.err (!%p1383_p3)
}
  0x2a   : > { %s1387_s13 = scalar_lea.vmem %s1523_s15, 16  ;;  %s1394_s25 = scalar_lea.vmem %s1523_s15, 32 }
  0x2b   : > { %p1388_p10 = scmp.ne.s32.totalorder %s1523_s15, %s1387_s13  ;;  %p1395_p13 = scmp.lt.s32.totalorder %s1523_s15, %s1523_s15 }
  0x2c   : > { %p1396_p0 = scmp.lt.s32.totalorder %s1394_s25, %s1387_s13 }
  0x2d   : > { %p1390_p11 = pnand %p1388_p10, %p1535_p7 }
  0x2e   : > { %p1397_p1 = por %p1396_p0, %p1395_p13 }
  0x2f   : > { %p1391_p12 = pneg %p1390_p11 }
  0x31   : > { %p1398_p4 = pnand %p1397_p1, %p1391_p12 }
  0x33   : > { %1401 = shalt.err (!%p1398_p4)
}
  0x34   : > { %1321 = dma.hbm_to_vmem [thread:$0]  (!%p1519_p5), %s1753_s6, 16, %s1523_s15, [#allocation4]  }
  0x35   : > { %s1402_s12 = scalar_lea.hbm %s1755_s8, 16 }
  0x36   : > { %p1403_p6 = scmp.ne.s32.totalorder %s1755_s8, %s1402_s12  ;;  %p1409_p2 = scmp.lt.u32.totalorder %s1402_s12, %s1755_s8 }
  0x38   : > { %p1405_p8 = pnand %p1403_p6, %p1535_p7 }
  0x3a   : > { %p1406_p9 = pneg %p1405_p8 }
  0x3c   : > { %p1411_p3 = pnand %p1409_p2, %p1406_p9 }
  0x3e   : > { %1414 = shalt.err (!%p1411_p3)
}
  0x3f   : > { %s1415_s15 = scalar_lea.vmem %s1525_s17, 16  ;;  %s1422_s21 = scalar_lea.vmem %s1525_s17, 32 }
  0x40   : > { %p1416_p10 = scmp.ne.s32.totalorder %s1525_s17, %s1415_s15  ;;  %p1423_p13 = scmp.lt.s32.totalorder %s1525_s17, %s1525_s17 }
  0x41   : > { %p1424_p0 = scmp.lt.s32.totalorder %s1422_s21, %s1415_s15 }
  0x42   : > { %p1418_p11 = pnand %p1416_p10, %p1535_p7 }
  0x43   : > { %p1425_p1 = por %p1424_p0, %p1423_p13 }
  0x44   : > { %p1419_p12 = pneg %p1418_p11 }
  0x46   : > { %p1426_p4 = pnand %p1425_p1, %p1419_p12 }
  0x48   : > { %1429 = shalt.err (!%p1426_p4)
}
  0x49   : > { %1327 = dma.hbm_to_vmem [thread:$0]  (!%p1519_p5), %s1755_s8, 16, %s1525_s17, [#allocation6]  }
  0x4a   : > { %p1762_p6 = scmp.ne.s32.totalorder %s1759_s11, 0 }
  0x4b   : > { %p1763_p7 = scmp.eq.s32.totalorder (!%p1762_p6), %s1506_s10, 0 }
  0x4c   : > { %317 = sbr.rel (%p1762_p6) target bundleno = 579 (0x243), region = 56 }
  0x53   : > { %1435 = dma.done.wait (%p1763_p7), [#allocation4], 16   ;;  %p1764_p8 = pmov %p1763_p7 }
  0x54   : > { %p1765_p9 = pmov %p1763_p7 }
  0x55   : > { %1437 = vsyncadd (%p1764_p8), [#allocation4], 4294967280 }
  0x56   : > { %1439 = dma.done.wait (%p1765_p9), [#allocation6], 32   ;;  %p1766_p2 = pmov %p1763_p7 }
  0x57   : > { %p361_p3 = scmp.lt.s32.totalorder %s1506_s10, 1  ;;  %vm380_vm0 = vcmask 130048   ;;  %v1076_v0 = vld [vmem:[%s1748_s1 + $0x10] sm:$0xff]  ;;  %v1077_v1 = vld [vmem:[%s1748_s1 + $0x18] sm:$0xff]  ;;  %v373_v4 = vld [vmem:[%s1748_s1] sm:$0xff]  ;;  %vm662_vm1 = vcmask 516096  }
  0x58   : > { %1441 = vsyncadd (%p1766_p2), [#allocation6], 4294967264  ;;  %v1237_v3 = vpack.c.bf16 %v1077_v1, %v1076_v0  ;;  %v374_v5 = vld [vmem:[%s1748_s1 + $0x8] sm:$0xff]  ;;  %v1082_v7 = vld [vmem:[%s1748_s1 + $0x20] sm:$0xff]  ;;  %v1449_v36 = vmov 0.0   ;;  %vm665_vm3 = vcmask 523264  }
  0x59   : > { %s1768_s10 = smov (!%p361_p3, %s1506_s10), 1  ;;  %v1241_v6 = vpack.c.bf16 %v374_v5, %v373_v4  ;;  %v1083_v8 = vld [vmem:[%s1748_s1 + $0x28] sm:$0xff]  ;;  %v1089_v12 = vld [vmem:[%s1752_s5 + $0x40] sm:$0xff]  ;;  %v1091_v17 = vld [vmem:[%s1752_s5 + $0x50] sm:$0xff]  ;;  %663 = vst.msk [vmem:[#allocation2] sm:$0x1] %vm662_vm1, %v1449_v36 }
  0x5a   : > { %s1305_s11 = smul.u32 24, %s1768_s10  ;;  %1238 = vmatprep.subr.bf16.mxu0 %v1237_v3  ;;  %v1245_v11 = vpack.c.bf16 %v1083_v8, %v1082_v7  ;;  %v1090_v13 = vld [vmem:[%s1752_s5 + $0x48] sm:$0xff]  ;;  %v1092_v18 = vld [vmem:[%s1752_s5 + $0x58] sm:$0xff]  ;;  %v670_v21 = vld [vmem:[%s1752_s5] sm:$0xff]  ;;  %664 = vst.msk [vmem:[#allocation2 + $0x11] sm:$0x1] %vm662_vm1, %v1449_v36 }
  0x5b   : > { %1240 = vmatpush3.bf16.msra.mxu0 %v1237_v3  ;;  %v1249_v16 = vpack.c.bf16 %v1090_v13, %v1089_v12  ;;  %v1253_v20 = vpack.c.bf16 %v1092_v18, %v1091_v17  ;;  %v671_v22 = vld [vmem:[%s1752_s5 + $0x8] sm:$0xff]  ;;  %v1093_v24 = vld [vmem:[%s1752_s5 + $0x60] sm:$0xff]  ;;  %v672_v27 = vld [vmem:[%s1752_s5 + $0x10] sm:$0xff]  ;;  %s1116_s19 = sshll.u32 %s1768_s10, 4 }
  0x5c   : > { %s1617_s24 = scalar_lea.vmem %s1747_s0, %s1305_s11  ;;  %1242 = vmatprep.subr.bf16.mxu0 %v1241_v6  ;;  %v1265_v23 = vpack.c.bf16 %v671_v22, %v670_v21  ;;  %v1094_v25 = vld [vmem:[%s1752_s5 + $0x68] sm:$0xff]  ;;  %v673_v28 = vld [vmem:[%s1752_s5 + $0x18] sm:$0xff]  ;;  %v1095_v30 = vld [vmem:[%s1752_s5 + $0x70] sm:$0xff]  ;;  %s370_s21 = scalar_lea.vmem %s1756_s9, %s1116_s19 }
  0x5d   : > { %v375_v2 = vld [vmem:[%s1617_s24 + $0x1] sm:$0xff]  ;;  %v376_v9 = vld [vmem:[%s1617_s24 + $0x9] sm:$0xff]  ;;  %v1257_v26 = vpack.c.bf16 %v1094_v25, %v1093_v24  ;;  %v1269_v29 = vpack.c.bf16 %v673_v28, %v672_v27  ;;  %v1096_v31 = vld [vmem:[%s1752_s5 + $0x78] sm:$0xff] }
  0x5e   : > { %1163 = vmatprep.mubr.msk.f32.mxu0 %vm380_vm0, %v375_v2  ;;  %v371_v10 = vld [vmem:[%s1617_s24] sm:$0xff]  ;;  %v372_v14 = vld [vmem:[%s1617_s24 + $0x8] sm:$0xff]  ;;  %1266 = vmatprep.subr.bf16.mxu1 %v1265_v23  ;;  %v1261_v32 = vpack.c.bf16 %v1096_v31, %v1095_v30  ;;  %v676_v37 = vld [vmem:[%s1752_s5 + $0x30] sm:$0xff] }
  0x5f   : > { %1164 = vmatmul.mubr.msk.f32.vlgmr.msra.gmra.mrb[0].mxu0 %vm380_vm0, %v376_v9  ;;  %v543_v15 = vld [vmem:[%s1617_s24 + $0x2] sm:$0xff]  ;;  %v544_v19 = vld [vmem:[%s1617_s24 + $0xa] sm:$0xff]  ;;  %1268 = vmatpush3.bf16.msra.mxu1 %v1265_v23  ;;  %v677_v38 = vld [vmem:[%s1752_s5 + $0x38] sm:$0xff] }
  0x60   : > { %1244 = vmatpush3.bf16.msra.mxu0 %v1241_v6  ;;  %1170 = vmatprep.mubr.msk.f32.mxu0 %vm380_vm0, %v371_v10  ;;  %v674_v33 = vld [vmem:[%s1752_s5 + $0x20] sm:$0xff]  ;;  %v675_v34 = vld [vmem:[%s1752_s5 + $0x28] sm:$0xff]  ;;  %v1277_v39 = vpack.c.bf16 %v677_v38, %v676_v37  ;;  %v1103_v56 = vld [vmem:[%s1752_s5 + $0x90] sm:$0xff] }
  0x61   : > { %1246 = vmatprep.subr.bf16.mxu0 %v1245_v11  ;;  %1270 = vmatprep.subr.bf16.mxu1 %v1269_v29  ;;  %v1273_v35 = vpack.c.bf16 %v675_v34, %v674_v33  ;;  %v1101_v40 = vld [vmem:[%s1752_s5 + $0x80] sm:$0xff]  ;;  %v1102_v41 = vld [vmem:[%s1752_s5 + $0x88] sm:$0xff]  ;;  %v1104_v57 = vld [vmem:[%s1752_s5 + $0x98] sm:$0xff] }
  0x62   : > { %v1281_v42 = vpack.c.bf16 %v1102_v41, %v1101_v40  ;;  %v1086_v43 = vld [vmem:[%s1749_s2] ss:$0 sm:$0xff]  ;;  %v1285_v60 = vpack.c.bf16 %v1104_v57, %v1103_v56  ;;  %v1106_v62 = vld [vmem:[%s1752_s5 + $0xa8] sm:$0xff]  ;;  %v1107_v1 = vld [vmem:[%s1752_s5 + $0xb0] sm:$0xff] }
  0x63   : > { %1272 = vmatpush3.bf16.msra.mxu1 %v1269_v29  ;;  %v1087_v45 = vld [vmem:[%s1750_s3] ss:$0 sm:$0xff]  ;;  %v1108_v2 = vld [vmem:[%s1752_s5 + $0xb8] sm:$0xff] }
  0x64   : > { %1274 = vmatprep.subr.bf16.mxu1 %v1273_v35  ;;  %v1088_v48 = vld [vmem:[%s1751_s4] ss:$0 sm:$0xff]  ;;  %v1293_v3 = vpack.c.bf16 %v1108_v2, %v1107_v1  ;;  %v1111_v8 = vld [vmem:[#allocation3] ss:$0 sm:$0xff] }
  0x65   : > { %v1105_v61 = vld [vmem:[%s1752_s5 + $0xa0] sm:$0xff] }
  0x66   : > { %v1289_v0 = vpack.c.bf16 %v1106_v62, %v1105_v61 }
  0x67   : > { %1171 = vmatmul.mubr.msk.f32.vlgmr.msra.gmra.mrb[0].mxu0 %vm380_vm0, %v372_v14  ;;  %1276 = vmatpush3.bf16.msra.mxu1 %v1273_v35  ;;  %v1113_v14 = vld [vmem:[#allocation7] ss:$0 sm:$0xff] }
  0x68   : > { %1248 = vmatpush3.bf16.msra.mxu0 %v1245_v11  ;;  %1177 = vmatprep.mubr.msk.f32.mxu0 %vm380_vm0, %v543_v15  ;;  %v1112_v11 = vld [vmem:[#allocation5] ss:$0 sm:$0xff] }
  0x69   : > { %1250 = vmatprep.subr.bf16.mxu0 %v1249_v16  ;;  %1278 = vmatprep.subr.bf16.mxu1 %v1277_v39 }
  0x6b   : > { %1280 = vmatpush3.bf16.msra.mxu1 %v1277_v39 }
  0x6c   : > { %1282 = vmatprep.subr.bf16.mxu1 %v1281_v42 }
  0x6f   : > { %1178 = vmatmul.mubr.msk.f32.vlgmr.msra.gmra.mrb[0].mxu0 %vm380_vm0, %v544_v19 }
  0x70   : > { %1252 = vmatpush3.bf16.msra.mxu0 %v1249_v16 }
  0x71   : > { %1254 = vmatprep.subr.bf16.mxu0 %v1253_v20 }
  0x74   : > { %1256 = vmatpush3.bf16.msra.mxu0 %v1253_v20 }
  0x75   : > { %1258 = vmatprep.subr.bf16.mxu0 %v1257_v26 }
  0x78   : > { %1260 = vmatpush3.bf16.msra.mxu0 %v1257_v26 }
  0x79   : > { %1262 = vmatprep.subr.bf16.mxu0 %v1261_v32 }
  0x7c   : > { %1264 = vmatpush3.bf16.msra.mxu0 %v1261_v32 }
 0x142   : > { %v1179_v44 = vpop.f32.mrb[0].mxu0 }
 0x143   : > { %v639_v46 = vmul.f32 %v1179_v44, %v1086_v43  ;;  %v620_v47 = vpop.f32.mrb[1].mxu0 }
 0x144   : > { %v638_v49 = vmul.f32 %v1086_v43, %v620_v47 }
 0x145   : > { %v648_v50 = vadd.f32 %v1087_v45, %v639_v46 }
 0x146   : > { %v647_v51 = vadd.f32 %v1087_v45, %v638_v49 }
 0x147   : > { %vm650_vm2 = vcmp.gt.f32.partialorder %v648_v50, 0.0  ;;  %v659_v52 = vmul.f32 %v1088_v48, %v648_v50 }
 0x148   : > { %v658_v53 = vmul.f32 %v1088_v48, %v647_v51  ;;  %vm649_vm4 = vcmp.gt.f32.partialorder %v647_v51, 0.0 }
 0x149   : > { %v661_v54 = vsel %vm650_vm2, %v648_v50, %v659_v52 }
 0x14a   : > { %v660_v55 = vsel %vm649_vm4, %v647_v51, %v658_v53  ;;  %667 = vst.msk [vmem:[#allocation2 + $0x9] sm:$0xff] %vm665_vm3, %v661_v54 }
 0x14b   : > { %666 = vst.msk [vmem:[#allocation2 + $0x1] sm:$0xff] %vm665_vm3, %v660_v55  ;;  %1196 = vmatprep.mubr.msk.f32.mxu0 %vm665_vm3, %v660_v55 }
 0x14c   : > { %1197 = vmatmul.mubr.msk.f32.vlgmr.msra.gmra.mrb[2].mxu0 %vm665_vm3, %v661_v54 }
 0x151   : > { %v850_v4 = vld [vmem:[#allocation2 + $0xa] sm:$0xff] }
 0x152   : > { %v668_v58 = vld [vmem:[#allocation2] sm:$0xff]  ;;  %v669_v59 = vld [vmem:[#allocation2 + $0x8] sm:$0xff] }
 0x153   : > { %1215 = vmatprep.mubr.msk.f32.mxu1 %vm665_vm3, %v668_v58  ;;  %v849_v63 = vld [vmem:[#allocation2 + $0x2] sm:$0xff] }
 0x154   : > { %1216 = vmatmul.mubr.msk.f32.vlgmr.msra.gmra.mrb[0].mxu1 %vm665_vm3, %v669_v59 }
 0x155   : > { %1284 = vmatpush3.bf16.msra.mxu1 %v1281_v42  ;;  %1234 = vmatprep.mubr.msk.f32.mxu1 %vm665_vm3, %v849_v63 }
 0x156   : > { %1286 = vmatprep.subr.bf16.mxu1 %v1285_v60 }
 0x159   : > { %1288 = vmatpush3.bf16.msra.mxu1 %v1285_v60 }
 0x15a   : > { %1290 = vmatprep.subr.bf16.mxu1 %v1289_v0 }
 0x15d   : > { %1292 = vmatpush3.bf16.msra.mxu1 %v1289_v0 }
 0x15e   : > { %1294 = vmatprep.subr.bf16.mxu1 %v1293_v3 }
 0x161   : > { %1296 = vmatpush3.bf16.msra.mxu1 %v1293_v3 }
 0x164   : > { %1235 = vmatmul.mubr.msk.f32.vlgmr.msra.gmra.mrb[0].mxu1 %vm665_vm3, %v850_v4 }
 0x21f   : > { %v1198_v5 = vpop.f32.mrb[2].mxu0 }
 0x220   : > { %v759_v6 = vpop.f32.mrb[3].mxu0 }
 0x237   : > { %v1236_v7 = vpop.f32.mrb[0].mxu1 }
 0x238   : > { %v1297_v9 = vadd.f32 %v1236_v7, %v1198_v5  ;;  %v932_v10 = vpop.f32.mrb[1].mxu1 }
 0x239   : > { %v1298_v12 = vadd.f32 %v932_v10, %v759_v6 }
 0x23a   : > { %v951_v13 = vmul.f32 %v1297_v9, %v1111_v8 }
 0x23b   : > { %v950_v15 = vmul.f32 %v1298_v12, %v1111_v8 }
 0x23c   : > { %v960_v16 = vadd.f32 %v1112_v11, %v951_v13 }
 0x23d   : > { %v959_v17 = vadd.f32 %v1112_v11, %v950_v15 }
 0x23e   : > { %vm962_vm5 = vcmp.gt.f32.partialorder %v960_v16, 0.0  ;;  %v971_v18 = vmul.f32 %v1113_v14, %v960_v16 }
 0x23f   : > { %vm961_vm6 = vcmp.gt.f32.partialorder %v959_v17, 0.0  ;;  %v970_v19 = vmul.f32 %v1113_v14, %v959_v17 }
 0x240   : > { %v973_v20 = vsel %vm962_vm5, %v960_v16, %v971_v18 }
 0x241   : > { %975 = vst.msk [vmem:[%s370_s21 + $0x8] sm:$0xff] %vm665_vm3, %v973_v20  ;;  %v972_v21 = vsel %vm961_vm6, %v959_v17, %v970_v19 }
 0x242   : > { %974 = vst.msk [vmem:[%s370_s21] sm:$0xff] %vm665_vm3, %v972_v21 }
 0x243 PF: > { %s21_s30 = sadd.s32 1, %s1444_s30  }
 0x244   : > { %p18_p5 = scmp.ge.s32.totalorder %s21_s30, 4  }
 0x246   :  { %20 = sbr.rel (!%p18_p5) target bundleno = 2 (0x2), region = 103 }
 0x24d   :  { %997 = vsyncpa [#allocation4], 1 }
 0x24e   :  { %999 = vsyncpa [#allocation4 + $0x1], 1 }
 0x24f   :  { %1000 = vsyncpa [#allocation6], 1 }

// kernel: feilian_forward_pallas.8
= control target key start
LH: loop header
LB: loop body
LE: loop exit
PB: predicated region body
PF: predicated region fallthrough
CT: control target
= control target key end

     0   :  { %s1240_s30 = smov 0   ;;  %s1427_s0 = inlined_call_operand.vmem [shape: f32[2,10,32], index: 0, kind: input, shape index: {}]   ;;  %s1428_s1 = inlined_call_operand.vmem [shape: f32[3,32,64], index: 1, kind: input, shape index: {}]   ;;  %s1429_s2 = inlined_call_operand.vmem [shape: f32[1,64], index: 2, kind: input, shape index: {}]   ;;  %s1430_s3 = inlined_call_operand.vmem [shape: f32[1,64], index: 3, kind: input, shape index: {}]   ;;  %s1431_s4 = inlined_call_operand.vmem [shape: f32[1,64], index: 4, kind: input, shape index: {}]   ;;  %s1432_s5 = inlined_call_operand.vmem [shape: f32[3,64,64], index: 5, kind: input, shape index: {}]   ;;  %s1433_s6 = inlined_call_operand.vmem [shape: f32[1,64], index: 6, kind: input, shape index: {}]   ;;  %s1434_s7 = inlined_call_operand.vmem [shape: f32[1,64], index: 7, kind: input, shape index: {}]   ;;  %s1435_s8 = inlined_call_operand.vmem [shape: f32[1,64], index: 8, kind: input, shape index: {}]   ;;  %s1436_s9 = inlined_call_operand.vmem [shape: f32[2,8,64], index: 9, kind: output, shape index: {}]  }
   0x1 LB: > { %s928_s10 = sadd.s32 4294967295, %s1185_s30   ;;  %p932_p0 = scmp.ge.s32.totalorder %s1185_s30, 1  ;;  %s1185_s30 = sphi %s1240_s30, %s19_s30  }
   0x2   : > { %p287_p1 = scmp.lt.s32.totalorder %s1185_s30, 3 }
   0x4   : > { %p288_p2 = pnand %p932_p0, %p287_p1 }
   0x5   : > { %v936_v0 = vld [vmem:[%s1428_s1 + $0x20] sm:$0xff] (!%p288_p2)  ;;  %v937_v1 = vld [vmem:[%s1428_s1 + $0x28] sm:$0xff] (!%p288_p2)  ;;  %v938_v2 = vld [vmem:[%s1428_s1 + $0x30] sm:$0xff] (!%p288_p2)  ;;  %v1187_v3 = vmov (!%p288_p2), 0.0|0.0   ;;  %vm1188_vm0 = vmmov (!%p288_p2), 0   ;;  %v1189_v6 = vmov (!%p288_p2), 0.0  }
   0x6   : > { %291 = sbr.rel (%p288_p2) target bundleno = 498 (0x1f2), region = 56  ;;  %1107 = vmatprep.subr.bf16.mxu0 (!%p288_p2), %v1187_v3  ;;  %v1108_v4 = vpack.c.bf16 (!%p288_p2), %v937_v1, %v936_v0  ;;  %v939_v5 = vld [vmem:[%s1428_s1 + $0x38] sm:$0xff] (!%p288_p2)  ;;  %1025 = vmatprep.mubr.msk.f32.mxu0 (!%p288_p2), %vm1188_vm0, %v1189_v6  ;;  %vm595_vm1 = vcmask (!%p288_p2), 516096   ;;  %p322_p3 = scmp.lt.s32.totalorder (!%p288_p2), %s928_s10, 1  ;;  %v332_v8 = vld [vmem:[%s1428_s1] sm:$0xff] (!%p288_p2)  ;;  %v333_v9 = vld [vmem:[%s1428_s1 + $0x8] sm:$0xff] (!%p288_p2) }
   0x7   : > { %596 = vst.msk [vmem:[#allocation2] sm:$0x1] (!%p288_p2), %vm595_vm1, %v1189_v6  ;;  %597 = vst.msk [vmem:[#allocation2 + $0x9] sm:$0x1] (!%p288_p2), %vm595_vm1, %v1189_v6  ;;  %1137 = vmatprep.subr.bf16.mxu1 (!%p288_p2), %v1187_v3  ;;  %1085 = vmatprep.mubr.msk.f32.mxu1 (!%p288_p2), %vm1188_vm0, %v1189_v6  ;;  %v1111_v7 = vpack.c.bf16 (!%p288_p2), %v939_v5, %v938_v2  ;;  %vm342_vm2 = vcmask (!%p288_p2), 261120   ;;  %v1114_v11 = vpack.c.bf16 (!%p288_p2), %v333_v9, %v332_v8  ;;  %v334_v12 = vld [vmem:[%s1428_s1 + $0x10] sm:$0xff] (!%p288_p2) }
   0x8   : > { %1109 = vmatpush3.bf16.msra.mxu0 (!%p288_p2), %v1108_v4  ;;  %v335_v13 = vld [vmem:[%s1428_s1 + $0x18] sm:$0xff] (!%p288_p2)  ;;  %v942_v15 = vld [vmem:[%s1428_s1 + $0x40] sm:$0xff] (!%p288_p2)  ;;  %v943_v16 = vld [vmem:[%s1428_s1 + $0x48] sm:$0xff] (!%p288_p2)  ;;  %vm598_vm4 = vcmask (!%p288_p2), 523264  }
   0x9   : > { %1110 = vmatprep.subr.bf16.mxu0 (!%p288_p2), %v1187_v3  ;;  %v1117_v14 = vpack.c.bf16 (!%p288_p2), %v335_v13, %v334_v12  ;;  %v1120_v18 = vpack.c.bf16 (!%p288_p2), %v943_v16, %v942_v15  ;;  %v944_v19 = vld [vmem:[%s1428_s1 + $0x50] sm:$0xff] (!%p288_p2)  ;;  %v945_v20 = vld [vmem:[%s1428_s1 + $0x58] sm:$0xff] (!%p288_p2)  ;;  %v950_v22 = vld [vmem:[%s1432_s5 + $0x40] sm:$0xff] (!%p288_p2) }
   0xa   : > { %v1123_v21 = vpack.c.bf16 (!%p288_p2), %v945_v20, %v944_v19  ;;  %v951_v23 = vld [vmem:[%s1432_s5 + $0x48] sm:$0xff] (!%p288_p2)  ;;  %v952_v26 = vld [vmem:[%s1432_s5 + $0x50] sm:$0xff] (!%p288_p2)  ;;  %v953_v27 = vld [vmem:[%s1432_s5 + $0x58] sm:$0xff] (!%p288_p2) }
   0xb   : > { %v1126_v25 = vpack.c.bf16 (!%p288_p2), %v951_v23, %v950_v22  ;;  %v1129_v28 = vpack.c.bf16 (!%p288_p2), %v953_v27, %v952_v26  ;;  %v601_v29 = vld [vmem:[%s1432_s5] sm:$0xff] (!%p288_p2)  ;;  %v602_v30 = vld [vmem:[%s1432_s5 + $0x8] sm:$0xff] (!%p288_p2)  ;;  %v603_v35 = vld [vmem:[%s1432_s5 + $0x10] sm:$0xff] (!%p288_p2) }
   0xc   : > { %1112 = vmatpush3.bf16.msra.mxu0 (!%p288_p2), %v1111_v7  ;;  %v1138_v31 = vpack.c.bf16 (!%p288_p2), %v602_v30, %v601_v29  ;;  %v954_v32 = vld [vmem:[%s1432_s5 + $0x60] sm:$0xff] (!%p288_p2)  ;;  %v955_v33 = vld [vmem:[%s1432_s5 + $0x68] sm:$0xff] (!%p288_p2)  ;;  %v604_v36 = vld [vmem:[%s1432_s5 + $0x18] sm:$0xff] (!%p288_p2) }
   0xd   : > { %s1438_s10 = smov (!%p322_p3, %s928_s10), 1  ;;  %1113 = vmatprep.subr.bf16.mxu0 %v1187_v3  ;;  %v1132_v34 = vpack.c.bf16 %v955_v33, %v954_v32  ;;  %v1141_v37 = vpack.c.bf16 %v604_v36, %v603_v35  ;;  %v956_v38 = vld [vmem:[%s1432_s5 + $0x70] sm:$0xff]  ;;  %v957_v39 = vld [vmem:[%s1432_s5 + $0x78] sm:$0xff]  ;;  %v605_v41 = vld [vmem:[%s1432_s5 + $0x20] sm:$0xff] }
   0xe   : > { %s974_s23 = sshll.u32 %s1438_s10, 4  ;;  %1139 = vmatpush3.bf16.msra.mxu1 %v1138_v31  ;;  %v1135_v40 = vpack.c.bf16 %v957_v39, %v956_v38  ;;  %v606_v42 = vld [vmem:[%s1432_s5 + $0x28] sm:$0xff]  ;;  %v607_v44 = vld [vmem:[%s1432_s5 + $0x30] sm:$0xff]  ;;  %v608_v45 = vld [vmem:[%s1432_s5 + $0x38] sm:$0xff]  ;;  %s935_s21 = sshll.u32 %s1438_s10, 3 }
   0xf   : > { %s326_s26 = scalar_lea.vmem %s1427_s0, %s974_s23  ;;  %1140 = vmatprep.subr.bf16.mxu1 %v1187_v3  ;;  %v1144_v43 = vpack.c.bf16 %v606_v42, %v605_v41  ;;  %v1147_v46 = vpack.c.bf16 %v608_v45, %v607_v44  ;;  %v947_v47 = vld [vmem:[%s1429_s2] ss:$0 sm:$0xff]  ;;  %v961_v57 = vld [vmem:[%s1432_s5 + $0x88] sm:$0xff]  ;;  %v962_v59 = vld [vmem:[%s1432_s5 + $0x90] sm:$0xff]  ;;  %s330_s27 = scalar_lea.vmem %s1436_s9, %s935_s21 }
  0x10   : > { %v336_v10 = vld [vmem:[%s326_s26 + $0x1] sm:$0xff]  ;;  %v948_v49 = vld [vmem:[%s1430_s3] ss:$0 sm:$0xff]  ;;  %v963_v60 = vld [vmem:[%s1432_s5 + $0x98] sm:$0xff] }
  0x11   : > { %1026 = vmatmul.mubr.msk.f32.vlgmr.msra.gmra.mrb[0].mxu0 %vm342_vm2, %v336_v10  ;;  %v331_v17 = vld [vmem:[%s326_s26] sm:$0xff]  ;;  %v1153_v62 = vpack.c.bf16 %v963_v60, %v962_v59  ;;  %v965_v0 = vld [vmem:[%s1432_s5 + $0xa8] sm:$0xff]  ;;  %v966_v2 = vld [vmem:[%s1432_s5 + $0xb0] sm:$0xff] }
  0x12   : > { %1115 = vmatpush3.bf16.msra.mxu0 %v1114_v11  ;;  %1036 = vmatprep.mubr.msk.f32.mxu0 %vm1188_vm0, %v1189_v6  ;;  %v489_v24 = vld [vmem:[%s326_s26 + $0x2] sm:$0xff]  ;;  %v949_v52 = vld [vmem:[%s1431_s4] ss:$0 sm:$0xff]  ;;  %v967_v4 = vld [vmem:[%s1432_s5 + $0xb8] sm:$0xff] }
  0x13   : > { %1116 = vmatprep.subr.bf16.mxu0 %v1187_v3  ;;  %1142 = vmatpush3.bf16.msra.mxu1 %v1141_v37  ;;  %v960_v56 = vld [vmem:[%s1432_s5 + $0x80] sm:$0xff]  ;;  %v1159_v5 = vpack.c.bf16 %v967_v4, %v966_v2 }
  0x14   : > { %1143 = vmatprep.subr.bf16.mxu1 %v1187_v3  ;;  %v1150_v58 = vpack.c.bf16 %v961_v57, %v960_v56  ;;  %v964_v63 = vld [vmem:[%s1432_s5 + $0xa0] sm:$0xff] }
  0x15   : > { %v1156_v1 = vpack.c.bf16 %v965_v0, %v964_v63  ;;  %v969_v10 = vld [vmem:[%s1433_s6] ss:$0 sm:$0xff] }
  0x16   : > { %1118 = vmatpush3.bf16.msra.mxu0 %v1117_v14  ;;  %v970_v13 = vld [vmem:[%s1434_s7] ss:$0 sm:$0xff] }
  0x17   : > { %1119 = vmatprep.subr.bf16.mxu0 %v1187_v3  ;;  %1145 = vmatpush3.bf16.msra.mxu1 %v1144_v43 }
  0x18   : > { %1146 = vmatprep.subr.bf16.mxu1 %v1187_v3 }
  0x19   : > { %1037 = vmatmul.mubr.msk.f32.vlgmr.msra.gmra.mrb[0].mxu0 %vm342_vm2, %v331_v17 }
  0x1a   : > { %1121 = vmatpush3.bf16.msra.mxu0 %v1120_v18  ;;  %1047 = vmatprep.mubr.msk.f32.mxu0 %vm1188_vm0, %v1189_v6 }
  0x1b   : > { %1122 = vmatprep.subr.bf16.mxu0 %v1187_v3  ;;  %1148 = vmatpush3.bf16.msra.mxu1 %v1147_v46 }
  0x1c   : > { %1149 = vmatprep.subr.bf16.mxu1 %v1187_v3 }
  0x1e   : > { %1124 = vmatpush3.bf16.msra.mxu0 %v1123_v21 }
  0x1f   : > { %1125 = vmatprep.subr.bf16.mxu0 %v1187_v3 }
  0x21   : > { %1048 = vmatmul.mubr.msk.f32.vlgmr.msra.gmra.mrb[0].mxu0 %vm342_vm2, %v489_v24 }
  0x22   : > { %1127 = vmatpush3.bf16.msra.mxu0 %v1126_v25  ;;  %1066 = vmatprep.mubr.msk.f32.mxu0 %vm1188_vm0, %v1189_v6 }
  0x23   : > { %1128 = vmatprep.subr.bf16.mxu0 %v1187_v3 }
  0x26   : > { %1130 = vmatpush3.bf16.msra.mxu0 %v1129_v28 }
  0x27   : > { %1131 = vmatprep.subr.bf16.mxu0 %v1187_v3 }
  0x2a   : > { %1133 = vmatpush3.bf16.msra.mxu0 %v1132_v34 }
  0x2b   : > { %1134 = vmatprep.subr.bf16.mxu0 %v1187_v3 }
  0x2e   : > { %1136 = vmatpush3.bf16.msra.mxu0 %v1135_v40 }
  0xf4   : > { %v564_v48 = vpop.f32.mrb[0].mxu0 }
  0xf5   : > { %v576_v50 = vmul.f32 %v947_v47, %v564_v48  ;;  %v1049_v51 = vpop.f32.mrb[1].mxu0 }
  0xf7   : > { %v584_v53 = vadd.f32 %v948_v49, %v576_v50 }
  0xf9   : > { %vm585_vm3 = vcmp.gt.f32.partialorder %v584_v53, 0.0  ;;  %v593_v54 = vmul.f32 %v949_v52, %v584_v53 }
  0xfb   : > { %v594_v55 = vsel %vm585_vm3, %v584_v53, %v593_v54 }
  0xfc   : > { %599 = vst.msk [vmem:[#allocation2 + $0x1] sm:$0xff] %vm598_vm4, %v594_v55  ;;  %1067 = vmatmul.mubr.msk.f32.vlgmr.msra.gmra.mrb[2].mxu0 %vm598_vm4, %v594_v55 }
 0x103   : > { %v600_v61 = vld [vmem:[#allocation2] sm:$0xff] }
 0x104   : > { %1086 = vmatmul.mubr.msk.f32.vlgmr.msra.gmra.mrb[0].mxu1 %vm598_vm4, %v600_v61 }
 0x105   : > { %1151 = vmatpush3.bf16.msra.mxu1 %v1150_v58  ;;  %1104 = vmatprep.mubr.msk.f32.mxu1 %vm1188_vm0, %v1189_v6  ;;  %v764_v6 = vld [vmem:[#allocation2 + $0x2] sm:$0xff] }
 0x106   : > { %1152 = vmatprep.subr.bf16.mxu1 %v1187_v3 }
 0x109   : > { %1154 = vmatpush3.bf16.msra.mxu1 %v1153_v62 }
 0x10a   : > { %1155 = vmatprep.subr.bf16.mxu1 %v1187_v3 }
 0x10d   : > { %1157 = vmatpush3.bf16.msra.mxu1 %v1156_v1 }
 0x10e   : > { %1158 = vmatprep.subr.bf16.mxu1 %v1187_v3  ;;  %v971_v3 = vld [vmem:[%s1435_s8] ss:$0 sm:$0xff] }
 0x111   : > { %1160 = vmatpush3.bf16.msra.mxu1 %v1159_v5 }
 0x114   : > { %1105 = vmatmul.mubr.msk.f32.vlgmr.msra.gmra.mrb[0].mxu1 %vm598_vm4, %v764_v6 }
 0x1cf   : > { %v687_v7 = vpop.f32.mrb[2].mxu0 }
 0x1d0   : > { %v1068_v8 = vpop.f32.mrb[3].mxu0 }
 0x1e7   : > { %v843_v9 = vpop.f32.mrb[0].mxu1 }
 0x1e8   : > { %v1161_v11 = vadd.f32 %v843_v9, %v687_v7  ;;  %v1106_v12 = vpop.f32.mrb[1].mxu1 }
 0x1ea   : > { %v855_v14 = vmul.f32 %v1161_v11, %v969_v10 }
 0x1ec   : > { %v863_v15 = vadd.f32 %v970_v13, %v855_v14 }
 0x1ee   : > { %vm864_vm5 = vcmp.gt.f32.partialorder %v863_v15, 0.0  ;;  %v872_v16 = vmul.f32 %v971_v3, %v863_v15 }
 0x1f0   : > { %v873_v17 = vsel %vm864_vm5, %v863_v15, %v872_v16 }
 0x1f1   : > { %874 = vst.msk [vmem:[%s330_s27] sm:$0xff] %vm598_vm4, %v873_v17 }
 0x1f2 PF: > { %s19_s30 = sadd.s32 1, %s1185_s30  }
 0x1f3   : > { %p16_p4 = scmp.ge.s32.totalorder %s19_s30, 4  }
 0x1f5   :  { %18 = sbr.rel (!%p16_p4) target bundleno = 1 (0x1), region = 90 }

// kernel: feilian_forward_pallas.9
= control target key start
LH: loop header
LB: loop body
LE: loop exit
PB: predicated region body
PF: predicated region fallthrough
CT: control target
= control target key end

     0   :  { %s1236_s30 = smov 0   ;;  %s1423_s0 = inlined_call_operand.vmem [shape: f32[2,6,32], index: 0, kind: input, shape index: {}]   ;;  %s1424_s1 = inlined_call_operand.vmem [shape: f32[3,32,64], index: 1, kind: input, shape index: {}]   ;;  %s1425_s2 = inlined_call_operand.vmem [shape: f32[1,64], index: 2, kind: input, shape index: {}]   ;;  %s1426_s3 = inlined_call_operand.vmem [shape: f32[1,64], index: 3, kind: input, shape index: {}]   ;;  %s1427_s4 = inlined_call_operand.vmem [shape: f32[1,64], index: 4, kind: input, shape index: {}]   ;;  %s1428_s5 = inlined_call_operand.vmem [shape: f32[3,64,64], index: 5, kind: input, shape index: {}]   ;;  %s1429_s6 = inlined_call_operand.vmem [shape: f32[1,64], index: 6, kind: input, shape index: {}]   ;;  %s1430_s7 = inlined_call_operand.vmem [shape: f32[1,64], index: 7, kind: input, shape index: {}]   ;;  %s1431_s8 = inlined_call_operand.vmem [shape: f32[1,64], index: 8, kind: input, shape index: {}]   ;;  %s1432_s9 = inlined_call_operand.vmem [shape: f32[2,4,64], index: 9, kind: output, shape index: {}]  }
   0x1 LB: > { %s926_s10 = sadd.s32 4294967295, %s1181_s30   ;;  %p930_p0 = scmp.ge.s32.totalorder %s1181_s30, 1  ;;  %s1181_s30 = sphi %s1236_s30, %s19_s30  }
   0x2   : > { %p286_p1 = scmp.lt.s32.totalorder %s1181_s30, 3 }
   0x4   : > { %p287_p2 = pnand %p930_p0, %p286_p1 }
   0x5   : > { %v933_v0 = vld [vmem:[%s1424_s1 + $0x20] sm:$0xff] (!%p287_p2)  ;;  %v934_v1 = vld [vmem:[%s1424_s1 + $0x28] sm:$0xff] (!%p287_p2)  ;;  %v935_v2 = vld [vmem:[%s1424_s1 + $0x30] sm:$0xff] (!%p287_p2)  ;;  %v1183_v3 = vmov (!%p287_p2), 0.0|0.0   ;;  %vm1184_vm0 = vmmov (!%p287_p2), 0   ;;  %v1185_v6 = vmov (!%p287_p2), 0.0  }
   0x6   : > { %290 = sbr.rel (%p287_p2) target bundleno = 498 (0x1f2), region = 56  ;;  %1103 = vmatprep.subr.bf16.mxu0 (!%p287_p2), %v1183_v3  ;;  %v1104_v4 = vpack.c.bf16 (!%p287_p2), %v934_v1, %v933_v0  ;;  %v936_v5 = vld [vmem:[%s1424_s1 + $0x38] sm:$0xff] (!%p287_p2)  ;;  %1021 = vmatprep.mubr.msk.f32.mxu0 (!%p287_p2), %vm1184_vm0, %v1185_v6  ;;  %vm592_vm1 = vcmask (!%p287_p2), 516096   ;;  %p320_p3 = scmp.lt.s32.totalorder (!%p287_p2), %s926_s10, 1  ;;  %v329_v8 = vld [vmem:[%s1424_s1] sm:$0xff] (!%p287_p2)  ;;  %v330_v9 = vld [vmem:[%s1424_s1 + $0x8] sm:$0xff] (!%p287_p2) }
   0x7   : > { %593 = vst.msk [vmem:[#allocation2] sm:$0x1] (!%p287_p2), %vm592_vm1, %v1185_v6  ;;  %594 = vst.msk [vmem:[#allocation2 + $0x5] sm:$0x1] (!%p287_p2), %vm592_vm1, %v1185_v6  ;;  %1133 = vmatprep.subr.bf16.mxu1 (!%p287_p2), %v1183_v3  ;;  %1081 = vmatprep.mubr.msk.f32.mxu1 (!%p287_p2), %vm1184_vm0, %v1185_v6  ;;  %v1107_v7 = vpack.c.bf16 (!%p287_p2), %v936_v5, %v935_v2  ;;  %vm339_vm2 = vcmask (!%p287_p2), 261120   ;;  %v1110_v11 = vpack.c.bf16 (!%p287_p2), %v330_v9, %v329_v8  ;;  %v331_v12 = vld [vmem:[%s1424_s1 + $0x10] sm:$0xff] (!%p287_p2) }
   0x8   : > { %1105 = vmatpush3.bf16.msra.mxu0 (!%p287_p2), %v1104_v4  ;;  %v332_v13 = vld [vmem:[%s1424_s1 + $0x18] sm:$0xff] (!%p287_p2)  ;;  %v939_v15 = vld [vmem:[%s1424_s1 + $0x40] sm:$0xff] (!%p287_p2)  ;;  %v940_v16 = vld [vmem:[%s1424_s1 + $0x48] sm:$0xff] (!%p287_p2)  ;;  %vm595_vm4 = vcmask (!%p287_p2), 519168   ;;  %vm615_vm5 = vcmask (!%p287_p2), 523264  }
   0x9   : > { %1106 = vmatprep.subr.bf16.mxu0 (!%p287_p2), %v1183_v3  ;;  %v1113_v14 = vpack.c.bf16 (!%p287_p2), %v332_v13, %v331_v12  ;;  %v1116_v18 = vpack.c.bf16 (!%p287_p2), %v940_v16, %v939_v15  ;;  %v941_v19 = vld [vmem:[%s1424_s1 + $0x50] sm:$0xff] (!%p287_p2)  ;;  %v942_v20 = vld [vmem:[%s1424_s1 + $0x58] sm:$0xff] (!%p287_p2)  ;;  %v947_v22 = vld [vmem:[%s1428_s5 + $0x40] sm:$0xff] (!%p287_p2) }
   0xa   : > { %v1119_v21 = vpack.c.bf16 (!%p287_p2), %v942_v20, %v941_v19  ;;  %v948_v23 = vld [vmem:[%s1428_s5 + $0x48] sm:$0xff] (!%p287_p2)  ;;  %v949_v26 = vld [vmem:[%s1428_s5 + $0x50] sm:$0xff] (!%p287_p2)  ;;  %v950_v27 = vld [vmem:[%s1428_s5 + $0x58] sm:$0xff] (!%p287_p2) }
   0xb   : > { %v1122_v25 = vpack.c.bf16 (!%p287_p2), %v948_v23, %v947_v22  ;;  %v1125_v28 = vpack.c.bf16 (!%p287_p2), %v950_v27, %v949_v26  ;;  %v598_v29 = vld [vmem:[%s1428_s5] sm:$0xff] (!%p287_p2)  ;;  %v599_v30 = vld [vmem:[%s1428_s5 + $0x8] sm:$0xff] (!%p287_p2)  ;;  %v600_v35 = vld [vmem:[%s1428_s5 + $0x10] sm:$0xff] (!%p287_p2) }
   0xc   : > { %1108 = vmatpush3.bf16.msra.mxu0 (!%p287_p2), %v1107_v7  ;;  %v1134_v31 = vpack.c.bf16 (!%p287_p2), %v599_v30, %v598_v29  ;;  %v951_v32 = vld [vmem:[%s1428_s5 + $0x60] sm:$0xff] (!%p287_p2)  ;;  %v952_v33 = vld [vmem:[%s1428_s5 + $0x68] sm:$0xff] (!%p287_p2)  ;;  %v601_v36 = vld [vmem:[%s1428_s5 + $0x18] sm:$0xff] (!%p287_p2) }
   0xd   : > { %s1434_s10 = smov (!%p320_p3, %s926_s10), 1  ;;  %1109 = vmatprep.subr.bf16.mxu0 %v1183_v3  ;;  %v1128_v34 = vpack.c.bf16 %v952_v33, %v951_v32  ;;  %v1137_v37 = vpack.c.bf16 %v601_v36, %v600_v35  ;;  %v953_v38 = vld [vmem:[%s1428_s5 + $0x70] sm:$0xff]  ;;  %v954_v39 = vld [vmem:[%s1428_s5 + $0x78] sm:$0xff]  ;;  %v602_v41 = vld [vmem:[%s1428_s5 + $0x20] sm:$0xff] }
   0xe   : > { %s931_s23 = sshll.u32 %s1434_s10, 3  ;;  %1135 = vmatpush3.bf16.msra.mxu1 %v1134_v31  ;;  %v1131_v40 = vpack.c.bf16 %v954_v39, %v953_v38  ;;  %v603_v42 = vld [vmem:[%s1428_s5 + $0x28] sm:$0xff]  ;;  %v604_v44 = vld [vmem:[%s1428_s5 + $0x30] sm:$0xff]  ;;  %v605_v45 = vld [vmem:[%s1428_s5 + $0x38] sm:$0xff]  ;;  %s932_s21 = sshll.u32 %s1434_s10, 2 }
   0xf   : > { %s323_s26 = scalar_lea.vmem %s1423_s0, %s931_s23  ;;  %1136 = vmatprep.subr.bf16.mxu1 %v1183_v3  ;;  %v1140_v43 = vpack.c.bf16 %v603_v42, %v602_v41  ;;  %v1143_v46 = vpack.c.bf16 %v605_v45, %v604_v44  ;;  %v944_v47 = vld [vmem:[%s1425_s2] ss:$0 sm:$0xff]  ;;  %v958_v57 = vld [vmem:[%s1428_s5 + $0x88] sm:$0xff]  ;;  %v959_v59 = vld [vmem:[%s1428_s5 + $0x90] sm:$0xff]  ;;  %s327_s27 = scalar_lea.vmem %s1432_s9, %s932_s21 }
  0x10   : > { %v333_v10 = vld [vmem:[%s323_s26 + $0x1] sm:$0xf]  ;;  %v945_v49 = vld [vmem:[%s1426_s3] ss:$0 sm:$0xff]  ;;  %v960_v60 = vld [vmem:[%s1428_s5 + $0x98] sm:$0xff] }
  0x11   : > { %1022 = vmatmul.mubr.msk.f32.vlgmr.msra.gmra.mrb[0].mxu0 %vm339_vm2, %v333_v10  ;;  %v328_v17 = vld [vmem:[%s323_s26] sm:$0xf]  ;;  %v1149_v62 = vpack.c.bf16 %v960_v60, %v959_v59  ;;  %v962_v0 = vld [vmem:[%s1428_s5 + $0xa8] sm:$0xff]  ;;  %v963_v2 = vld [vmem:[%s1428_s5 + $0xb0] sm:$0xff] }
  0x12   : > { %1111 = vmatpush3.bf16.msra.mxu0 %v1110_v11  ;;  %1032 = vmatprep.mubr.msk.f32.mxu0 %vm1184_vm0, %v1185_v6  ;;  %v486_v24 = vld [vmem:[%s323_s26 + $0x2] sm:$0xf]  ;;  %v946_v52 = vld [vmem:[%s1427_s4] ss:$0 sm:$0xff]  ;;  %v964_v4 = vld [vmem:[%s1428_s5 + $0xb8] sm:$0xff] }
  0x13   : > { %1112 = vmatprep.subr.bf16.mxu0 %v1183_v3  ;;  %1138 = vmatpush3.bf16.msra.mxu1 %v1137_v37  ;;  %v957_v56 = vld [vmem:[%s1428_s5 + $0x80] sm:$0xff]  ;;  %v1155_v5 = vpack.c.bf16 %v964_v4, %v963_v2 }
  0x14   : > { %1139 = vmatprep.subr.bf16.mxu1 %v1183_v3  ;;  %v1146_v58 = vpack.c.bf16 %v958_v57, %v957_v56  ;;  %v961_v63 = vld [vmem:[%s1428_s5 + $0xa0] sm:$0xff] }
  0x15   : > { %v1152_v1 = vpack.c.bf16 %v962_v0, %v961_v63  ;;  %v966_v10 = vld [vmem:[%s1429_s6] ss:$0 sm:$0xff] }
  0x16   : > { %1114 = vmatpush3.bf16.msra.mxu0 %v1113_v14  ;;  %v967_v13 = vld [vmem:[%s1430_s7] ss:$0 sm:$0xff] }
  0x17   : > { %1115 = vmatprep.subr.bf16.mxu0 %v1183_v3  ;;  %1141 = vmatpush3.bf16.msra.mxu1 %v1140_v43 }
  0x18   : > { %1142 = vmatprep.subr.bf16.mxu1 %v1183_v3 }
  0x19   : > { %1033 = vmatmul.mubr.msk.f32.vlgmr.msra.gmra.mrb[0].mxu0 %vm339_vm2, %v328_v17 }
  0x1a   : > { %1117 = vmatpush3.bf16.msra.mxu0 %v1116_v18  ;;  %1043 = vmatprep.mubr.msk.f32.mxu0 %vm1184_vm0, %v1185_v6 }
  0x1b   : > { %1118 = vmatprep.subr.bf16.mxu0 %v1183_v3  ;;  %1144 = vmatpush3.bf16.msra.mxu1 %v1143_v46 }
  0x1c   : > { %1145 = vmatprep.subr.bf16.mxu1 %v1183_v3 }
  0x1e   : > { %1120 = vmatpush3.bf16.msra.mxu0 %v1119_v21 }
  0x1f   : > { %1121 = vmatprep.subr.bf16.mxu0 %v1183_v3 }
  0x21   : > { %1044 = vmatmul.mubr.msk.f32.vlgmr.msra.gmra.mrb[0].mxu0 %vm339_vm2, %v486_v24 }
  0x22   : > { %1123 = vmatpush3.bf16.msra.mxu0 %v1122_v25  ;;  %1062 = vmatprep.mubr.msk.f32.mxu0 %vm1184_vm0, %v1185_v6 }
  0x23   : > { %1124 = vmatprep.subr.bf16.mxu0 %v1183_v3 }
  0x26   : > { %1126 = vmatpush3.bf16.msra.mxu0 %v1125_v28 }
  0x27   : > { %1127 = vmatprep.subr.bf16.mxu0 %v1183_v3 }
  0x2a   : > { %1129 = vmatpush3.bf16.msra.mxu0 %v1128_v34 }
  0x2b   : > { %1130 = vmatprep.subr.bf16.mxu0 %v1183_v3 }
  0x2e   : > { %1132 = vmatpush3.bf16.msra.mxu0 %v1131_v40 }
  0xf4   : > { %v561_v48 = vpop.f32.mrb[0].mxu0 }
  0xf5   : > { %v573_v50 = vmul.f32 %v944_v47, %v561_v48  ;;  %v1045_v51 = vpop.f32.mrb[1].mxu0 }
  0xf7   : > { %v581_v53 = vadd.f32 %v945_v49, %v573_v50 }
  0xf9   : > { %vm582_vm3 = vcmp.gt.f32.partialorder %v581_v53, 0.0  ;;  %v590_v54 = vmul.f32 %v946_v52, %v581_v53 }
  0xfb   : > { %v591_v55 = vsel %vm582_vm3, %v581_v53, %v590_v54 }
  0xfc   : > { %596 = vst.msk [vmem:[#allocation2 + $0x1] sm:$0xf] %vm595_vm4, %v591_v55  ;;  %1063 = vmatmul.mubr.msk.f32.vlgmr.msra.gmra.mrb[2].mxu0 %vm615_vm5, %v591_v55 }
 0x103   : > { %v597_v61 = vld [vmem:[#allocation2] sm:$0xf] }
 0x104   : > { %1082 = vmatmul.mubr.msk.f32.vlgmr.msra.gmra.mrb[0].mxu1 %vm615_vm5, %v597_v61 }
 0x105   : > { %1147 = vmatpush3.bf16.msra.mxu1 %v1146_v58  ;;  %1100 = vmatprep.mubr.msk.f32.mxu1 %vm1184_vm0, %v1185_v6  ;;  %v762_v6 = vld [vmem:[#allocation2 + $0x2] sm:$0xf] }
 0x106   : > { %1148 = vmatprep.subr.bf16.mxu1 %v1183_v3 }
 0x109   : > { %1150 = vmatpush3.bf16.msra.mxu1 %v1149_v62 }
 0x10a   : > { %1151 = vmatprep.subr.bf16.mxu1 %v1183_v3 }
 0x10d   : > { %1153 = vmatpush3.bf16.msra.mxu1 %v1152_v1 }
 0x10e   : > { %1154 = vmatprep.subr.bf16.mxu1 %v1183_v3  ;;  %v968_v3 = vld [vmem:[%s1431_s8] ss:$0 sm:$0xff] }
 0x111   : > { %1156 = vmatpush3.bf16.msra.mxu1 %v1155_v5 }
 0x114   : > { %1101 = vmatmul.mubr.msk.f32.vlgmr.msra.gmra.mrb[0].mxu1 %vm615_vm5, %v762_v6 }
 0x1cf   : > { %v685_v7 = vpop.f32.mrb[2].mxu0 }
 0x1d0   : > { %v1064_v8 = vpop.f32.mrb[3].mxu0 }
 0x1e7   : > { %v841_v9 = vpop.f32.mrb[0].mxu1 }
 0x1e8   : > { %v1157_v11 = vadd.f32 %v841_v9, %v685_v7  ;;  %v1102_v12 = vpop.f32.mrb[1].mxu1 }
 0x1ea   : > { %v853_v14 = vmul.f32 %v1157_v11, %v966_v10 }
 0x1ec   : > { %v861_v15 = vadd.f32 %v967_v13, %v853_v14 }
 0x1ee   : > { %vm862_vm6 = vcmp.gt.f32.partialorder %v861_v15, 0.0  ;;  %v870_v16 = vmul.f32 %v968_v3, %v861_v15 }
 0x1f0   : > { %v871_v17 = vsel %vm862_vm6, %v861_v15, %v870_v16 }
 0x1f1   : > { %872 = vst.msk [vmem:[%s327_s27] sm:$0xf] %vm595_vm4, %v871_v17 }
 0x1f2 PF: > { %s19_s30 = sadd.s32 1, %s1181_s30  }
 0x1f3   : > { %p16_p4 = scmp.ge.s32.totalorder %s19_s30, 4  }
 0x1f5   :  { %18 = sbr.rel (!%p16_p4) target bundleno = 1 (0x1), region = 90 }

// kernel: feilian_forward_pallas.10
= control target key start
LH: loop header
LB: loop body
LE: loop exit
PB: predicated region body
PF: predicated region fallthrough
CT: control target
= control target key end

     0   :  { %s746_s15 = smov 0   ;;  %s877_s0 = inlined_call_operand.vmem [shape: f32[2,6,64], index: 0, kind: input, shape index: {}]   ;;  %s878_s1 = inlined_call_operand.vmem [shape: f32[3,64,72], index: 1, kind: input, shape index: {}]   ;;  %s879_s2 = inlined_call_operand.vmem [shape: f32[1,72], index: 2, kind: input, shape index: {}]   ;;  %s880_s3 = inlined_call_operand.vmem [shape: f32[2,5,72], index: 3, kind: output, shape index: {0}]   ;;  %s881_s4 = inlined_call_operand.vmem [shape: f32[2,4,72], index: 4, kind: output, shape index: {1}]  }
   0x1 LB: > { %s549_s16 = sadd.s32 4294967295, %s716_s15   ;;  %p553_p0 = scmp.ge.s32.totalorder %s716_s15, 1  ;;  %s716_s15 = sphi %s746_s15, %s15_s15  }
   0x2   : > { %p164_p1 = scmp.lt.s32.totalorder %s716_s15, 3 }
   0x4   : > { %p165_p2 = pnand %p553_p0, %p164_p1 }
   0x5   : > { %v215_v0 = vld [vmem:[%s878_s1] sm:$0xff] (!%p165_p2)  ;;  %v216_v1 = vld [vmem:[%s878_s1 + $0x8] sm:$0xff] (!%p165_p2)  ;;  %v718_v3 = vmov (!%p165_p2), 0.0|0.0   ;;  %v217_v6 = vld [vmem:[%s878_s1 + $0x10] sm:$0xff] (!%p165_p2)  ;;  %p776_p3 = scmp.lt.s32.totalorder (!%p165_p2), %s549_s16, 1  ;;  %vm719_vm0 = vmmov (!%p165_p2), 0  }
   0x6   : > { %168 = sbr.rel (%p165_p2) target bundleno = 254 (0xfe), region = 32  ;;  %v557_v2 = vld [vmem:[%s878_s1 + $0x80] sm:$0xff] (!%p165_p2)  ;;  %663 = vmatprep.subr.bf16.mxu0 (!%p165_p2), %v718_v3  ;;  %v664_v4 = vpack.c.bf16 (!%p165_p2), %v216_v1, %v215_v0  ;;  %675 = vmatprep.subr.bf16.mxu1 (!%p165_p2), %v718_v3  ;;  %v558_v5 = vld [vmem:[%s878_s1 + $0x88] sm:$0xff] (!%p165_p2)  ;;  %v218_v7 = vld [vmem:[%s878_s1 + $0x18] sm:$0xff] (!%p165_p2)  ;;  %v720_v11 = vmov (!%p165_p2), 0.0   ;;  %vm223_vm1 = vcmask (!%p165_p2), 523264  }
   0x7   : > { %v676_v8 = vpack.c.bf16 (!%p165_p2), %v558_v5, %v557_v2  ;;  %v559_v9 = vld [vmem:[%s878_s1 + $0x90] sm:$0xff] (!%p165_p2)  ;;  %v560_v10 = vld [vmem:[%s878_s1 + $0x98] sm:$0xff] (!%p165_p2)  ;;  %622 = vmatprep.mubr.msk.f32.mxu0 (!%p165_p2), %vm719_vm0, %v720_v11  ;;  %641 = vmatprep.mubr.msk.f32.mxu1 (!%p165_p2), %vm719_vm0, %v720_v11  ;;  %v667_v12 = vpack.c.bf16 (!%p165_p2), %v218_v7, %v217_v6  ;;  %v219_v14 = vld [vmem:[%s878_s1 + $0x20] sm:$0xff] (!%p165_p2)  ;;  %vm461_vm2 = vcmask (!%p165_p2), 585728   ;;  %vm463_vm3 = vcmask (!%p165_p2), 584704  }
   0x8   : > { %665 = vmatpush3.bf16.msra.mxu0 (!%p165_p2), %v664_v4  ;;  %v679_v13 = vpack.c.bf16 (!%p165_p2), %v560_v10, %v559_v9  ;;  %v220_v15 = vld [vmem:[%s878_s1 + $0x28] sm:$0xff] (!%p165_p2)  ;;  %v561_v16 = vld [vmem:[%s878_s1 + $0xa0] sm:$0xff] (!%p165_p2)  ;;  %v221_v20 = vld [vmem:[%s878_s1 + $0x30] sm:$0xff] (!%p165_p2) }
   0x9   : > { %677 = vmatpush3.bf16.msra.mxu1 (!%p165_p2), %v676_v8  ;;  %666 = vmatprep.subr.bf16.mxu0 (!%p165_p2), %v718_v3  ;;  %v562_v17 = vld [vmem:[%s878_s1 + $0xa8] sm:$0xff] (!%p165_p2)  ;;  %v670_v18 = vpack.c.bf16 (!%p165_p2), %v220_v15, %v219_v14  ;;  %v222_v21 = vld [vmem:[%s878_s1 + $0x38] sm:$0xff] (!%p165_p2)  ;;  %v563_v22 = vld [vmem:[%s878_s1 + $0xb0] sm:$0xff] (!%p165_p2) }
   0xa   : > { %678 = vmatprep.subr.bf16.mxu1 (!%p165_p2), %v718_v3  ;;  %v682_v19 = vpack.c.bf16 (!%p165_p2), %v562_v17, %v561_v16  ;;  %v564_v23 = vld [vmem:[%s878_s1 + $0xb8] sm:$0xff] (!%p165_p2)  ;;  %v673_v24 = vpack.c.bf16 (!%p165_p2), %v222_v21, %v221_v20  ;;  %v568_v26 = vld [vmem:[%s878_s1 + $0x40] sm:$0xff] (!%p165_p2)  ;;  %v569_v27 = vld [vmem:[%s878_s1 + $0x48] sm:$0xff] (!%p165_p2) }
   0xb   : > { %v685_v25 = vpack.c.bf16 (!%p165_p2), %v564_v23, %v563_v22  ;;  %v688_v29 = vpack.c.bf16 (!%p165_p2), %v569_v27, %v568_v26  ;;  %v570_v31 = vld [vmem:[%s878_s1 + $0x50] sm:$0xff] (!%p165_p2)  ;;  %v571_v32 = vld [vmem:[%s878_s1 + $0x58] sm:$0xff] (!%p165_p2)  ;;  %v572_v34 = vld [vmem:[%s878_s1 + $0x60] sm:$0xff] (!%p165_p2) }
   0xc   : > { %668 = vmatpush3.bf16.msra.mxu0 (!%p165_p2), %v667_v12  ;;  %v691_v33 = vpack.c.bf16 (!%p165_p2), %v571_v32, %v570_v31  ;;  %v573_v35 = vld [vmem:[%s878_s1 + $0x68] sm:$0xff] (!%p165_p2)  ;;  %v574_v37 = vld [vmem:[%s878_s1 + $0x70] sm:$0xff] (!%p165_p2)  ;;  %v575_v38 = vld [vmem:[%s878_s1 + $0x78] sm:$0xff] (!%p165_p2) }
   0xd   : > { %s884_s16 = smov (!%p776_p3, %s549_s16), 1  ;;  %680 = vmatpush3.bf16.msra.mxu1 %v679_v13  ;;  %669 = vmatprep.subr.bf16.mxu0 %v718_v3  ;;  %v694_v36 = vpack.c.bf16 %v573_v35, %v572_v34  ;;  %v697_v39 = vpack.c.bf16 %v575_v38, %v574_v37  ;;  %v567_v44 = vld [vmem:[%s879_s2] ss:$0 sm:$0xff] }
   0xe   : > { %681 = vmatprep.subr.bf16.mxu1 %v718_v3  ;;  %s554_s26 = sshll.u32 %s884_s16, 3  ;;  %s556_s28 = sshll.u32 %s884_s16, 2 }
   0xf   : > { %s195_s29 = scalar_lea.vmem %s877_s0, %s554_s26  ;;  %s199_s27 = scalar_lea.vmem %s880_s3, %s554_s26 }
  0x10   : > { %671 = vmatpush3.bf16.msra.mxu0 %v670_v18  ;;  %v214_v28 = vld [vmem:[%s195_s29 + $0x1] sm:$0x1f]  ;;  %s203_s5 = scalar_lea.vmem %s881_s4, %s556_s28 }
  0x11   : > { %683 = vmatpush3.bf16.msra.mxu1 %v682_v19  ;;  %672 = vmatprep.subr.bf16.mxu0 %v718_v3  ;;  %v204_v30 = vld [vmem:[%s195_s29] sm:$0x1f] }
  0x12   : > { %684 = vmatprep.subr.bf16.mxu1 %v718_v3  ;;  %v378_v40 = vld [vmem:[%s195_s29 + $0x1] sm:$0xf] }
  0x14   : > { %674 = vmatpush3.bf16.msra.mxu0 %v673_v24 }
  0x15   : > { %686 = vmatpush3.bf16.msra.mxu1 %v685_v25  ;;  %687 = vmatprep.subr.bf16.mxu0 %v718_v3 }
  0x17   : > { %623 = vmatmul.mubr.msk.f32.vlgmr.msra.gmra.mrb[0].mxu0 %vm223_vm1, %v214_v28 }
  0x18   : > { %642 = vmatmul.mubr.msk.f32.vlgmr.msra.gmra.mrb[0].mxu1 %vm223_vm1, %v204_v30  ;;  %689 = vmatpush3.bf16.msra.mxu0 %v688_v29 }
  0x19   : > { %690 = vmatprep.subr.bf16.mxu0 %v718_v3  ;;  %660 = vmatprep.mubr.msk.f32.mxu0 %vm719_vm0, %v720_v11 }
  0x1c   : > { %692 = vmatpush3.bf16.msra.mxu0 %v691_v33 }
  0x1d   : > { %693 = vmatprep.subr.bf16.mxu0 %v718_v3 }
  0x20   : > { %695 = vmatpush3.bf16.msra.mxu0 %v694_v36 }
  0x21   : > { %696 = vmatprep.subr.bf16.mxu0 %v718_v3 }
  0x24   : > { %698 = vmatpush3.bf16.msra.mxu0 %v697_v39 }
  0x27   : > { %661 = vmatmul.mubr.msk.f32.vlgmr.msra.gmra.mrb[2].mxu0 %vm223_vm1, %v378_v40 }
  0xea   : > { %v293_v41 = vpop.f32.mrb[0].mxu0 }
  0xeb   : > { %v624_v42 = vpop.f32.mrb[1].mxu0  ;;  %v366_v43 = vpop.f32.mrb[0].mxu1 }
  0xec   : > { %v367_v45 = vadd.f32 %v366_v43, %v293_v41  ;;  %v643_v46 = vpop.f32.mrb[1].mxu1 }
  0xee   : > { %v377_v47 = vadd.f32 %v567_v44, %v367_v45 }
  0xf0   : > { %462 = vst.msk [vmem:[%s199_s27] sm:$0x1f] %vm461_vm2, %v377_v47 }
  0xfa   : > { %v457_v48 = vpop.f32.mrb[2].mxu0 }
  0xfb   : > { %v458_v49 = vadd.f32 %v567_v44, %v457_v48  ;;  %v662_v50 = vpop.f32.mrb[3].mxu0 }
  0xfd   : > { %464 = vst.msk [vmem:[%s203_s5] sm:$0xf] %vm463_vm3, %v458_v49 }
  0xfe PF: > { %s15_s15 = sadd.s32 1, %s716_s15  }
  0xff   : > { %p12_p4 = scmp.ge.s32.totalorder %s15_s15, 4  }
 0x101   :  { %14 = sbr.rel (!%p12_p4) target bundleno = 1 (0x1), region = 76 }

// kernel: feilian_forward_pallas.12
= control target key start
LH: loop header
LB: loop body
LE: loop exit
PB: predicated region body
PF: predicated region fallthrough
CT: control target
= control target key end

     0   :  { %s791_s15 = smov 0   ;;  %s905_s0 = inlined_call_operand.vmem [shape: f32[2,10,64], index: 0, kind: input, shape index: {}]   ;;  %s906_s1 = inlined_call_operand.vmem [shape: f32[3,64,68], index: 1, kind: input, shape index: {}]   ;;  %s907_s2 = inlined_call_operand.vmem [shape: f32[1,68], index: 2, kind: input, shape index: {}]   ;;  %s908_s3 = inlined_call_operand.vmem [shape: f32[2,9,68], index: 3, kind: output, shape index: {0}]   ;;  %s909_s4 = inlined_call_operand.vmem [shape: f32[2,8,68], index: 4, kind: output, shape index: {1}]  }
   0x1 LB: > { %s576_s16 = sadd.s32 4294967295, %s761_s15   ;;  %p580_p0 = scmp.ge.s32.totalorder %s761_s15, 1  ;;  %s761_s15 = sphi %s791_s15, %s15_s15  }
   0x2   : > { %p165_p1 = scmp.lt.s32.totalorder %s761_s15, 3 }
   0x4   : > { %p166_p2 = pnand %p580_p0, %p165_p1 }
   0x5   : > { %v222_v0 = vld [vmem:[%s906_s1] sm:$0xff] (!%p166_p2)  ;;  %v223_v1 = vld [vmem:[%s906_s1 + $0x8] sm:$0xff] (!%p166_p2)  ;;  %v224_v2 = vld [vmem:[%s906_s1 + $0x10] sm:$0xff] (!%p166_p2)  ;;  %p195_p3 = scmp.lt.s32.totalorder (!%p166_p2), %s576_s16, 1  ;;  %v763_v5 = vmov (!%p166_p2), 0.0|0.0   ;;  %vm764_vm0 = vmmov (!%p166_p2), 0  }
   0x6   : > { %169 = sbr.rel (%p166_p2) target bundleno = 256 (0x100), region = 32  ;;  %v698_v3 = vpack.c.bf16 (!%p166_p2), %v223_v1, %v222_v0  ;;  %v225_v4 = vld [vmem:[%s906_s1 + $0x18] sm:$0xff] (!%p166_p2)  ;;  %730 = vmatprep.subr.bf16.mxu1 (!%p166_p2), %v763_v5  ;;  %v226_v7 = vld [vmem:[%s906_s1 + $0x20] sm:$0xff] (!%p166_p2)  ;;  %v227_v8 = vld [vmem:[%s906_s1 + $0x28] sm:$0xff] (!%p166_p2)  ;;  %v765_v9 = vmov (!%p166_p2), 0.0   ;;  %vm230_vm1 = vcmask (!%p166_p2), 523264  }
   0x7   : > { %v702_v6 = vpack.c.bf16 (!%p166_p2), %v225_v4, %v224_v2  ;;  %695 = vmatprep.mubr.msk.f32.mxu1 (!%p166_p2), %vm764_vm0, %v765_v9  ;;  %v599_v10 = vld [vmem:[%s906_s1 + $0x40] sm:$0xff] (!%p166_p2)  ;;  %v600_v11 = vld [vmem:[%s906_s1 + $0x48] sm:$0xff] (!%p166_p2)  ;;  %v601_v13 = vld [vmem:[%s906_s1 + $0x50] sm:$0xff] (!%p166_p2)  ;;  %v706_v14 = vpack.c.bf16 (!%p166_p2), %v227_v8, %v226_v7  ;;  %vm485_vm2 = vcmask (!%p166_p2), 556032   ;;  %vm487_vm3 = vcmask (!%p166_p2), 548864  }
   0x8   : > { %699 = vmatprep.subr.bf16.mxu0 (!%p166_p2), %v698_v3  ;;  %v731_v12 = vpack.c.bf16 (!%p166_p2), %v600_v11, %v599_v10  ;;  %v602_v15 = vld [vmem:[%s906_s1 + $0x58] sm:$0xff] (!%p166_p2)  ;;  %v228_v16 = vld [vmem:[%s906_s1 + $0x30] sm:$0xff] (!%p166_p2)  ;;  %v603_v20 = vld [vmem:[%s906_s1 + $0x60] sm:$0xff] (!%p166_p2) }
   0x9   : > { %701 = vmatpush3.bf16.msra.mxu0 (!%p166_p2), %v698_v3  ;;  %v229_v17 = vld [vmem:[%s906_s1 + $0x38] sm:$0xff] (!%p166_p2)  ;;  %v734_v19 = vpack.c.bf16 (!%p166_p2), %v602_v15, %v601_v13  ;;  %v604_v21 = vld [vmem:[%s906_s1 + $0x68] sm:$0xff] (!%p166_p2)  ;;  %v586_v23 = vld [vmem:[%s906_s1 + $0x80] sm:$0xff] (!%p166_p2) }
   0xa   : > { %703 = vmatprep.subr.bf16.mxu0 (!%p166_p2), %v702_v6  ;;  %732 = vmatpush3.bf16.msra.mxu1 (!%p166_p2), %v731_v12  ;;  %v710_v22 = vpack.c.bf16 (!%p166_p2), %v229_v17, %v228_v16  ;;  %v587_v24 = vld [vmem:[%s906_s1 + $0x88] sm:$0xff] (!%p166_p2)  ;;  %v737_v25 = vpack.c.bf16 (!%p166_p2), %v604_v21, %v603_v20  ;;  %v605_v26 = vld [vmem:[%s906_s1 + $0x70] sm:$0xff] (!%p166_p2)  ;;  %v606_v27 = vld [vmem:[%s906_s1 + $0x78] sm:$0xff] (!%p166_p2) }
   0xb   : > { %733 = vmatprep.subr.bf16.mxu1 (!%p166_p2), %v763_v5  ;;  %v714_v28 = vpack.c.bf16 (!%p166_p2), %v587_v24, %v586_v23  ;;  %v588_v29 = vld [vmem:[%s906_s1 + $0x90] sm:$0xff] (!%p166_p2)  ;;  %v589_v30 = vld [vmem:[%s906_s1 + $0x98] sm:$0xff] (!%p166_p2)  ;;  %v740_v31 = vpack.c.bf16 (!%p166_p2), %v606_v27, %v605_v26  ;;  %v590_v35 = vld [vmem:[%s906_s1 + $0xa0] sm:$0xff] (!%p166_p2) }
   0xc   : > { %v718_v33 = vpack.c.bf16 (!%p166_p2), %v589_v30, %v588_v29  ;;  %v591_v36 = vld [vmem:[%s906_s1 + $0xa8] sm:$0xff] (!%p166_p2)  ;;  %v592_v38 = vld [vmem:[%s906_s1 + $0xb0] sm:$0xff] (!%p166_p2)  ;;  %v593_v39 = vld [vmem:[%s906_s1 + $0xb8] sm:$0xff] (!%p166_p2) }
   0xd   : > { %s911_s16 = smov (!%p195_p3, %s576_s16), 1  ;;  %705 = vmatpush3.bf16.msra.mxu0 %v702_v6  ;;  %v722_v37 = vpack.c.bf16 %v591_v36, %v590_v35  ;;  %v726_v40 = vpack.c.bf16 %v593_v39, %v592_v38  ;;  %v598_v42 = vld [vmem:[%s907_s2] ss:$0 sm:$0xff] }
   0xe   : > { %s610_s7 = sshll.u32 %s911_s16, 4  ;;  %707 = vmatprep.subr.bf16.mxu0 %v706_v14  ;;  %735 = vmatpush3.bf16.msra.mxu1 %v734_v19  ;;  %s585_s23 = sshll.u32 %s911_s16, 3 }
   0xf   : > { %s834_s12 = scalar_lea.vmem %s905_s0, %s610_s7  ;;  %736 = vmatprep.subr.bf16.mxu1 %v763_v5  ;;  %s208_s28 = scalar_lea.vmem %s909_s4, %s585_s23 }
  0x10   : > { %v220_v18 = vld [vmem:[%s834_s12 + $0x1] sm:$0xff]  ;;  %v221_v32 = vld [vmem:[%s834_s12 + $0x9] sm:$0x1] }
  0x11   : > { %657 = vmatprep.mubr.msk.f32.mxu0 %vm230_vm1, %v220_v18  ;;  %709 = vmatpush3.bf16.msra.mxu0 %v706_v14  ;;  %v209_v34 = vld [vmem:[%s834_s12] sm:$0xff]  ;;  %v210_v41 = vld [vmem:[%s834_s12 + $0x8] sm:$0x1]  ;;  %s204_s12 = scalar_lea.vmem %s908_s3, %s610_s7 }
  0x12   : > { %711 = vmatprep.subr.bf16.mxu0 %v710_v22  ;;  %738 = vmatpush3.bf16.msra.mxu1 %v737_v25 }
  0x13   : > { %739 = vmatprep.subr.bf16.mxu1 %v763_v5 }
  0x15   : > { %713 = vmatpush3.bf16.msra.mxu0 %v710_v22 }
  0x16   : > { %715 = vmatprep.subr.bf16.mxu0 %v714_v28  ;;  %741 = vmatpush3.bf16.msra.mxu1 %v740_v31 }
  0x18   : > { %658 = vmatmul.mubr.msk.f32.vlgmr.msra.gmra.mrb[0].mxu0 %vm230_vm1, %v221_v32 }
  0x19   : > { %717 = vmatpush3.bf16.msra.mxu0 %v714_v28  ;;  %676 = vmatprep.mubr.msk.f32.mxu0 %vm230_vm1, %v209_v34 }
  0x1a   : > { %719 = vmatprep.subr.bf16.mxu0 %v718_v33  ;;  %696 = vmatmul.mubr.msk.f32.vlgmr.msra.gmra.mrb[0].mxu1 %vm230_vm1, %v220_v18 }
  0x1d   : > { %721 = vmatpush3.bf16.msra.mxu0 %v718_v33 }
  0x1e   : > { %723 = vmatprep.subr.bf16.mxu0 %v722_v37 }
  0x21   : > { %725 = vmatpush3.bf16.msra.mxu0 %v722_v37 }
  0x22   : > { %727 = vmatprep.subr.bf16.mxu0 %v726_v40 }
  0x25   : > { %729 = vmatpush3.bf16.msra.mxu0 %v726_v40 }
  0x28   : > { %677 = vmatmul.mubr.msk.f32.vlgmr.msra.gmra.mrb[0].mxu0 %vm230_vm1, %v210_v41 }
  0xed   : > { %v481_v43 = vpop.f32.mrb[0].mxu1 }
  0xee   : > { %v482_v44 = vadd.f32 %v598_v42, %v481_v43  ;;  %v697_v45 = vpop.f32.mrb[1].mxu1 }
  0xf0   : > { %489 = vst.msk [vmem:[%s208_s28] sm:$0xff] %vm485_vm2, %v482_v44 }
  0xfb   : > { %v678_v46 = vpop.f32.mrb[0].mxu0 }
  0xfc   : > { %v401_v47 = vadd.f32 %v678_v46, %v598_v42  ;;  %v384_v48 = vpop.f32.mrb[1].mxu0 }
  0xfd   : > { %v400_v49 = vadd.f32 %v598_v42, %v384_v48 }
  0xfe   : > { %488 = vst.msk [vmem:[%s204_s12 + $0x8] sm:$0x1] %vm487_vm3, %v401_v47 }
  0xff   : > { %486 = vst.msk [vmem:[%s204_s12] sm:$0xff] %vm485_vm2, %v400_v49 }
 0x100 PF: > { %s15_s15 = sadd.s32 1, %s761_s15  }
 0x101   : > { %p12_p4 = scmp.ge.s32.totalorder %s15_s15, 4  }
 0x103   :  { %14 = sbr.rel (!%p12_p4) target bundleno = 1 (0x1), region = 76 }

// kernel: feilian_forward_pallas.11
= control target key start
LH: loop header
LB: loop body
LE: loop exit
PB: predicated region body
PF: predicated region fallthrough
CT: control target
= control target key end

     0   :  { %s1449_s30 = smov 0   ;;  %s1768_s0 = inlined_call_operand.vmem [shape: f32[2,10,128], index: 0, kind: input, shape index: {}]   ;;  %s1769_s1 = inlined_call_operand.vmem [shape: f32[3,128,64], index: 1, kind: input, shape index: {}]   ;;  %s1770_s2 = inlined_call_operand.vmem [shape: f32[1,64], index: 2, kind: input, shape index: {}]   ;;  %s1771_s3 = inlined_call_operand.vmem [shape: f32[1,64], index: 3, kind: input, shape index: {}]   ;;  %s1772_s4 = inlined_call_operand.vmem [shape: f32[1,64], index: 4, kind: input, shape index: {}]   ;;  %s1773_s5 = inlined_call_operand.vmem [shape: f32[3,64,64], index: 5, kind: input, shape index: {}]   ;;  %s1774_s6 = inlined_call_operand.vmem [shape: f32[1,64], index: 6, kind: input, shape index: {}]   ;;  %s1775_s7 = inlined_call_operand.vmem [shape: f32[1,64], index: 7, kind: input, shape index: {}]   ;;  %s1776_s8 = inlined_call_operand.vmem [shape: f32[1,64], index: 8, kind: input, shape index: {}]   ;;  %s1777_s9 = inlined_call_operand.vmem [shape: f32[2,8,64], index: 9, kind: output, shape index: {}]  }
   0x1 LB: > { %s954_s10 = sadd.s32 4294967295, %s1394_s30   ;;  %p958_p0 = scmp.ge.s32.totalorder %s1394_s30, 1  ;;  %s1394_s30 = sphi %s1449_s30, %s19_s30  }
   0x2   : > { %p287_p1 = scmp.lt.s32.totalorder %s1394_s30, 3 }
   0x4   : > { %p288_p2 = pnand %p958_p0, %p287_p1 }
   0x5   : > { %v332_v0 = vld [vmem:[%s1769_s1] sm:$0xff] (!%p288_p2)  ;;  %v333_v1 = vld [vmem:[%s1769_s1 + $0x8] sm:$0xff] (!%p288_p2)  ;;  %v334_v2 = vld [vmem:[%s1769_s1 + $0x10] sm:$0xff] (!%p288_p2)  ;;  %v1396_v3 = vmov (!%p288_p2), 0.0|0.0   ;;  %vm621_vm0 = vcmask (!%p288_p2), 516096   ;;  %vm1397_vm1 = vmmov (!%p288_p2), 0  }
   0x6   : > { %291 = sbr.rel (%p288_p2) target bundleno = 544 (0x220), region = 56  ;;  %1286 = vmatprep.subr.bf16.mxu0 (!%p288_p2), %v1396_v3  ;;  %v1287_v4 = vpack.c.bf16 (!%p288_p2), %v333_v1, %v332_v0  ;;  %v335_v5 = vld [vmem:[%s1769_s1 + $0x18] sm:$0xff] (!%p288_p2)  ;;  %1262 = vmatprep.subr.bf16.mxu1 (!%p288_p2), %v1396_v3  ;;  %v1398_v6 = vmov (!%p288_p2), 0.0   ;;  %v336_v8 = vld [vmem:[%s1769_s1 + $0x20] sm:$0xff] (!%p288_p2)  ;;  %v337_v9 = vld [vmem:[%s1769_s1 + $0x28] sm:$0xff] (!%p288_p2)  ;;  %p322_p3 = scmp.lt.s32.totalorder (!%p288_p2), %s954_s10, 1 }
   0x7   : > { %1167 = vmatprep.mubr.msk.f32.mxu0 (!%p288_p2), %vm1397_vm1, %v1398_v6  ;;  %622 = vst.msk [vmem:[#allocation2] sm:$0x1] (!%p288_p2), %vm621_vm0, %v1398_v6  ;;  %623 = vst.msk [vmem:[#allocation2 + $0x9] sm:$0x1] (!%p288_p2), %vm621_vm0, %v1398_v6  ;;  %1132 = vmatprep.mubr.msk.f32.mxu1 (!%p288_p2), %vm1397_vm1, %v1398_v6  ;;  %v1290_v7 = vpack.c.bf16 (!%p288_p2), %v335_v5, %v334_v2  ;;  %v962_v10 = vld [vmem:[%s1769_s1 + $0x80] sm:$0xff] (!%p288_p2)  ;;  %v963_v11 = vld [vmem:[%s1769_s1 + $0x88] sm:$0xff] (!%p288_p2)  ;;  %v1293_v14 = vpack.c.bf16 (!%p288_p2), %v337_v9, %v336_v8 }
   0x8   : > { %1288 = vmatpush3.bf16.msra.mxu0 (!%p288_p2), %v1287_v4  ;;  %v1263_v12 = vpack.c.bf16 (!%p288_p2), %v963_v11, %v962_v10  ;;  %v964_v13 = vld [vmem:[%s1769_s1 + $0x90] sm:$0xff] (!%p288_p2)  ;;  %v965_v15 = vld [vmem:[%s1769_s1 + $0x98] sm:$0xff] (!%p288_p2)  ;;  %v966_v19 = vld [vmem:[%s1769_s1 + $0xa0] sm:$0xff] (!%p288_p2)  ;;  %vm624_vm3 = vcmask (!%p288_p2), 523264  }
   0x9   : > { %1289 = vmatprep.subr.bf16.mxu0 (!%p288_p2), %v1396_v3  ;;  %v338_v16 = vld [vmem:[%s1769_s1 + $0x30] sm:$0xff] (!%p288_p2)  ;;  %v339_v17 = vld [vmem:[%s1769_s1 + $0x38] sm:$0xff] (!%p288_p2)  ;;  %v1266_v18 = vpack.c.bf16 (!%p288_p2), %v965_v15, %v964_v13  ;;  %v967_v20 = vld [vmem:[%s1769_s1 + $0xa8] sm:$0xff] (!%p288_p2) }
   0xa   : > { %1264 = vmatpush3.bf16.msra.mxu1 (!%p288_p2), %v1263_v12  ;;  %v1296_v21 = vpack.c.bf16 (!%p288_p2), %v339_v17, %v338_v16  ;;  %v340_v22 = vld [vmem:[%s1769_s1 + $0x40] sm:$0xff] (!%p288_p2)  ;;  %v341_v23 = vld [vmem:[%s1769_s1 + $0x48] sm:$0xff] (!%p288_p2)  ;;  %v1269_v24 = vpack.c.bf16 (!%p288_p2), %v967_v20, %v966_v19  ;;  %v968_v25 = vld [vmem:[%s1769_s1 + $0xb0] sm:$0xff] (!%p288_p2) }
   0xb   : > { %1265 = vmatprep.subr.bf16.mxu1 (!%p288_p2), %v1396_v3  ;;  %v969_v26 = vld [vmem:[%s1769_s1 + $0xb8] sm:$0xff] (!%p288_p2)  ;;  %v1299_v27 = vpack.c.bf16 (!%p288_p2), %v341_v23, %v340_v22  ;;  %v342_v28 = vld [vmem:[%s1769_s1 + $0x50] sm:$0xff] (!%p288_p2)  ;;  %v970_v31 = vld [vmem:[%s1769_s1 + $0xc0] sm:$0xff] (!%p288_p2) }
   0xc   : > { %1291 = vmatpush3.bf16.msra.mxu0 (!%p288_p2), %v1290_v7  ;;  %v343_v29 = vld [vmem:[%s1769_s1 + $0x58] sm:$0xff] (!%p288_p2)  ;;  %v1272_v30 = vpack.c.bf16 (!%p288_p2), %v969_v26, %v968_v25  ;;  %v971_v32 = vld [vmem:[%s1769_s1 + $0xc8] sm:$0xff] (!%p288_p2)  ;;  %v344_v34 = vld [vmem:[%s1769_s1 + $0x60] sm:$0xff] (!%p288_p2) }
   0xd   : > { %1292 = vmatprep.subr.bf16.mxu0 %v1396_v3  ;;  %v1302_v33 = vpack.c.bf16 %v343_v29, %v342_v28  ;;  %v345_v35 = vld [vmem:[%s1769_s1 + $0x68] sm:$0xff]  ;;  %v1275_v36 = vpack.c.bf16 %v971_v32, %v970_v31  ;;  %s1779_s10 = smov (!%p322_p3, %s954_s10), 1  ;;  %v972_v37 = vld [vmem:[%s1769_s1 + $0xd0] sm:$0xff]  ;;  %v973_v38 = vld [vmem:[%s1769_s1 + $0xd8] sm:$0xff] }
   0xe   : > { %1267 = vmatpush3.bf16.msra.mxu1 %v1266_v18  ;;  %v1305_v39 = vpack.c.bf16 %v345_v35, %v344_v34  ;;  %v346_v40 = vld [vmem:[%s1769_s1 + $0x70] sm:$0xff]  ;;  %v347_v41 = vld [vmem:[%s1769_s1 + $0x78] sm:$0xff]  ;;  %v1278_v42 = vpack.c.bf16 %v973_v38, %v972_v37  ;;  %s1021_s29 = sshll.u32 %s1779_s10, 4  ;;  %v974_v43 = vld [vmem:[%s1769_s1 + $0xe0] sm:$0xff]  ;;  %s961_s19 = sshll.u32 %s1779_s10, 3 }
   0xf   : > { %1268 = vmatprep.subr.bf16.mxu1 %v1396_v3  ;;  %v975_v44 = vld [vmem:[%s1769_s1 + $0xe8] sm:$0xff]  ;;  %v1308_v45 = vpack.c.bf16 %v347_v41, %v346_v40  ;;  %s1577_s17 = scalar_lea.vmem %s1768_s0, %s1021_s29  ;;  %v978_v46 = vld [vmem:[%s1769_s1 + $0x100] sm:$0xff]  ;;  %v976_v49 = vld [vmem:[%s1769_s1 + $0xf0] sm:$0xff]  ;;  %s330_s24 = scalar_lea.vmem %s1777_s9, %s961_s19 }
  0x10   : > { %1294 = vmatpush3.bf16.msra.mxu0 %v1293_v14  ;;  %v979_v47 = vld [vmem:[%s1769_s1 + $0x108] sm:$0xff]  ;;  %v1281_v48 = vpack.c.bf16 %v975_v44, %v974_v43  ;;  %v977_v50 = vld [vmem:[%s1769_s1 + $0xf8] sm:$0xff]  ;;  %v331_v51 = vld [vmem:[%s1577_s17] sm:$0xff] }
  0x11   : > { %1295 = vmatprep.subr.bf16.mxu0 %v1396_v3  ;;  %v1311_v52 = vpack.c.bf16 %v979_v47, %v978_v46  ;;  %v980_v53 = vld [vmem:[%s1769_s1 + $0x110] sm:$0xff]  ;;  %v981_v54 = vld [vmem:[%s1769_s1 + $0x118] sm:$0xff]  ;;  %v1284_v55 = vpack.c.bf16 %v977_v50, %v976_v49  ;;  %v997_v56 = vld [vmem:[%s1773_s5 + $0x40] sm:$0xff] }
  0x12   : > { %1270 = vmatpush3.bf16.msra.mxu1 %v1269_v24  ;;  %v998_v57 = vld [vmem:[%s1773_s5 + $0x48] sm:$0xff]  ;;  %v1314_v58 = vpack.c.bf16 %v981_v54, %v980_v53  ;;  %v982_v59 = vld [vmem:[%s1769_s1 + $0x120] sm:$0xff]  ;;  %v999_v63 = vld [vmem:[%s1773_s5 + $0x50] sm:$0xff] }
  0x13   : > { %1271 = vmatprep.subr.bf16.mxu1 %v1396_v3  ;;  %v983_v60 = vld [vmem:[%s1769_s1 + $0x128] sm:$0xff]  ;;  %v1335_v62 = vpack.c.bf16 %v998_v57, %v997_v56  ;;  %v1000_v0 = vld [vmem:[%s1773_s5 + $0x58] sm:$0xff]  ;;  %v984_v2 = vld [vmem:[%s1769_s1 + $0x130] sm:$0xff] }
  0x14   : > { %1297 = vmatpush3.bf16.msra.mxu0 %v1296_v21  ;;  %v348_v61 = vld [vmem:[%s1577_s17 + $0x1] sm:$0xff]  ;;  %v1317_v1 = vpack.c.bf16 %v983_v60, %v982_v59  ;;  %v985_v4 = vld [vmem:[%s1769_s1 + $0x138] sm:$0xff]  ;;  %v1338_v5 = vpack.c.bf16 %v1000_v0, %v999_v63  ;;  %v988_v11 = vld [vmem:[%s1769_s1 + $0x150] sm:$0xff] }
  0x15   : > { %1298 = vmatprep.subr.bf16.mxu0 %v1396_v3  ;;  %v1320_v7 = vpack.c.bf16 %v985_v4, %v984_v2  ;;  %v986_v8 = vld [vmem:[%s1769_s1 + $0x140] sm:$0xff]  ;;  %v987_v9 = vld [vmem:[%s1769_s1 + $0x148] sm:$0xff]  ;;  %v989_v12 = vld [vmem:[%s1769_s1 + $0x158] sm:$0xff] }
  0x16   : > { %1273 = vmatpush3.bf16.msra.mxu1 %v1272_v30  ;;  %v1323_v10 = vpack.c.bf16 %v987_v9, %v986_v8  ;;  %v1326_v13 = vpack.c.bf16 %v989_v12, %v988_v11  ;;  %v990_v14 = vld [vmem:[%s1769_s1 + $0x160] sm:$0xff]  ;;  %v991_v15 = vld [vmem:[%s1769_s1 + $0x168] sm:$0xff]  ;;  %v992_v17 = vld [vmem:[%s1769_s1 + $0x170] sm:$0xff] }
  0x17   : > { %1274 = vmatprep.subr.bf16.mxu1 %v1396_v3  ;;  %v1329_v16 = vpack.c.bf16 %v991_v15, %v990_v14  ;;  %v993_v18 = vld [vmem:[%s1769_s1 + $0x178] sm:$0xff]  ;;  %v506_v20 = vld [vmem:[%s1577_s17 + $0x2] sm:$0xff]  ;;  %v1003_v24 = vld [vmem:[%s1773_s5 + $0x70] sm:$0xff] }
  0x18   : > { %1300 = vmatpush3.bf16.msra.mxu0 %v1299_v27  ;;  %v1332_v19 = vpack.c.bf16 %v993_v18, %v992_v17  ;;  %v1001_v21 = vld [vmem:[%s1773_s5 + $0x60] sm:$0xff]  ;;  %v1002_v22 = vld [vmem:[%s1773_s5 + $0x68] sm:$0xff]  ;;  %v1004_v25 = vld [vmem:[%s1773_s5 + $0x78] sm:$0xff] }
  0x19   : > { %1301 = vmatprep.subr.bf16.mxu0 %v1396_v3  ;;  %v1341_v23 = vpack.c.bf16 %v1002_v22, %v1001_v21  ;;  %v1344_v26 = vpack.c.bf16 %v1004_v25, %v1003_v24  ;;  %v994_v30 = vld [vmem:[%s1770_s2] ss:$0 sm:$0xff]  ;;  %v628_v37 = vld [vmem:[%s1773_s5 + $0x8] sm:$0xff]  ;;  %v629_v41 = vld [vmem:[%s1773_s5 + $0x10] sm:$0xff] }
  0x1a   : > { %1276 = vmatpush3.bf16.msra.mxu1 %v1275_v36  ;;  %v996_v35 = vld [vmem:[%s1772_s4] ss:$0 sm:$0xff]  ;;  %v632_v46 = vld [vmem:[%s1773_s5 + $0x28] sm:$0xff]  ;;  %v634_v49 = vld [vmem:[%s1773_s5 + $0x38] sm:$0xff] }
  0x1b   : > { %1277 = vmatprep.subr.bf16.mxu1 %v1396_v3  ;;  %v627_v36 = vld [vmem:[%s1773_s5] sm:$0xff]  ;;  %v1009_v54 = vld [vmem:[%s1773_s5 + $0x90] sm:$0xff]  ;;  %v1012_v59 = vld [vmem:[%s1773_s5 + $0xa8] sm:$0xff] }
  0x1c   : > { %1303 = vmatpush3.bf16.msra.mxu0 %v1302_v33  ;;  %v995_v33 = vld [vmem:[%s1771_s3] ss:$0 sm:$0xff]  ;;  %v1347_v40 = vpack.c.bf16 %v628_v37, %v627_v36 }
  0x1d   : > { %1304 = vmatprep.subr.bf16.mxu0 %v1396_v3  ;;  %v1016_v0 = vld [vmem:[%s1774_s6] ss:$0 sm:$0xff] }
  0x1e   : > { %1279 = vmatpush3.bf16.msra.mxu1 %v1278_v42  ;;  %v630_v42 = vld [vmem:[%s1773_s5 + $0x18] sm:$0xff]  ;;  %v1017_v2 = vld [vmem:[%s1775_s7] ss:$0 sm:$0xff] }
  0x1f   : > { %1280 = vmatprep.subr.bf16.mxu1 %v1396_v3  ;;  %v1350_v44 = vpack.c.bf16 %v630_v42, %v629_v41 }
  0x20   : > { %1306 = vmatpush3.bf16.msra.mxu0 %v1305_v39 }
  0x21   : > { %1307 = vmatprep.subr.bf16.mxu0 %v1396_v3 }
  0x22   : > { %1282 = vmatpush3.bf16.msra.mxu1 %v1281_v48  ;;  %v633_v48 = vld [vmem:[%s1773_s5 + $0x30] sm:$0xff] }
  0x23   : > { %1283 = vmatprep.subr.bf16.mxu1 %v1396_v3  ;;  %v1356_v50 = vpack.c.bf16 %v634_v49, %v633_v48 }
  0x24   : > { %1309 = vmatpush3.bf16.msra.mxu0 %v1308_v45  ;;  %v631_v45 = vld [vmem:[%s1773_s5 + $0x20] sm:$0xff] }
  0x25   : > { %1310 = vmatprep.subr.bf16.mxu0 %v1396_v3  ;;  %v1353_v47 = vpack.c.bf16 %v632_v46, %v631_v45 }
  0x26   : > { %1285 = vmatpush3.bf16.msra.mxu1 %v1284_v55  ;;  %v1010_v55 = vld [vmem:[%s1773_s5 + $0x98] sm:$0xff] }
  0x27   : > { %1168 = vmatmul.mubr.f32.vlgmr.msra.gmra.mrb[0].mxu0 %v331_v51  ;;  %1334 = vmatprep.subr.bf16.mxu1 %v1396_v3  ;;  %v1007_v51 = vld [vmem:[%s1773_s5 + $0x80] sm:$0xff]  ;;  %v1362_v57 = vpack.c.bf16 %v1010_v55, %v1009_v54 }
  0x28   : > { %1312 = vmatpush3.bf16.msra.mxu0 %v1311_v52  ;;  %1202 = vmatprep.mubr.msk.f32.mxu0 %vm1397_vm1, %v1398_v6  ;;  %v1008_v52 = vld [vmem:[%s1773_s5 + $0x88] sm:$0xff] }
  0x29   : > { %1313 = vmatprep.subr.bf16.mxu0 %v1396_v3  ;;  %1133 = vmatmul.mubr.f32.vlgmr.msra.gmra.mrb[0].mxu1 %v348_v61  ;;  %v1359_v53 = vpack.c.bf16 %v1008_v52, %v1007_v51  ;;  %v1013_v61 = vld [vmem:[%s1773_s5 + $0xb0] sm:$0xff] }
  0x2a   : > { %1336 = vmatpush3.bf16.msra.mxu1 %v1335_v62  ;;  %1221 = vmatprep.mubr.msk.f32.mxu1 %vm1397_vm1, %v1398_v6 }
  0x2b   : > { %1337 = vmatprep.subr.bf16.mxu1 %v1396_v3 }
  0x2c   : > { %1315 = vmatpush3.bf16.msra.mxu0 %v1314_v58  ;;  %v1011_v58 = vld [vmem:[%s1773_s5 + $0xa0] sm:$0xff] }
  0x2d   : > { %1316 = vmatprep.subr.bf16.mxu0 %v1396_v3  ;;  %v1365_v60 = vpack.c.bf16 %v1012_v59, %v1011_v58 }
  0x2e   : > { %1339 = vmatpush3.bf16.msra.mxu1 %v1338_v5 }
  0x2f   : > { %1340 = vmatprep.subr.bf16.mxu1 %v1396_v3 }
  0x30   : > { %1318 = vmatpush3.bf16.msra.mxu0 %v1317_v1 }
  0x31   : > { %1319 = vmatprep.subr.bf16.mxu0 %v1396_v3 }
  0x32   : > { %1342 = vmatpush3.bf16.msra.mxu1 %v1341_v23 }
  0x33   : > { %1343 = vmatprep.subr.bf16.mxu1 %v1396_v3 }
  0x34   : > { %1321 = vmatpush3.bf16.msra.mxu0 %v1320_v7 }
  0x35   : > { %1322 = vmatprep.subr.bf16.mxu0 %v1396_v3 }
  0x36   : > { %1345 = vmatpush3.bf16.msra.mxu1 %v1344_v26 }
  0x37   : > { %1346 = vmatprep.subr.bf16.mxu1 %v1396_v3 }
  0x38   : > { %1324 = vmatpush3.bf16.msra.mxu0 %v1323_v10 }
  0x39   : > { %1325 = vmatprep.subr.bf16.mxu0 %v1396_v3 }
  0x3c   : > { %1327 = vmatpush3.bf16.msra.mxu0 %v1326_v13 }
  0x3d   : > { %1328 = vmatprep.subr.bf16.mxu0 %v1396_v3 }
  0x40   : > { %1330 = vmatpush3.bf16.msra.mxu0 %v1329_v16 }
  0x41   : > { %1331 = vmatprep.subr.bf16.mxu0 %v1396_v3 }
  0x44   : > { %1333 = vmatpush3.bf16.msra.mxu0 %v1332_v19 }
  0x47   : > { %1203 = vmatmul.mubr.f32.vlgmr.msra.gmra.mrb[0].mxu0 %v506_v20 }
  0xfc   : > { %v432_v27 = vpop.f32.mrb[0].mxu1 }
  0xfd   : > { %v1134_v28 = vpop.f32.mrb[1].mxu1 }
 0x11a   : > { %v590_v29 = vpop.f32.mrb[0].mxu0 }
 0x11b   : > { %v1370_v31 = vadd.f32 %v590_v29, %v432_v27  ;;  %v1204_v32 = vpop.f32.mrb[1].mxu0 }
 0x11d   : > { %v602_v34 = vmul.f32 %v1370_v31, %v994_v30 }
 0x11f   : > { %v610_v38 = vadd.f32 %v995_v33, %v602_v34 }
 0x121   : > { %v619_v39 = vmul.f32 %v996_v35, %v610_v38  ;;  %vm611_vm2 = vcmp.gt.f32.partialorder %v610_v38, 0.0 }
 0x123   : > { %v620_v43 = vsel %vm611_vm2, %v610_v38, %v619_v39 }
 0x124   : > { %625 = vst.msk [vmem:[#allocation2 + $0x1] sm:$0xff] %vm624_vm3, %v620_v43  ;;  %1222 = vmatmul.mubr.msk.f32.vlgmr.msra.gmra.mrb[2].mxu1 %vm624_vm3, %v620_v43 }
 0x125   : > { %1348 = vmatpush3.bf16.msra.mxu1 %v1347_v40  ;;  %1240 = vmatprep.mubr.msk.f32.mxu1 %vm1397_vm1, %v1398_v6 }
 0x126   : > { %1349 = vmatprep.subr.bf16.mxu1 %v1396_v3 }
 0x129   : > { %1351 = vmatpush3.bf16.msra.mxu1 %v1350_v44 }
 0x12a   : > { %1352 = vmatprep.subr.bf16.mxu1 %v1396_v3 }
 0x12b   : > { %v626_v56 = vld [vmem:[#allocation2] sm:$0xff] }
 0x12c   : > { %v790_v63 = vld [vmem:[#allocation2 + $0x2] sm:$0xff] }
 0x12d   : > { %1354 = vmatpush3.bf16.msra.mxu1 %v1353_v47 }
 0x12e   : > { %1355 = vmatprep.subr.bf16.mxu1 %v1396_v3 }
 0x131   : > { %1357 = vmatpush3.bf16.msra.mxu1 %v1356_v50 }
 0x132   : > { %1358 = vmatprep.subr.bf16.mxu1 %v1396_v3 }
 0x134   : > { %1241 = vmatmul.mubr.msk.f32.vlgmr.msra.gmra.mrb[2].mxu1 %vm624_vm3, %v626_v56 }
 0x135   : > { %1360 = vmatpush3.bf16.msra.mxu1 %v1359_v53  ;;  %1259 = vmatprep.mubr.msk.f32.mxu1 %vm1397_vm1, %v1398_v6  ;;  %v1014_v6 = vld [vmem:[%s1773_s5 + $0xb8] sm:$0xff] }
 0x136   : > { %1361 = vmatprep.subr.bf16.mxu1 %v1396_v3  ;;  %v1368_v62 = vpack.c.bf16 %v1014_v6, %v1013_v61 }
 0x139   : > { %1363 = vmatpush3.bf16.msra.mxu1 %v1362_v57 }
 0x13a   : > { %1364 = vmatprep.subr.bf16.mxu1 %v1396_v3 }
 0x13d   : > { %1366 = vmatpush3.bf16.msra.mxu1 %v1365_v60 }
 0x13e   : > { %1367 = vmatprep.subr.bf16.mxu1 %v1396_v3  ;;  %v1018_v3 = vld [vmem:[%s1776_s8] ss:$0 sm:$0xff] }
 0x141   : > { %1369 = vmatpush3.bf16.msra.mxu1 %v1368_v62 }
 0x144   : > { %1260 = vmatmul.mubr.msk.f32.vlgmr.msra.gmra.mrb[2].mxu1 %vm624_vm3, %v790_v63 }
 0x217   : > { %v869_v1 = vpop.f32.mrb[2].mxu1 }
 0x218   : > { %v881_v4 = vmul.f32 %v1016_v0, %v869_v1  ;;  %v1261_v5 = vpop.f32.mrb[3].mxu1 }
 0x21a   : > { %v889_v7 = vadd.f32 %v1017_v2, %v881_v4 }
 0x21c   : > { %vm890_vm4 = vcmp.gt.f32.partialorder %v889_v7, 0.0  ;;  %v898_v8 = vmul.f32 %v1018_v3, %v889_v7 }
 0x21e   : > { %v899_v9 = vsel %vm890_vm4, %v889_v7, %v898_v8 }
 0x21f   : > { %900 = vst.msk [vmem:[%s330_s24] sm:$0xff] %vm624_vm3, %v899_v9 }
 0x220 PF: > { %s19_s30 = sadd.s32 1, %s1394_s30  }
 0x221   : > { %p16_p4 = scmp.ge.s32.totalorder %s19_s30, 4  }
 0x223   :  { %18 = sbr.rel (!%p16_p4) target bundleno = 1 (0x1), region = 90 }

// kernel: feilian_forward_pallas.13
= control target key start
LH: loop header
LB: loop body
LE: loop exit
PB: predicated region body
PF: predicated region fallthrough
CT: control target
= control target key end

     0   :  { %s2257_s0 = inlined_call_operand.vmem [shape: f32[2,18,128], index: 0, kind: input, shape index: {}]   ;;  %s2258_s1 = inlined_call_operand.vmem [shape: f32[3,128,64], index: 1, kind: input, shape index: {}]   ;;  %s2259_s2 = inlined_call_operand.vmem [shape: f32[1,64], index: 2, kind: input, shape index: {}]   ;;  %s2260_s3 = inlined_call_operand.vmem [shape: f32[1,64], index: 3, kind: input, shape index: {}]   ;;  %s2261_s4 = inlined_call_operand.vmem [shape: f32[1,64], index: 4, kind: input, shape index: {}]   ;;  %s2262_s5 = inlined_call_operand.vmem [shape: f32[3,64,64], index: 5, kind: input, shape index: {}]   ;;  %s2263_s6 = inlined_call_operand.vmem [shape: f32[1,64], index: 6, kind: input, shape index: {}]   ;;  %s2264_s7 = inlined_call_operand.vmem [shape: f32[1,64], index: 7, kind: input, shape index: {}]   ;;  %s2265_s8 = inlined_call_operand.vmem [shape: f32[1,64], index: 8, kind: input, shape index: {}]   ;;  %s2266_s9 = inlined_call_operand.vmem [shape: f32[64,16], index: 9, kind: input, shape index: {}]   ;;  %s2267_s10 = inlined_call_operand.vmem [shape: f32[1,16], index: 10, kind: input, shape index: {}]   ;;  %s2268_s11 = inlined_call_operand.hbm [shape: f32[2,16,16], index: 11, kind: output, shape index: {}]  }
   0x1   :  { %2269 = sst [smem:[#allocation7_spill]] %s2257_s0 }
   0x2   :  { %16 = vsyncpa [#allocation4], 0 }
   0x3   :  { %18 = vsyncpa [#allocation4 + $0x1], 0  ;;  %s1875_s17 = smov 0   ;;  %s1877_s18 = smov 0  }
   0x4   :  { %s1879_s19 = smov 0   ;;  %s1881_s20 = smov 0  }
   0x5 LB: > { %s1896_s21 = sadd.s32 4294967295, %s1809_s20   ;;  %s1186_s22 = sadd.s32 4294967294, %s1809_s20   ;;  %s1809_s20 = sphi %s1881_s20, %s2278_s20   ;;  %s1805_s19 = sphi %s1879_s19, %s2277_s19   ;;  %s1801_s18 = sphi %s1877_s18, %s2276_s18   ;;  %s1797_s17 = sphi %s1875_s17, %s2275_s17  }
   0x6   : > { %s1900_s23 = sadd.s32 1, %s1809_s20   ;;  %s267_s24 = sadd.s32 1, %s1805_s19 }
   0x7   : > { %s264_s25 = ssub.s32 %s1809_s20, %s1900_s23  ;;  %p277_p0 = scmp.ne.s32.totalorder %s1805_s19, %s1801_s18 }
   0x8   : > { %p265_p1 = scmp.eq.s32.totalorder %s264_s25, 0  ;;  %p278_p2 = scmp.eq.s32.totalorder %s1896_s21, 1 }
   0x9   : > { %p283_p3 = scmp.ne.s32.totalorder %s1801_s18, %s1797_s17  ;;  %p284_p4 = scmp.eq.s32.totalorder %s1186_s22, 1 }
   0xa   : > { %s1911_s26 = scalar_select %p265_p1, %s1805_s19, %s267_s24  }
   0xb   : > { %p1913_p5 = por %p278_p2, %p277_p0  ;;  %p1917_p6 = por %p284_p4, %p283_p3 }
   0xc   : > { %2270 = sst [smem:[#allocation6_spill]] %s1911_s26  ;;  %p1189_p7 = scmp.ge.s32.totalorder %s1809_s20, 1 }
   0xd   : > { %p340_p8 = scmp.lt.s32.totalorder %s1809_s20, 3 }
   0xf   : > { %p341_p9 = pnand %p1189_p7, %p340_p8 }
  0x10   : > { %v1192_v0 = vld [vmem:[%s2258_s1 + $0x80] sm:$0xff] (!%p341_p9)  ;;  %v1193_v1 = vld [vmem:[%s2258_s1 + $0x88] sm:$0xff] (!%p341_p9)  ;;  %v1194_v2 = vld [vmem:[%s2258_s1 + $0x90] sm:$0xff] (!%p341_p9)  ;;  %p380_p10 = scmp.lt.s32.totalorder (!%p341_p9), %s1896_s21, 1  ;;  %s2273_s0 = sld [smem:[#allocation7_spill]] (!%p341_p9)  ;;  %vm699_vm0 = vcmask (!%p341_p9), 516096  }
  0x11   : > { %344 = sbr.rel (%p341_p9) target bundleno = 819 (0x333), region = 64  ;;  %v1536_v3 = vpack.c.bf16 (!%p341_p9), %v1193_v1, %v1192_v0  ;;  %v1195_v4 = vld [vmem:[%s2258_s1 + $0x98] sm:$0xff] (!%p341_p9)  ;;  %v1196_v6 = vld [vmem:[%s2258_s1 + $0xa0] sm:$0xff] (!%p341_p9)  ;;  %v1197_v7 = vld [vmem:[%s2258_s1 + $0xa8] sm:$0xff] (!%p341_p9)  ;;  %vm702_vm1 = vcmask (!%p341_p9), 523264   ;;  %vm1107_vm6 = vcmask (!%p341_p9), 130048  }
  0x12   : > { %v1540_v5 = vpack.c.bf16 (!%p341_p9), %v1195_v4, %v1194_v2  ;;  %v1544_v8 = vpack.c.bf16 (!%p341_p9), %v1197_v7, %v1196_v6  ;;  %v1198_v9 = vld [vmem:[%s2258_s1 + $0xb0] sm:$0xff] (!%p341_p9)  ;;  %v1199_v10 = vld [vmem:[%s2258_s1 + $0xb8] sm:$0xff] (!%p341_p9)  ;;  %v1200_v13 = vld [vmem:[%s2258_s1 + $0xc0] sm:$0xff] (!%p341_p9)  ;;  %s1812_s22 = smov (!%p341_p9), [#allocation3]  }
  0x13   : > { %1537 = vmatprep.subr.bf16.mxu0 (!%p341_p9), %v1536_v3  ;;  %v1548_v12 = vpack.c.bf16 (!%p341_p9), %v1199_v10, %v1198_v9  ;;  %v1201_v14 = vld [vmem:[%s2258_s1 + $0xc8] sm:$0xff] (!%p341_p9)  ;;  %v1202_v16 = vld [vmem:[%s2258_s1 + $0xd0] sm:$0xff] (!%p341_p9)  ;;  %v1203_v17 = vld [vmem:[%s2258_s1 + $0xd8] sm:$0xff] (!%p341_p9) }
  0x14   : > { %1539 = vmatpush3.bf16.msra.mxu0 (!%p341_p9), %v1536_v3  ;;  %v1552_v15 = vpack.c.bf16 (!%p341_p9), %v1201_v14, %v1200_v13  ;;  %v1556_v18 = vpack.c.bf16 (!%p341_p9), %v1203_v17, %v1202_v16  ;;  %v1204_v19 = vld [vmem:[%s2258_s1 + $0xe0] sm:$0xff] (!%p341_p9)  ;;  %v1205_v20 = vld [vmem:[%s2258_s1 + $0xe8] sm:$0xff] (!%p341_p9)  ;;  %v1229_v23 = vld [vmem:[%s2262_s5 + $0x50] sm:$0xff] (!%p341_p9) }
  0x15   : > { %1541 = vmatprep.subr.bf16.mxu0 (!%p341_p9), %v1540_v5  ;;  %v1227_v21 = vld [vmem:[%s2262_s5 + $0x40] sm:$0xff] (!%p341_p9)  ;;  %v1228_v22 = vld [vmem:[%s2262_s5 + $0x48] sm:$0xff] (!%p341_p9)  ;;  %v1230_v25 = vld [vmem:[%s2262_s5 + $0x58] sm:$0xff] (!%p341_p9)  ;;  %v1560_v27 = vpack.c.bf16 (!%p341_p9), %v1205_v20, %v1204_v19 }
  0x16   : > { %v1632_v24 = vpack.c.bf16 (!%p341_p9), %v1228_v22, %v1227_v21  ;;  %v1636_v26 = vpack.c.bf16 (!%p341_p9), %v1230_v25, %v1229_v23  ;;  %v1206_v28 = vld [vmem:[%s2258_s1 + $0xf0] sm:$0xff] (!%p341_p9)  ;;  %v1207_v29 = vld [vmem:[%s2258_s1 + $0xf8] sm:$0xff] (!%p341_p9)  ;;  %v387_v31 = vld [vmem:[%s2258_s1] sm:$0xff] (!%p341_p9) }
  0x17   : > { %v1564_v30 = vpack.c.bf16 (!%p341_p9), %v1207_v29, %v1206_v28  ;;  %v388_v32 = vld [vmem:[%s2258_s1 + $0x8] sm:$0xff] (!%p341_p9)  ;;  %v389_v34 = vld [vmem:[%s2258_s1 + $0x10] sm:$0xff] (!%p341_p9)  ;;  %v390_v35 = vld [vmem:[%s2258_s1 + $0x18] sm:$0xff] (!%p341_p9)  ;;  %v1811_v29 = vmov (!%p341_p9), 0.0  }
  0x18   : > { %s381_s12 = scalar_select %p380_p10, %s1896_s21, 1  ;;  %1543 = vmatpush3.bf16.msra.mxu0 %v1540_v5  ;;  %1633 = vmatprep.subr.bf16.mxu1 %v1632_v24  ;;  %v1568_v33 = vpack.c.bf16 %v388_v32, %v387_v31  ;;  %v1572_v37 = vpack.c.bf16 %v390_v35, %v389_v34  ;;  %v391_v39 = vld [vmem:[%s2258_s1 + $0x20] sm:$0xff]  ;;  %v392_v40 = vld [vmem:[%s2258_s1 + $0x28] sm:$0xff]  ;;  %v393_v42 = vld [vmem:[%s2258_s1 + $0x30] sm:$0xff]  ;;  %700 = vst.msk [vmem:[#allocation2] sm:$0x1] %vm699_vm0, %v1811_v29 }
  0x19   : > { %1545 = vmatprep.subr.bf16.mxu0 %v1544_v8  ;;  %1635 = vmatpush3.bf16.msra.mxu1 %v1632_v24  ;;  %v1576_v41 = vpack.c.bf16 %v392_v40, %v391_v39  ;;  %v394_v43 = vld [vmem:[%s2258_s1 + $0x38] sm:$0xff]  ;;  %v395_v45 = vld [vmem:[%s2258_s1 + $0x40] sm:$0xff]  ;;  %v396_v46 = vld [vmem:[%s2258_s1 + $0x48] sm:$0xff]  ;;  %701 = vst.msk [vmem:[#allocation2 + $0x11] sm:$0x1] %vm699_vm0, %v1811_v29 }
  0x1a   : > { %s1704_s13 = smul.u32 24, %s381_s12  ;;  %1637 = vmatprep.subr.bf16.mxu1 %v1636_v26  ;;  %v1580_v44 = vpack.c.bf16 %v394_v43, %v393_v42  ;;  %v1584_v47 = vpack.c.bf16 %v396_v46, %v395_v45  ;;  %v397_v48 = vld [vmem:[%s2258_s1 + $0x50] sm:$0xff]  ;;  %v398_v49 = vld [vmem:[%s2258_s1 + $0x58] sm:$0xff]  ;;  %v399_v51 = vld [vmem:[%s2258_s1 + $0x60] sm:$0xff] }
  0x1b   : > { %v1588_v50 = vpack.c.bf16 %v398_v49, %v397_v48  ;;  %v400_v52 = vld [vmem:[%s2258_s1 + $0x68] sm:$0xff]  ;;  %v401_v54 = vld [vmem:[%s2258_s1 + $0x70] sm:$0xff]  ;;  %v402_v55 = vld [vmem:[%s2258_s1 + $0x78] sm:$0xff] }
  0x1c   : > { %s1952_s26 = scalar_lea.vmem %s2273_s0, %s1704_s13  ;;  %1547 = vmatpush3.bf16.msra.mxu0 %v1544_v8  ;;  %v1592_v53 = vpack.c.bf16 %v400_v52, %v399_v51  ;;  %v1596_v56 = vpack.c.bf16 %v402_v55, %v401_v54  ;;  %v1208_v57 = vld [vmem:[%s2258_s1 + $0x100] sm:$0xff]  ;;  %v1209_v58 = vld [vmem:[%s2258_s1 + $0x108] sm:$0xff]  ;;  %v1210_v60 = vld [vmem:[%s2258_s1 + $0x110] sm:$0xff]  ;;  %s1260_s0 = sshll.u32 %s1896_s21, 8 }
  0x1d   : > { %v403_v11 = vld [vmem:[%s1952_s26 + $0x1] sm:$0xff]  ;;  %1549 = vmatprep.subr.bf16.mxu0 %v1548_v12  ;;  %1639 = vmatpush3.bf16.msra.mxu1 %v1636_v26  ;;  %v404_v36 = vld [vmem:[%s1952_s26 + $0x9] sm:$0xff]  ;;  %v1600_v59 = vpack.c.bf16 %v1209_v58, %v1208_v57  ;;  %v1211_v61 = vld [vmem:[%s2258_s1 + $0x118] sm:$0xff]  ;;  %s2214_s13 = scalar_lea.hbm %s2268_s11, %s1260_s0 }
  0x1e   : > { %1387 = vmatprep.mubr.f32.mxu0 %v403_v11  ;;  %v385_v38 = vld [vmem:[%s1952_s26] sm:$0xff]  ;;  %v386_v62 = vld [vmem:[%s1952_s26 + $0x8] sm:$0xff]  ;;  %v1604_v63 = vpack.c.bf16 %v1211_v61, %v1210_v60  ;;  %v1214_v4 = vld [vmem:[%s2258_s1 + $0x130] sm:$0xff] }
  0x1f   : > { %v572_v0 = vld [vmem:[%s1952_s26 + $0x2] sm:$0xff]  ;;  %v1215_v5 = vld [vmem:[%s2258_s1 + $0x138] sm:$0xff]  ;;  %v1218_v10 = vld [vmem:[%s2258_s1 + $0x150] sm:$0xff] }
  0x20   : > { %1551 = vmatpush3.bf16.msra.mxu0 %v1548_v12  ;;  %v1212_v1 = vld [vmem:[%s2258_s1 + $0x120] sm:$0xff]  ;;  %v1213_v2 = vld [vmem:[%s2258_s1 + $0x128] sm:$0xff]  ;;  %v1612_v6 = vpack.c.bf16 %v1215_v5, %v1214_v4  ;;  %v1219_v11 = vld [vmem:[%s2258_s1 + $0x158] sm:$0xff] }
  0x21   : > { %1553 = vmatprep.subr.bf16.mxu0 %v1552_v15  ;;  %v1608_v3 = vpack.c.bf16 %v1213_v2, %v1212_v1  ;;  %v1216_v7 = vld [vmem:[%s2258_s1 + $0x140] sm:$0xff]  ;;  %v1217_v8 = vld [vmem:[%s2258_s1 + $0x148] sm:$0xff]  ;;  %v1620_v12 = vpack.c.bf16 %v1219_v11, %v1218_v10  ;;  %v1222_v16 = vld [vmem:[%s2258_s1 + $0x170] sm:$0xff] }
  0x22   : > { %v1616_v9 = vpack.c.bf16 %v1217_v8, %v1216_v7  ;;  %v1220_v13 = vld [vmem:[%s2258_s1 + $0x160] sm:$0xff]  ;;  %v1221_v14 = vld [vmem:[%s2258_s1 + $0x168] sm:$0xff]  ;;  %v1223_v17 = vld [vmem:[%s2258_s1 + $0x178] sm:$0xff] }
  0x23   : > { %v573_v19 = vld [vmem:[%s1952_s26 + $0xa] sm:$0xff]  ;;  %v1231_v20 = vld [vmem:[%s2262_s5 + $0x60] sm:$0xff]  ;;  %v1234_v24 = vld [vmem:[%s2262_s5 + $0x78] sm:$0xff]  ;;  %s377_s26 = sand.u32 1, %s1801_s18  }
  0x24   : > { %1555 = vmatpush3.bf16.msra.mxu0 %v1552_v15  ;;  %v1624_v15 = vpack.c.bf16 %v1221_v14, %v1220_v13  ;;  %v1232_v21 = vld [vmem:[%s2262_s5 + $0x68] sm:$0xff]  ;;  %v1233_v23 = vld [vmem:[%s2262_s5 + $0x70] sm:$0xff]  ;;  %v707_v26 = vld [vmem:[%s2262_s5] sm:$0xff]  ;;  %s1190_s24 = sshll.u32 %s377_s26, 4  ;;  %s2216_s16 = scalar_lea.sflag [#allocation4], %s377_s26 }
  0x25   : > { %1557 = vmatprep.subr.bf16.mxu0 %v1556_v18  ;;  %v1640_v22 = vpack.c.bf16 %v1232_v21, %v1231_v20  ;;  %v1644_v25 = vpack.c.bf16 %v1234_v24, %v1233_v23  ;;  %v1225_v32 = vld [vmem:[%s2260_s3] ss:$0 sm:$0xff]  ;;  %v709_v40 = vld [vmem:[%s2262_s5 + $0x10] sm:$0xff]  ;;  %v1240_v54 = vld [vmem:[%s2262_s5 + $0x88] sm:$0xff]  ;;  %s379_s30 = scalar_lea.vmem [#allocation3], %s1190_s24  ;;  %s1751_s24 = sshll.u32 %s1812_s22, 4  ;;  %s1752_s24 = int_to_ptr.vmem [resolvable:$false] %s1751_s24 }
  0x26   : > { %v711_v46 = vld [vmem:[%s2262_s5 + $0x20] sm:$0xff]  ;;  %v713_v49 = vld [vmem:[%s2262_s5 + $0x30] sm:$0xff]  ;;  %v1242_v57 = vld [vmem:[%s2262_s5 + $0x98] sm:$0xff]  ;;  %s1124_s12 = sshll.u32 %s379_s30, 4  ;;  %s1753_s25 = scalar_lea.vmem %s1752_s24, 512  ;;  %s2209_s12 = int_to_ptr.vmem [resolvable:$true] %s1124_s12 }
  0x27   : > { %1641 = vmatprep.subr.bf16.mxu1 %v1640_v22  ;;  %v1243_v60 = vld [vmem:[%s2262_s5 + $0xa0] sm:$0xff]  ;;  %v1244_v61 = vld [vmem:[%s2262_s5 + $0xa8] sm:$0xff]  ;;  %v1246_v1 = vld [vmem:[%s2262_s5 + $0xb8] sm:$0xff]  ;;  %s1747_s21 = scalar_lea.vmem %s2209_s12, 256  ;;  %p1754_p0 = scmp.lt.s32.totalorder %s2209_s12, %s1752_s24 }
  0x28   : > { %1559 = vmatpush3.bf16.msra.mxu0 %v1556_v18  ;;  %v1628_v18 = vpack.c.bf16 %v1223_v17, %v1222_v16  ;;  %1643 = vmatpush3.bf16.msra.mxu1 %v1640_v22  ;;  %v1012_v4 = vld [vmem:[%s2266_s9 + $0x8] sm:$0xff]  ;;  %v1014_v7 = vld [vmem:[%s2266_s9 + $0x18] sm:$0xff]  ;;  %v1015_v10 = vld [vmem:[%s2266_s9 + $0x20] sm:$0xff]  ;;  %p1748_p11 = scmp.ne.s32.totalorder %s2209_s12, %s1747_s21  ;;  %p1755_p1 = scmp.lt.s32.totalorder %s1753_s25, %s1747_s21 }
  0x29   : > { %1561 = vmatprep.subr.bf16.mxu0 %v1560_v27  ;;  %1645 = vmatprep.subr.bf16.mxu1 %v1644_v25  ;;  %v1016_v11 = vld [vmem:[%s2266_s9 + $0x28] sm:$0xff]  ;;  %v1017_v13 = vld [vmem:[%s2266_s9 + $0x30] sm:$0xff]  ;;  %v1018_v14 = vld [vmem:[%s2266_s9 + $0x38] sm:$0xff] }
  0x2a   : > { %v1249_v16 = vld [vmem:[%s2263_s6] ss:$0 sm:$0xff]  ;;  %p1749_p12 = pnand %p1748_p11, %p1913_p5  ;;  %p1756_p2 = por %p1755_p1, %p1754_p0 }
  0x2b   : > { %v1251_v21 = vld [vmem:[%s2265_s8] ss:$0 sm:$0xff] }
  0x2c   : > { %1563 = vmatpush3.bf16.msra.mxu0 %v1560_v27  ;;  %1647 = vmatpush3.bf16.msra.mxu1 %v1644_v25  ;;  %v708_v27 = vld [vmem:[%s2262_s5 + $0x8] sm:$0xff]  ;;  %v1252_v29 = vld [vmem:[%s2267_s10] ss:$0 sm:$0xff]  ;;  %p1750_p13 = pneg %p1749_p12 }
  0x2d   : > { %1565 = vmatprep.subr.bf16.mxu0 %v1564_v30  ;;  %v1648_v28 = vpack.c.bf16 %v708_v27, %v707_v26 }
  0x2e   : > { %p1757_p3 = pnand %p1756_p2, %p1750_p13 }
  0x2f   : > { %1649 = vmatprep.subr.bf16.mxu1 %v1648_v28 }
  0x30   : > { %1567 = vmatpush3.bf16.msra.mxu0 %v1564_v30  ;;  %v1224_v30 = vld [vmem:[%s2259_s2] ss:$0 sm:$0xff] }
  0x31   : > { %1569 = vmatprep.subr.bf16.mxu0 %v1568_v33 }
  0x33   : > { %1388 = vmatmul.mubr.f32.vlgmr.msra.gmra.mrb[0].mxu0 %v404_v36  ;;  %v1226_v36 = vld [vmem:[%s2261_s4] ss:$0 sm:$0xff] }
  0x34   : > { %1571 = vmatpush3.bf16.msra.mxu0 %v1568_v33  ;;  %1422 = vmatprep.mubr.f32.mxu0 %v385_v38 }
  0x35   : > { %1573 = vmatprep.subr.bf16.mxu0 %v1572_v37 }
  0x38   : > { %1575 = vmatpush3.bf16.msra.mxu0 %v1572_v37 }
  0x39   : > { %1577 = vmatprep.subr.bf16.mxu0 %v1576_v41 }
  0x3c   : > { %1579 = vmatpush3.bf16.msra.mxu0 %v1576_v41  ;;  %v710_v41 = vld [vmem:[%s2262_s5 + $0x18] sm:$0xff] }
  0x3d   : > { %1581 = vmatprep.subr.bf16.mxu0 %v1580_v44  ;;  %v1652_v45 = vpack.c.bf16 %v710_v41, %v709_v40 }
  0x40   : > { %1583 = vmatpush3.bf16.msra.mxu0 %v1580_v44 }
  0x41   : > { %1585 = vmatprep.subr.bf16.mxu0 %v1584_v47 }
  0x44   : > { %1587 = vmatpush3.bf16.msra.mxu0 %v1584_v47  ;;  %v712_v47 = vld [vmem:[%s2262_s5 + $0x28] sm:$0xff] }
  0x45   : > { %1589 = vmatprep.subr.bf16.mxu0 %v1588_v50  ;;  %v1656_v48 = vpack.c.bf16 %v712_v47, %v711_v46 }
  0x48   : > { %1591 = vmatpush3.bf16.msra.mxu0 %v1588_v50  ;;  %v714_v50 = vld [vmem:[%s2262_s5 + $0x38] sm:$0xff] }
  0x49   : > { %1593 = vmatprep.subr.bf16.mxu0 %v1592_v53  ;;  %v1660_v52 = vpack.c.bf16 %v714_v50, %v713_v49 }
  0x4c   : > { %1595 = vmatpush3.bf16.msra.mxu0 %v1592_v53  ;;  %v1239_v53 = vld [vmem:[%s2262_s5 + $0x80] sm:$0xff] }
  0x4d   : > { %1597 = vmatprep.subr.bf16.mxu0 %v1596_v56  ;;  %v1664_v55 = vpack.c.bf16 %v1240_v54, %v1239_v53 }
  0x50   : > { %1599 = vmatpush3.bf16.msra.mxu0 %v1596_v56  ;;  %v1241_v56 = vld [vmem:[%s2262_s5 + $0x90] sm:$0xff] }
  0x51   : > { %1601 = vmatprep.subr.bf16.mxu0 %v1600_v59  ;;  %v1668_v58 = vpack.c.bf16 %v1242_v57, %v1241_v56 }
  0x53   : > { %1423 = vmatmul.mubr.f32.vlgmr.msra.gmra.mrb[0].mxu0 %v386_v62 }
  0x54   : > { %1603 = vmatpush3.bf16.msra.mxu0 %v1600_v59  ;;  %1457 = vmatprep.mubr.f32.mxu0 %v572_v0  ;;  %v1245_v0 = vld [vmem:[%s2262_s5 + $0xb0] sm:$0xff] }
  0x55   : > { %1605 = vmatprep.subr.bf16.mxu0 %v1604_v63  ;;  %v1676_v2 = vpack.c.bf16 %v1246_v1, %v1245_v0 }
  0x58   : > { %1607 = vmatpush3.bf16.msra.mxu0 %v1604_v63  ;;  %v1672_v63 = vpack.c.bf16 %v1244_v61, %v1243_v60 }
  0x59   : > { %1609 = vmatprep.subr.bf16.mxu0 %v1608_v3 }
  0x5c   : > { %1611 = vmatpush3.bf16.msra.mxu0 %v1608_v3  ;;  %v1011_v3 = vld [vmem:[%s2266_s9] sm:$0xff] }
  0x5d   : > { %1613 = vmatprep.subr.bf16.mxu0 %v1612_v6  ;;  %v1680_v5 = vpack.c.bf16 %v1012_v4, %v1011_v3 }
  0x60   : > { %1615 = vmatpush3.bf16.msra.mxu0 %v1612_v6  ;;  %v1013_v6 = vld [vmem:[%s2266_s9 + $0x10] sm:$0xff] }
  0x61   : > { %1617 = vmatprep.subr.bf16.mxu0 %v1616_v9  ;;  %v1684_v8 = vpack.c.bf16 %v1014_v7, %v1013_v6 }
  0x64   : > { %1619 = vmatpush3.bf16.msra.mxu0 %v1616_v9 }
  0x65   : > { %1621 = vmatprep.subr.bf16.mxu0 %v1620_v12 }
  0x68   : > { %1623 = vmatpush3.bf16.msra.mxu0 %v1620_v12  ;;  %v1688_v12 = vpack.c.bf16 %v1016_v11, %v1015_v10 }
  0x69   : > { %1625 = vmatprep.subr.bf16.mxu0 %v1624_v15 }
  0x6c   : > { %1627 = vmatpush3.bf16.msra.mxu0 %v1624_v15  ;;  %v1692_v15 = vpack.c.bf16 %v1018_v14, %v1017_v13 }
  0x6d   : > { %1629 = vmatprep.subr.bf16.mxu0 %v1628_v18 }
  0x70   : > { %1631 = vmatpush3.bf16.msra.mxu0 %v1628_v18  ;;  %v1250_v18 = vld [vmem:[%s2264_s7] ss:$0 sm:$0xff] }
  0x73   : > { %1458 = vmatmul.mubr.f32.vlgmr.msra.gmra.mrb[0].mxu0 %v573_v19 }
 0x146   : > { %v1459_v31 = vpop.f32.mrb[0].mxu0 }
 0x147   : > { %v676_v33 = vmul.f32 %v1459_v31, %v1224_v30  ;;  %v657_v34 = vpop.f32.mrb[1].mxu0 }
 0x148   : > { %v675_v35 = vmul.f32 %v1224_v30, %v657_v34 }
 0x149   : > { %v685_v37 = vadd.f32 %v1225_v32, %v676_v33 }
 0x14a   : > { %v684_v38 = vadd.f32 %v1225_v32, %v675_v35 }
 0x14b   : > { %v696_v39 = vmul.f32 %v1226_v36, %v685_v37  ;;  %vm687_vm2 = vcmp.gt.f32.partialorder %v685_v37, 0.0 }
 0x14c   : > { %vm686_vm3 = vcmp.gt.f32.partialorder %v684_v38, 0.0  ;;  %v695_v42 = vmul.f32 %v1226_v36, %v684_v38 }
 0x14d   : > { %v698_v43 = vsel %vm687_vm2, %v685_v37, %v696_v39 }
 0x14e   : > { %v697_v44 = vsel %vm686_vm3, %v684_v38, %v695_v42  ;;  %704 = vst.msk [vmem:[#allocation2 + $0x9] sm:$0xff] %vm702_vm1, %v698_v43 }
 0x14f   : > { %703 = vst.msk [vmem:[#allocation2 + $0x1] sm:$0xff] %vm702_vm1, %v697_v44  ;;  %1476 = vmatprep.mubr.msk.f32.mxu1 %vm702_vm1, %v697_v44 }
 0x150   : > { %1477 = vmatmul.mubr.msk.f32.vlgmr.msra.gmra.mrb[0].mxu1 %vm702_vm1, %v698_v43 }
 0x151   : > { %1651 = vmatpush3.bf16.msra.mxu1 %v1648_v28 }
 0x152   : > { %1653 = vmatprep.subr.bf16.mxu1 %v1652_v45 }
 0x155   : > { %1655 = vmatpush3.bf16.msra.mxu1 %v1652_v45  ;;  %v887_v9 = vld [vmem:[#allocation2 + $0xa] sm:$0xff] }
 0x156   : > { %1657 = vmatprep.subr.bf16.mxu1 %v1656_v48  ;;  %v705_v51 = vld [vmem:[#allocation2] sm:$0xff]  ;;  %v706_v59 = vld [vmem:[#allocation2 + $0x8] sm:$0xff] }
 0x157   : > { %1495 = vmatprep.mubr.msk.f32.mxu1 %vm702_vm1, %v705_v51  ;;  %v886_v62 = vld [vmem:[#allocation2 + $0x2] sm:$0xff] }
 0x159   : > { %1659 = vmatpush3.bf16.msra.mxu1 %v1656_v48 }
 0x15a   : > { %1661 = vmatprep.subr.bf16.mxu1 %v1660_v52 }
 0x15d   : > { %1663 = vmatpush3.bf16.msra.mxu1 %v1660_v52 }
 0x15e   : > { %1665 = vmatprep.subr.bf16.mxu1 %v1664_v55 }
 0x160   : > { %1496 = vmatmul.mubr.msk.f32.vlgmr.msra.gmra.mrb[0].mxu1 %vm702_vm1, %v706_v59 }
 0x161   : > { %1667 = vmatpush3.bf16.msra.mxu1 %v1664_v55  ;;  %1514 = vmatprep.mubr.msk.f32.mxu1 %vm702_vm1, %v886_v62 }
 0x162   : > { %1669 = vmatprep.subr.bf16.mxu1 %v1668_v58 }
 0x165   : > { %1671 = vmatpush3.bf16.msra.mxu1 %v1668_v58 }
 0x166   : > { %1673 = vmatprep.subr.bf16.mxu1 %v1672_v63 }
 0x169   : > { %1675 = vmatpush3.bf16.msra.mxu1 %v1672_v63 }
 0x16a   : > { %1677 = vmatprep.subr.bf16.mxu1 %v1676_v2 }
 0x16d   : > { %1679 = vmatpush3.bf16.msra.mxu1 %v1676_v2 }
 0x16e   : > { %1681 = vmatprep.subr.bf16.mxu1 %v1680_v5 }
 0x170   : > { %1515 = vmatmul.mubr.msk.f32.vlgmr.msra.gmra.mrb[0].mxu1 %vm702_vm1, %v887_v9 }
 0x171   : > { %1683 = vmatpush3.bf16.msra.mxu1 %v1680_v5 }
 0x172   : > { %1685 = vmatprep.subr.bf16.mxu1 %v1684_v8 }
 0x175   : > { %1687 = vmatpush3.bf16.msra.mxu1 %v1684_v8 }
 0x176   : > { %1689 = vmatprep.subr.bf16.mxu1 %v1688_v12 }
 0x179   : > { %1691 = vmatpush3.bf16.msra.mxu1 %v1688_v12 }
 0x17a   : > { %1693 = vmatprep.subr.bf16.mxu1 %v1692_v15 }
 0x17d   : > { %1695 = vmatpush3.bf16.msra.mxu1 %v1692_v15 }
 0x243   : > { %v1516_v17 = vpop.f32.mrb[0].mxu1 }
 0x244   : > { %v988_v19 = vmul.f32 %v1516_v17, %v1249_v16  ;;  %v969_v20 = vpop.f32.mrb[1].mxu1 }
 0x245   : > { %v987_v22 = vmul.f32 %v1249_v16, %v969_v20 }
 0x246   : > { %v997_v23 = vadd.f32 %v1250_v18, %v988_v19 }
 0x247   : > { %v996_v24 = vadd.f32 %v1250_v18, %v987_v22 }
 0x248   : > { %v1008_v25 = vmul.f32 %v1251_v21, %v997_v23  ;;  %vm999_vm4 = vcmp.gt.f32.partialorder %v997_v23, 0.0 }
 0x249   : > { %v1007_v26 = vmul.f32 %v1251_v21, %v996_v24  ;;  %vm998_vm5 = vcmp.gt.f32.partialorder %v996_v24, 0.0 }
 0x24a   : > { %v1010_v28 = vsel %vm999_vm4, %v997_v23, %v1008_v25 }
 0x24b   : > { %v1009_v27 = vsel %vm998_vm5, %v996_v24, %v1007_v26 }
 0x24c   : > { %1533 = vmatprep.mubr.msk.f32.mxu1 %vm702_vm1, %v1009_v27 }
 0x24d   : > { %1534 = vmatmul.mubr.msk.f32.vlgmr.msra.gmra.mrb[2].mxu1 %vm702_vm1, %v1010_v28 }
 0x320   : > { %v1535_v30 = vpop.f32.mrb[2].mxu1 }
 0x321   : > { %v1104_v31 = vadd.f32 %v1535_v30, %v1252_v29  ;;  %v1098_v32 = vpop.f32.mrb[3].mxu1 }
 0x322   : > { %v1099_v33 = vadd.f32 %v1252_v29, %v1098_v32 }
 0x323   : > { %1109 = vst.msk [vmem:[%s379_s30 + $0x8] sm:$0xff] %vm1107_vm6, %v1104_v31 }
 0x324   : > { %1108 = vst.msk [vmem:[%s379_s30] sm:$0xff] %vm1107_vm6, %v1099_v33 }
 0x325   : > { %1760 = shalt.err (!%p1757_p3)
}
 0x326   : > { %s1761_s26 = scalar_lea.hbm %s2214_s13, 256  ;;  %s1765_s0 = scalar_lea.hbm %s2268_s11, 512 }
 0x327   : > { %p1762_p4 = scmp.ne.s32.totalorder %s2214_s13, %s1761_s26  ;;  %p1766_p9 = scmp.lt.u32.totalorder %s2214_s13, %s2268_s11 }
 0x328   : > { %p1767_p10 = scmp.lt.u32.totalorder %s1765_s0, %s1761_s26  ;;  %p1769_p12 = scmp.lt.u32.totalorder %s1761_s26, %s2214_s13 }
 0x329   : > { %p1763_p7 = pnand %p1762_p4, %p1913_p5 }
 0x32a   : > { %p1768_p11 = por %p1767_p10, %p1766_p9 }
 0x32b   : > { %p1764_p8 = pneg %p1763_p7 }
 0x32c   : > { %p1770_p13 = por %p1769_p12, %p1768_p11 }
 0x32e   : > { %p1771_p0 = pnand %p1770_p13, %p1764_p8 }
 0x330   : > { %1774 = shalt.err (!%p1771_p0)
}
 0x331   : > { %s1813_s21 = smov 128   ;;  %s1814_s22 = smov 8  }
 0x332   : > { %1705 = dma.vmem_to_hbm [thread:$0]  (%p1913_p5), %s2209_s12, 256, %s2214_s13, %s2216_s16, %s1813_s21, %s1813_s21, %s1814_s22  }
 0x333 PF: > { %p1711_p1 = scmp.ge.s32.totalorder %s1809_s20, 2  ;;  %s1139_s24 = sand.u32 1, %s1797_s17  }
 0x334   : > { %s1140_s25 = scalar_lea.sflag [#allocation4], %s1139_s24 }
 0x335   : > { %p1708_p2 = pnand %p1711_p1, %p1917_p6 }
 0x337   : > { %1792 = dma.done.wait (!%p1708_p2), %s1140_s25, 256  }
 0x338   : > { %1794 = vsyncadd (!%p1708_p2), %s1140_s25, 4294967040  ;;  %s2274_s26 = sld [smem:[#allocation6_spill]]  ;;  %p21_p3 = scmp.ge.s32.totalorder %s1900_s23, 4  }
 0x339   : > { %s2275_s17 = smov %s1801_s18  ;;  %s2276_s18 = smov %s1805_s19 }
 0x33a   : > { %s2278_s20 = smov %s1900_s23  ;;  %23 = sbr.rel (!%p21_p3) target bundleno = 5 (0x5), region = 103 }
 0x33e   : > { %s2277_s19 = smov %s2274_s26 }
 0x341   :  { %1145 = vsyncpa [#allocation4], 1 }
 0x342   :  { %1147 = vsyncpa [#allocation4 + $0x1], 1 }

</bundles_post_ra>
